<compile_context>
chip_gen: v7x
topology: tpu7x:2x2x1
jax: 0.10.0
libtpu: 0.0.40
codegen_flags: <defaults>
</compile_context>

<pallas_src>
import jax
import jax.numpy as jnp
from jax.experimental import pallas as pl
from jax.experimental.pallas import tpu as pltpu

D = 128                    # embed dim (module constant `d`)
HEAD_NUM = 8
HEAD_DIM = D // HEAD_NUM   # 16
MLP_HIDDEN = D // 2        # 64 (padded to D=128 inside the packed params)
LN_EPS = 1e-5


def _layernorm(x, gamma, beta):
    mean = jnp.mean(x, axis=-1, keepdims=True)
    diff = x - mean
    var = jnp.mean(diff * diff, axis=-1, keepdims=True)
    inv = jax.lax.rsqrt(var + LN_EPS)
    return diff * inv * gamma + beta


def _erf(x):
    # Abramowitz & Stegun 7.1.26 (exp/mul/add only -> lowers on Mosaic).
    a1, a2, a3, a4, a5 = 0.254829592, -0.284496736, 1.421413741, -1.453152027, 1.061405429
    p = 0.3275911
    sgn = jnp.where(x >= 0.0, 1.0, -1.0)
    ax = jnp.abs(x)
    t = 1.0 / (1.0 + p * ax)
    poly = ((((a5 * t + a4) * t + a3) * t + a2) * t + a1) * t
    return sgn * (1.0 - poly * jnp.exp(-ax * ax))


def _gelu(x):
    # exact GELU, matching torch.nn.GELU() default
    return 0.5 * x * (1.0 + _erf(x * 0.7071067811865475))


def vit_block_kernel(x_ref, ln1_ref, wqkv_ref, bqkv_ref, w1_ref, w2_ref,
                     bmlp_ref, o_ref):
    B, S, _ = x_ref.shape
    x = x_ref[...]                                        # (B, S, D) f32

    # ---- LayerNorm 1 (f32) ----
    gamma = ln1_ref[0:1, :]                               # (1, D)
    beta = ln1_ref[1:2, :]                                # (1, D)
    z = _layernorm(x, gamma, beta)                        # (B, S, D)

    # ---- fused QKV projection: one MXU push, bf16 operands, f32 accum ----
    z2 = z.reshape(B * S, D).astype(jnp.bfloat16)
    qkv = jnp.dot(z2, wqkv_ref[...],
                  preferred_element_type=jnp.float32) + bqkv_ref[...]   # (B*S, 3D) f32

    scale = 1.0 / float(D // HEAD_NUM) ** 0.5             # 1 / sqrt(d / head_num) = 0.25
    q = qkv[:, 0:D].reshape(B, S, D) * scale              # fold the score scale into q
    k = qkv[:, D:2 * D].reshape(B, S, D)
    v = qkv[:, 2 * D:3 * D].reshape(B, S, D)
    k_bf = k.astype(jnp.bfloat16)
    v_bf = v.astype(jnp.bfloat16)

    # Lane-index basis for per-head masking (keeps everything 128-lane dense;
    # no 16-lane slices, no scratch writes).
    lane = jax.lax.broadcasted_iota(jnp.int32, (1, 1, D), 2)

    attn_out = jnp.zeros((B, S, D), jnp.float32)
    for h in range(HEAD_NUM):                             # static, fully unrolled
        mask = jnp.logical_and(lane >= h * HEAD_DIM,
                               lane < (h + 1) * HEAD_DIM).astype(jnp.float32)
        # zero other heads' lanes of q -> per-head score via a full 128-deep contraction
        q_h = (q * mask).astype(jnp.bfloat16)             # (B, S, D)
        s_h = jnp.einsum('bic,bjc->bij', q_h, k_bf,
                         preferred_element_type=jnp.float32)            # (B, S, S)
        # faithful to the reference: softmax over the BATCH axis (dim=0)
        m = jnp.max(s_h, axis=0, keepdims=True)
        e = jnp.exp(s_h - m)
        attn = e * pl.reciprocal(jnp.sum(e, axis=0, keepdims=True), approx=True)
        # attention @ v against the full v slab, then keep only head-h lanes
        o_h = jnp.einsum('bij,bjc->bic', attn.astype(jnp.bfloat16), v_bf,
                         preferred_element_type=jnp.float32)            # (B, S, D)
        attn_out = attn_out + o_h * mask

    # dropout = identity (eval); residual 1
    x1 = x + attn_out

    # bn2(x) is computed but discarded in the reference forward -> skipped.

    # ---- MLP (applied to the residual x directly, as in the reference) ----
    # hidden dim is zero-padded 64 -> 128; GELU(0) = 0 and w2's padded rows are
    # zero, so the padding is numerically exact.
    x1_2d = x1.reshape(B * S, D)
    h1 = jnp.dot(x1_2d.astype(jnp.bfloat16), w1_ref[...],
                 preferred_element_type=jnp.float32) + bmlp_ref[0:1, :]  # (B*S, D)
    h1 = _gelu(h1)
    z3 = jnp.dot(h1.astype(jnp.bfloat16), w2_ref[...],
                 preferred_element_type=jnp.float32) + bmlp_ref[1:2, :]  # (B*S, D)

    # residual 2
    o_ref[...] = x1 + z3.reshape(B, S, D)


def vit_block(x, packed_params):
    B, S, _ = x.shape
    vmem = pl.BlockSpec(memory_space=pltpu.MemorySpace.VMEM)
    return pl.pallas_call(
        vit_block_kernel,
        out_shape=jax.ShapeDtypeStruct((B, S, D), jnp.float32),
        in_specs=[vmem] * (1 + len(packed_params)),
        out_specs=vmem,
    )(x, *packed_params)


def init_params(key):
    """Logical (PyTorch-style) f32 parameters."""
    ks = jax.random.split(key, 5)

    def linear(k, fan_in, fan_out):
        kw, kb = jax.random.split(k)
        bound = 1.0 / (fan_in ** 0.5)
        w = jax.random.uniform(kw, (fan_in, fan_out), jnp.float32, -bound, bound)
        b = jax.random.uniform(kb, (1, fan_out), jnp.float32, -bound, bound)
        return w, b

    g1 = jnp.ones((1, D), jnp.float32)        # fresh nn.LayerNorm: gamma=1, beta=0
    b1 = jnp.zeros((1, D), jnp.float32)
    wq, bq = linear(ks[0], D, D)
    wk, bk = linear(ks[1], D, D)
    wv, bv = linear(ks[2], D, D)
    w1, bm1 = linear(ks[3], D, MLP_HIDDEN)
    w2, bm2 = linear(ks[4], MLP_HIDDEN, D)
    return g1, b1, wq, bq, wk, bk, wv, bv, w1, bm1, w2, bm2


def pack_params(params):
    """Fuse / pad / cast parameters for the kernel (done once, outside)."""
    g1, b1, wq, bq, wk, bk, wv, bv, w1, bm1, w2, bm2 = params
    ln1 = jnp.concatenate([g1, b1], axis=0)                                   # (2, D)  f32
    wqkv = jnp.concatenate([wq, wk, wv], axis=1).astype(jnp.bfloat16)         # (D, 3D) bf16
    bqkv = jnp.concatenate([bq, bk, bv], axis=1)                              # (1, 3D) f32
    pad_h = D - MLP_HIDDEN
    w1p = jnp.pad(w1, ((0, 0), (0, pad_h))).astype(jnp.bfloat16)              # (D, D)  bf16
    w2p = jnp.pad(w2, ((0, pad_h), (0, 0))).astype(jnp.bfloat16)              # (D, D)  bf16
    bmlp = jnp.concatenate([jnp.pad(bm1, ((0, 0), (0, pad_h))), bm2], axis=0)  # (2, D)  f32
    return ln1, wqkv, bqkv, w1p, w2p, bmlp


if __name__ == "__main__":
    key = jax.random.PRNGKey(0)
    kx, kp = jax.random.split(key)
    B, S = 8, 8                        # small batch / sequence; d = 128 fixed by module
    x = jax.random.normal(kx, (B, S, D), jnp.float32)
    packed = pack_params(init_params(kp))

    out = vit_block(x, packed)
    out = jax.block_until_ready(out)
    assert out.shape == (B, S, D) and out.dtype == jnp.float32
    assert bool(jnp.all(jnp.isfinite(out)))
    print("KERNEL_OK")
</pallas_src>

<mosaic_0001>
module attributes {stable_mosaic.version = 11 : i64} {
  func.func @vit_block_kernel(%arg0: memref<8x8x128xf32, #tpu.memory_space<vmem>>, %arg1: memref<2x128xf32, #tpu.memory_space<vmem>>, %arg2: memref<128x384xbf16, #tpu.memory_space<vmem>>, %arg3: memref<1x384xf32, #tpu.memory_space<vmem>>, %arg4: memref<128x128xbf16, #tpu.memory_space<vmem>>, %arg5: memref<128x128xbf16, #tpu.memory_space<vmem>>, %arg6: memref<2x128xf32, #tpu.memory_space<vmem>>, %arg7: memref<8x8x128xf32, #tpu.memory_space<vmem>>) attributes {dimension_semantics = [], scalar_prefetch = 0 : i64, scratch_operands = 0 : i64, tpu.core_type = #tpu.core_type<tc>} {
    %c0 = arith.constant 0 : index
    %c0_0 = arith.constant 0 : index
    %c0_1 = arith.constant 0 : index
    %0 = vector.load %arg0[%c0, %c0_0, %c0_1] : memref<8x8x128xf32, #tpu.memory_space<vmem>>, vector<8x8x128xf32>
    %c0_2 = arith.constant 0 : index
    %c0_3 = arith.constant 0 : index
    %1 = vector.load %arg1[%c0_2, %c0_3] : memref<2x128xf32, #tpu.memory_space<vmem>>, vector<1x128xf32>
    %c1 = arith.constant 1 : index
    %c0_4 = arith.constant 0 : index
    %2 = vector.load %arg1[%c1, %c0_4] : memref<2x128xf32, #tpu.memory_space<vmem>>, vector<1x128xf32>
    %cst = arith.constant dense<0.000000e+00> : vector<8x8xf32>
    %3 = vector.multi_reduction <add>, %0, %cst [2] : vector<8x8x128xf32> to vector<8x8xf32>
    %4 = vector.shape_cast %3 : vector<8x8xf32> to vector<8x8x1xf32>
    %cst_5 = arith.constant 1.280000e+02 : f32
    %5 = vector.broadcast %cst_5 : f32 to vector<8x8x1xf32>
    %6 = arith.divf %4, %5 : vector<8x8x1xf32>
    %7 = vector.broadcast %6 : vector<8x8x1xf32> to vector<8x8x128xf32>
    %8 = arith.subf %0, %7 : vector<8x8x128xf32>
    %9 = arith.mulf %8, %8 : vector<8x8x128xf32>
    %cst_6 = arith.constant dense<0.000000e+00> : vector<8x8xf32>
    %10 = vector.multi_reduction <add>, %9, %cst_6 [2] : vector<8x8x128xf32> to vector<8x8xf32>
    %11 = vector.shape_cast %10 : vector<8x8xf32> to vector<8x8x1xf32>
    %cst_7 = arith.constant 1.280000e+02 : f32
    %12 = vector.broadcast %cst_7 : f32 to vector<8x8x1xf32>
    %13 = arith.divf %11, %12 : vector<8x8x1xf32>
    %cst_8 = arith.constant 9.99999974E-6 : f32
    %14 = vector.broadcast %cst_8 : f32 to vector<8x8x1xf32>
    %15 = arith.addf %13, %14 : vector<8x8x1xf32>
    %16 = math.rsqrt %15 : vector<8x8x1xf32>
    %17 = vector.broadcast %16 : vector<8x8x1xf32> to vector<8x8x128xf32>
    %18 = arith.mulf %8, %17 : vector<8x8x128xf32>
    %19 = vector.shape_cast %1 : vector<1x128xf32> to vector<1x1x128xf32>
    %20 = vector.broadcast %19 : vector<1x1x128xf32> to vector<8x8x128xf32>
    %21 = arith.mulf %18, %20 : vector<8x8x128xf32>
    %22 = vector.shape_cast %2 : vector<1x128xf32> to vector<1x1x128xf32>
    %23 = vector.broadcast %22 : vector<1x1x128xf32> to vector<8x8x128xf32>
    %24 = arith.addf %21, %23 : vector<8x8x128xf32>
    %25 = vector.shape_cast %24 : vector<8x8x128xf32> to vector<64x128xf32>
    %26 = arith.truncf %25 : vector<64x128xf32> to vector<64x128xbf16>
    %c0_9 = arith.constant 0 : index
    %c0_10 = arith.constant 0 : index
    %27 = vector.load %arg2[%c0_9, %c0_10] : memref<128x384xbf16, #tpu.memory_space<vmem>>, vector<128x384xbf16>
    %cst_11 = arith.constant dense<0.000000e+00> : vector<64x384xf32>
    %28 = tpu.matmul %26, %27, %cst_11 {dimension_numbers = #tpu.dot_dimension_numbers<[1], [0], [0], [1], [0, 0, 1, 1], [], []>} : vector<64x128xbf16>, vector<128x384xbf16>, vector<64x384xf32> -> vector<64x384xf32>
    %c0_12 = arith.constant 0 : index
    %c0_13 = arith.constant 0 : index
    %29 = vector.load %arg3[%c0_12, %c0_13] : memref<1x384xf32, #tpu.memory_space<vmem>>, vector<1x384xf32>
    %30 = vector.broadcast %29 : vector<1x384xf32> to vector<64x384xf32>
    %31 = arith.addf %28, %30 : vector<64x384xf32>
    %32 = vector.extract_strided_slice %31 {offsets = [0, 0], sizes = [64, 128], strides = [1, 1]} : vector<64x384xf32> to vector<64x128xf32>
    %33 = vector.shape_cast %32 : vector<64x128xf32> to vector<8x8x128xf32>
    %cst_14 = arith.constant 2.500000e-01 : f32
    %34 = vector.broadcast %cst_14 : f32 to vector<8x8x128xf32>
    %35 = arith.mulf %33, %34 : vector<8x8x128xf32>
    %36 = vector.extract_strided_slice %31 {offsets = [0, 128], sizes = [64, 128], strides = [1, 1]} : vector<64x384xf32> to vector<64x128xf32>
    %37 = vector.shape_cast %36 : vector<64x128xf32> to vector<8x8x128xf32>
    %38 = vector.extract_strided_slice %31 {offsets = [0, 256], sizes = [64, 128], strides = [1, 1]} : vector<64x384xf32> to vector<64x128xf32>
    %39 = vector.shape_cast %38 : vector<64x128xf32> to vector<8x8x128xf32>
    %40 = arith.truncf %37 : vector<8x8x128xf32> to vector<8x8x128xbf16>
    %41 = arith.truncf %39 : vector<8x8x128xf32> to vector<8x8x128xbf16>
    %42 = tpu.iota {dimensions = array<i32: 2>} : vector<1x1x128xi32>
    %cst_15 = arith.constant 0.000000e+00 : f32
    %43 = vector.broadcast %cst_15 : f32 to vector<8x8x128xf32>
    %c0_i32 = arith.constant 0 : i32
    %44 = vector.broadcast %c0_i32 : i32 to vector<1x1x128xi32>
    %45 = arith.cmpi sge, %42, %44 : vector<1x1x128xi32>
    %c16_i32 = arith.constant 16 : i32
    %46 = vector.broadcast %c16_i32 : i32 to vector<1x1x128xi32>
    %47 = arith.cmpi slt, %42, %46 : vector<1x1x128xi32>
    %48 = arith.andi %45, %47 : vector<1x1x128xi1>
    %49 = arith.extui %48 : vector<1x1x128xi1> to vector<1x1x128xi32>
    %50 = arith.sitofp %49 : vector<1x1x128xi32> to vector<1x1x128xf32>
    %51 = vector.broadcast %50 : vector<1x1x128xf32> to vector<8x8x128xf32>
    %52 = arith.mulf %35, %51 : vector<8x8x128xf32>
    %53 = arith.truncf %52 : vector<8x8x128xf32> to vector<8x8x128xbf16>
    "tpu.trace_start"() <{level = 10 : i32, message = "bic,bjc->bij"}> : () -> ()
    %cst_16 = arith.constant dense<0.000000e+00> : vector<8x8x8xf32>
    %54 = tpu.matmul %53, %40, %cst_16 {dimension_numbers = #tpu.dot_dimension_numbers<[2], [2], [1], [1], [0, 0, 0, 1, 1, 1], [0], [0]>} : vector<8x8x128xbf16>, vector<8x8x128xbf16>, vector<8x8x8xf32> -> vector<8x8x8xf32>
    "tpu.trace_stop"() : () -> ()
    %cst_17 = arith.constant dense<0xFF800000> : vector<8x8xf32>
    %55 = vector.multi_reduction <maximumf>, %54, %cst_17 [0] : vector<8x8x8xf32> to vector<8x8xf32>
    %56 = vector.shape_cast %55 : vector<8x8xf32> to vector<1x8x8xf32>
    %57 = vector.broadcast %56 : vector<1x8x8xf32> to vector<8x8x8xf32>
    %58 = arith.subf %54, %57 : vector<8x8x8xf32>
    %59 = math.exp %58 : vector<8x8x8xf32>
    %cst_18 = arith.constant dense<0.000000e+00> : vector<8x8xf32>
    %60 = vector.multi_reduction <add>, %59, %cst_18 [0] : vector<8x8x8xf32> to vector<8x8xf32>
    %61 = vector.shape_cast %60 : vector<8x8xf32> to vector<1x8x8xf32>
    %62 = tpu.reciprocal %61 {approx = true} : vector<1x8x8xf32> -> vector<1x8x8xf32>
    %63 = vector.broadcast %62 : vector<1x8x8xf32> to vector<8x8x8xf32>
    %64 = arith.mulf %59, %63 : vector<8x8x8xf32>
    %65 = arith.truncf %64 : vector<8x8x8xf32> to vector<8x8x8xbf16>
    "tpu.trace_start"() <{level = 10 : i32, message = "bij,bjc->bic"}> : () -> ()
    %cst_19 = arith.constant dense<0.000000e+00> : vector<8x8x128xf32>
    %66 = tpu.matmul %65, %41, %cst_19 {dimension_numbers = #tpu.dot_dimension_numbers<[2], [1], [1], [2], [0, 0, 0, 1, 1, 2], [0], [0]>} : vector<8x8x8xbf16>, vector<8x8x128xbf16>, vector<8x8x128xf32> -> vector<8x8x128xf32>
    "tpu.trace_stop"() : () -> ()
    %67 = vector.broadcast %50 : vector<1x1x128xf32> to vector<8x8x128xf32>
    %68 = arith.mulf %66, %67 : vector<8x8x128xf32>
    %69 = arith.addf %43, %68 : vector<8x8x128xf32>
    %c16_i32_20 = arith.constant 16 : i32
    %70 = vector.broadcast %c16_i32_20 : i32 to vector<1x1x128xi32>
    %71 = arith.cmpi sge, %42, %70 : vector<1x1x128xi32>
    %c32_i32 = arith.constant 32 : i32
    %72 = vector.broadcast %c32_i32 : i32 to vector<1x1x128xi32>
    %73 = arith.cmpi slt, %42, %72 : vector<1x1x128xi32>
    %74 = arith.andi %71, %73 : vector<1x1x128xi1>
    %75 = arith.extui %74 : vector<1x1x128xi1> to vector<1x1x128xi32>
    %76 = arith.sitofp %75 : vector<1x1x128xi32> to vector<1x1x128xf32>
    %77 = vector.broadcast %76 : vector<1x1x128xf32> to vector<8x8x128xf32>
    %78 = arith.mulf %35, %77 : vector<8x8x128xf32>
    %79 = arith.truncf %78 : vector<8x8x128xf32> to vector<8x8x128xbf16>
    "tpu.trace_start"() <{level = 10 : i32, message = "bic,bjc->bij"}> : () -> ()
    %cst_21 = arith.constant dense<0.000000e+00> : vector<8x8x8xf32>
    %80 = tpu.matmul %79, %40, %cst_21 {dimension_numbers = #tpu.dot_dimension_numbers<[2], [2], [1], [1], [0, 0, 0, 1, 1, 1], [0], [0]>} : vector<8x8x128xbf16>, vector<8x8x128xbf16>, vector<8x8x8xf32> -> vector<8x8x8xf32>
    "tpu.trace_stop"() : () -> ()
    %cst_22 = arith.constant dense<0xFF800000> : vector<8x8xf32>
    %81 = vector.multi_reduction <maximumf>, %80, %cst_22 [0] : vector<8x8x8xf32> to vector<8x8xf32>
    %82 = vector.shape_cast %81 : vector<8x8xf32> to vector<1x8x8xf32>
    %83 = vector.broadcast %82 : vector<1x8x8xf32> to vector<8x8x8xf32>
    %84 = arith.subf %80, %83 : vector<8x8x8xf32>
    %85 = math.exp %84 : vector<8x8x8xf32>
    %cst_23 = arith.constant dense<0.000000e+00> : vector<8x8xf32>
    %86 = vector.multi_reduction <add>, %85, %cst_23 [0] : vector<8x8x8xf32> to vector<8x8xf32>
    %87 = vector.shape_cast %86 : vector<8x8xf32> to vector<1x8x8xf32>
    %88 = tpu.reciprocal %87 {approx = true} : vector<1x8x8xf32> -> vector<1x8x8xf32>
    %89 = vector.broadcast %88 : vector<1x8x8xf32> to vector<8x8x8xf32>
    %90 = arith.mulf %85, %89 : vector<8x8x8xf32>
    %91 = arith.truncf %90 : vector<8x8x8xf32> to vector<8x8x8xbf16>
    "tpu.trace_start"() <{level = 10 : i32, message = "bij,bjc->bic"}> : () -> ()
    %cst_24 = arith.constant dense<0.000000e+00> : vector<8x8x128xf32>
    %92 = tpu.matmul %91, %41, %cst_24 {dimension_numbers = #tpu.dot_dimension_numbers<[2], [1], [1], [2], [0, 0, 0, 1, 1, 2], [0], [0]>} : vector<8x8x8xbf16>, vector<8x8x128xbf16>, vector<8x8x128xf32> -> vector<8x8x128xf32>
    "tpu.trace_stop"() : () -> ()
    %93 = vector.broadcast %76 : vector<1x1x128xf32> to vector<8x8x128xf32>
    %94 = arith.mulf %92, %93 : vector<8x8x128xf32>
    %95 = arith.addf %69, %94 : vector<8x8x128xf32>
    %c32_i32_25 = arith.constant 32 : i32
    %96 = vector.broadcast %c32_i32_25 : i32 to vector<1x1x128xi32>
    %97 = arith.cmpi sge, %42, %96 : vector<1x1x128xi32>
    %c48_i32 = arith.constant 48 : i32
    %98 = vector.broadcast %c48_i32 : i32 to vector<1x1x128xi32>
    %99 = arith.cmpi slt, %42, %98 : vector<1x1x128xi32>
    %100 = arith.andi %97, %99 : vector<1x1x128xi1>
    %101 = arith.extui %100 : vector<1x1x128xi1> to vector<1x1x128xi32>
    %102 = arith.sitofp %101 : vector<1x1x128xi32> to vector<1x1x128xf32>
    %103 = vector.broadcast %102 : vector<1x1x128xf32> to vector<8x8x128xf32>
    %104 = arith.mulf %35, %103 : vector<8x8x128xf32>
    %105 = arith.truncf %104 : vector<8x8x128xf32> to vector<8x8x128xbf16>
    "tpu.trace_start"() <{level = 10 : i32, message = "bic,bjc->bij"}> : () -> ()
    %cst_26 = arith.constant dense<0.000000e+00> : vector<8x8x8xf32>
    %106 = tpu.matmul %105, %40, %cst_26 {dimension_numbers = #tpu.dot_dimension_numbers<[2], [2], [1], [1], [0, 0, 0, 1, 1, 1], [0], [0]>} : vector<8x8x128xbf16>, vector<8x8x128xbf16>, vector<8x8x8xf32> -> vector<8x8x8xf32>
    "tpu.trace_stop"() : () -> ()
    %cst_27 = arith.constant dense<0xFF800000> : vector<8x8xf32>
    %107 = vector.multi_reduction <maximumf>, %106, %cst_27 [0] : vector<8x8x8xf32> to vector<8x8xf32>
    %108 = vector.shape_cast %107 : vector<8x8xf32> to vector<1x8x8xf32>
    %109 = vector.broadcast %108 : vector<1x8x8xf32> to vector<8x8x8xf32>
    %110 = arith.subf %106, %109 : vector<8x8x8xf32>
    %111 = math.exp %110 : vector<8x8x8xf32>
    %cst_28 = arith.constant dense<0.000000e+00> : vector<8x8xf32>
    %112 = vector.multi_reduction <add>, %111, %cst_28 [0] : vector<8x8x8xf32> to vector<8x8xf32>
    %113 = vector.shape_cast %112 : vector<8x8xf32> to vector<1x8x8xf32>
    %114 = tpu.reciprocal %113 {approx = true} : vector<1x8x8xf32> -> vector<1x8x8xf32>
    %115 = vector.broadcast %114 : vector<1x8x8xf32> to vector<8x8x8xf32>
    %116 = arith.mulf %111, %115 : vector<8x8x8xf32>
    %117 = arith.truncf %116 : vector<8x8x8xf32> to vector<8x8x8xbf16>
    "tpu.trace_start"() <{level = 10 : i32, message = "bij,bjc->bic"}> : () -> ()
    %cst_29 = arith.constant dense<0.000000e+00> : vector<8x8x128xf32>
    %118 = tpu.matmul %117, %41, %cst_29 {dimension_numbers = #tpu.dot_dimension_numbers<[2], [1], [1], [2], [0, 0, 0, 1, 1, 2], [0], [0]>} : vector<8x8x8xbf16>, vector<8x8x128xbf16>, vector<8x8x128xf32> -> vector<8x8x128xf32>
    "tpu.trace_stop"() : () -> ()
    %119 = vector.broadcast %102 : vector<1x1x128xf32> to vector<8x8x128xf32>
    %120 = arith.mulf %118, %119 : vector<8x8x128xf32>
    %121 = arith.addf %95, %120 : vector<8x8x128xf32>
    %c48_i32_30 = arith.constant 48 : i32
    %122 = vector.broadcast %c48_i32_30 : i32 to vector<1x1x128xi32>
    %123 = arith.cmpi sge, %42, %122 : vector<1x1x128xi32>
    %c64_i32 = arith.constant 64 : i32
    %124 = vector.broadcast %c64_i32 : i32 to vector<1x1x128xi32>
    %125 = arith.cmpi slt, %42, %124 : vector<1x1x128xi32>
    %126 = arith.andi %123, %125 : vector<1x1x128xi1>
    %127 = arith.extui %126 : vector<1x1x128xi1> to vector<1x1x128xi32>
    %128 = arith.sitofp %127 : vector<1x1x128xi32> to vector<1x1x128xf32>
    %129 = vector.broadcast %128 : vector<1x1x128xf32> to vector<8x8x128xf32>
    %130 = arith.mulf %35, %129 : vector<8x8x128xf32>
    %131 = arith.truncf %130 : vector<8x8x128xf32> to vector<8x8x128xbf16>
    "tpu.trace_start"() <{level = 10 : i32, message = "bic,bjc->bij"}> : () -> ()
    %cst_31 = arith.constant dense<0.000000e+00> : vector<8x8x8xf32>
    %132 = tpu.matmul %131, %40, %cst_31 {dimension_numbers = #tpu.dot_dimension_numbers<[2], [2], [1], [1], [0, 0, 0, 1, 1, 1], [0], [0]>} : vector<8x8x128xbf16>, vector<8x8x128xbf16>, vector<8x8x8xf32> -> vector<8x8x8xf32>
    "tpu.trace_stop"() : () -> ()
    %cst_32 = arith.constant dense<0xFF800000> : vector<8x8xf32>
    %133 = vector.multi_reduction <maximumf>, %132, %cst_32 [0] : vector<8x8x8xf32> to vector<8x8xf32>
    %134 = vector.shape_cast %133 : vector<8x8xf32> to vector<1x8x8xf32>
    %135 = vector.broadcast %134 : vector<1x8x8xf32> to vector<8x8x8xf32>
    %136 = arith.subf %132, %135 : vector<8x8x8xf32>
    %137 = math.exp %136 : vector<8x8x8xf32>
    %cst_33 = arith.constant dense<0.000000e+00> : vector<8x8xf32>
    %138 = vector.multi_reduction <add>, %137, %cst_33 [0] : vector<8x8x8xf32> to vector<8x8xf32>
    %139 = vector.shape_cast %138 : vector<8x8xf32> to vector<1x8x8xf32>
    %140 = tpu.reciprocal %139 {approx = true} : vector<1x8x8xf32> -> vector<1x8x8xf32>
    %141 = vector.broadcast %140 : vector<1x8x8xf32> to vector<8x8x8xf32>
    %142 = arith.mulf %137, %141 : vector<8x8x8xf32>
    %143 = arith.truncf %142 : vector<8x8x8xf32> to vector<8x8x8xbf16>
    "tpu.trace_start"() <{level = 10 : i32, message = "bij,bjc->bic"}> : () -> ()
    %cst_34 = arith.constant dense<0.000000e+00> : vector<8x8x128xf32>
    %144 = tpu.matmul %143, %41, %cst_34 {dimension_numbers = #tpu.dot_dimension_numbers<[2], [1], [1], [2], [0, 0, 0, 1, 1, 2], [0], [0]>} : vector<8x8x8xbf16>, vector<8x8x128xbf16>, vector<8x8x128xf32> -> vector<8x8x128xf32>
    "tpu.trace_stop"() : () -> ()
    %145 = vector.broadcast %128 : vector<1x1x128xf32> to vector<8x8x128xf32>
    %146 = arith.mulf %144, %145 : vector<8x8x128xf32>
    %147 = arith.addf %121, %146 : vector<8x8x128xf32>
    %c64_i32_35 = arith.constant 64 : i32
    %148 = vector.broadcast %c64_i32_35 : i32 to vector<1x1x128xi32>
    %149 = arith.cmpi sge, %42, %148 : vector<1x1x128xi32>
    %c80_i32 = arith.constant 80 : i32
    %150 = vector.broadcast %c80_i32 : i32 to vector<1x1x128xi32>
    %151 = arith.cmpi slt, %42, %150 : vector<1x1x128xi32>
    %152 = arith.andi %149, %151 : vector<1x1x128xi1>
    %153 = arith.extui %152 : vector<1x1x128xi1> to vector<1x1x128xi32>
    %154 = arith.sitofp %153 : vector<1x1x128xi32> to vector<1x1x128xf32>
    %155 = vector.broadcast %154 : vector<1x1x128xf32> to vector<8x8x128xf32>
    %156 = arith.mulf %35, %155 : vector<8x8x128xf32>
    %157 = arith.truncf %156 : vector<8x8x128xf32> to vector<8x8x128xbf16>
    "tpu.trace_start"() <{level = 10 : i32, message = "bic,bjc->bij"}> : () -> ()
    %cst_36 = arith.constant dense<0.000000e+00> : vector<8x8x8xf32>
    %158 = tpu.matmul %157, %40, %cst_36 {dimension_numbers = #tpu.dot_dimension_numbers<[2], [2], [1], [1], [0, 0, 0, 1, 1, 1], [0], [0]>} : vector<8x8x128xbf16>, vector<8x8x128xbf16>, vector<8x8x8xf32> -> vector<8x8x8xf32>
    "tpu.trace_stop"() : () -> ()
    %cst_37 = arith.constant dense<0xFF800000> : vector<8x8xf32>
    %159 = vector.multi_reduction <maximumf>, %158, %cst_37 [0] : vector<8x8x8xf32> to vector<8x8xf32>
    %160 = vector.shape_cast %159 : vector<8x8xf32> to vector<1x8x8xf32>
    %161 = vector.broadcast %160 : vector<1x8x8xf32> to vector<8x8x8xf32>
    %162 = arith.subf %158, %161 : vector<8x8x8xf32>
    %163 = math.exp %162 : vector<8x8x8xf32>
    %cst_38 = arith.constant dense<0.000000e+00> : vector<8x8xf32>
    %164 = vector.multi_reduction <add>, %163, %cst_38 [0] : vector<8x8x8xf32> to vector<8x8xf32>
    %165 = vector.shape_cast %164 : vector<8x8xf32> to vector<1x8x8xf32>
    %166 = tpu.reciprocal %165 {approx = true} : vector<1x8x8xf32> -> vector<1x8x8xf32>
    %167 = vector.broadcast %166 : vector<1x8x8xf32> to vector<8x8x8xf32>
    %168 = arith.mulf %163, %167 : vector<8x8x8xf32>
    %169 = arith.truncf %168 : vector<8x8x8xf32> to vector<8x8x8xbf16>
    "tpu.trace_start"() <{level = 10 : i32, message = "bij,bjc->bic"}> : () -> ()
    %cst_39 = arith.constant dense<0.000000e+00> : vector<8x8x128xf32>
    %170 = tpu.matmul %169, %41, %cst_39 {dimension_numbers = #tpu.dot_dimension_numbers<[2], [1], [1], [2], [0, 0, 0, 1, 1, 2], [0], [0]>} : vector<8x8x8xbf16>, vector<8x8x128xbf16>, vector<8x8x128xf32> -> vector<8x8x128xf32>
    "tpu.trace_stop"() : () -> ()
    %171 = vector.broadcast %154 : vector<1x1x128xf32> to vector<8x8x128xf32>
    %172 = arith.mulf %170, %171 : vector<8x8x128xf32>
    %173 = arith.addf %147, %172 : vector<8x8x128xf32>
    %c80_i32_40 = arith.constant 80 : i32
    %174 = vector.broadcast %c80_i32_40 : i32 to vector<1x1x128xi32>
    %175 = arith.cmpi sge, %42, %174 : vector<1x1x128xi32>
    %c96_i32 = arith.constant 96 : i32
    %176 = vector.broadcast %c96_i32 : i32 to vector<1x1x128xi32>
    %177 = arith.cmpi slt, %42, %176 : vector<1x1x128xi32>
    %178 = arith.andi %175, %177 : vector<1x1x128xi1>
    %179 = arith.extui %178 : vector<1x1x128xi1> to vector<1x1x128xi32>
    %180 = arith.sitofp %179 : vector<1x1x128xi32> to vector<1x1x128xf32>
    %181 = vector.broadcast %180 : vector<1x1x128xf32> to vector<8x8x128xf32>
    %182 = arith.mulf %35, %181 : vector<8x8x128xf32>
    %183 = arith.truncf %182 : vector<8x8x128xf32> to vector<8x8x128xbf16>
    "tpu.trace_start"() <{level = 10 : i32, message = "bic,bjc->bij"}> : () -> ()
    %cst_41 = arith.constant dense<0.000000e+00> : vector<8x8x8xf32>
    %184 = tpu.matmul %183, %40, %cst_41 {dimension_numbers = #tpu.dot_dimension_numbers<[2], [2], [1], [1], [0, 0, 0, 1, 1, 1], [0], [0]>} : vector<8x8x128xbf16>, vector<8x8x128xbf16>, vector<8x8x8xf32> -> vector<8x8x8xf32>
    "tpu.trace_stop"() : () -> ()
    %cst_42 = arith.constant dense<0xFF800000> : vector<8x8xf32>
    %185 = vector.multi_reduction <maximumf>, %184, %cst_42 [0] : vector<8x8x8xf32> to vector<8x8xf32>
    %186 = vector.shape_cast %185 : vector<8x8xf32> to vector<1x8x8xf32>
    %187 = vector.broadcast %186 : vector<1x8x8xf32> to vector<8x8x8xf32>
    %188 = arith.subf %184, %187 : vector<8x8x8xf32>
    %189 = math.exp %188 : vector<8x8x8xf32>
    %cst_43 = arith.constant dense<0.000000e+00> : vector<8x8xf32>
    %190 = vector.multi_reduction <add>, %189, %cst_43 [0] : vector<8x8x8xf32> to vector<8x8xf32>
    %191 = vector.shape_cast %190 : vector<8x8xf32> to vector<1x8x8xf32>
    %192 = tpu.reciprocal %191 {approx = true} : vector<1x8x8xf32> -> vector<1x8x8xf32>
    %193 = vector.broadcast %192 : vector<1x8x8xf32> to vector<8x8x8xf32>
    %194 = arith.mulf %189, %193 : vector<8x8x8xf32>
    %195 = arith.truncf %194 : vector<8x8x8xf32> to vector<8x8x8xbf16>
    "tpu.trace_start"() <{level = 10 : i32, message = "bij,bjc->bic"}> : () -> ()
    %cst_44 = arith.constant dense<0.000000e+00> : vector<8x8x128xf32>
    %196 = tpu.matmul %195, %41, %cst_44 {dimension_numbers = #tpu.dot_dimension_numbers<[2], [1], [1], [2], [0, 0, 0, 1, 1, 2], [0], [0]>} : vector<8x8x8xbf16>, vector<8x8x128xbf16>, vector<8x8x128xf32> -> vector<8x8x128xf32>
    "tpu.trace_stop"() : () -> ()
    %197 = vector.broadcast %180 : vector<1x1x128xf32> to vector<8x8x128xf32>
    %198 = arith.mulf %196, %197 : vector<8x8x128xf32>
    %199 = arith.addf %173, %198 : vector<8x8x128xf32>
    %c96_i32_45 = arith.constant 96 : i32
    %200 = vector.broadcast %c96_i32_45 : i32 to vector<1x1x128xi32>
    %201 = arith.cmpi sge, %42, %200 : vector<1x1x128xi32>
    %c112_i32 = arith.constant 112 : i32
    %202 = vector.broadcast %c112_i32 : i32 to vector<1x1x128xi32>
    %203 = arith.cmpi slt, %42, %202 : vector<1x1x128xi32>
    %204 = arith.andi %201, %203 : vector<1x1x128xi1>
    %205 = arith.extui %204 : vector<1x1x128xi1> to vector<1x1x128xi32>
    %206 = arith.sitofp %205 : vector<1x1x128xi32> to vector<1x1x128xf32>
    %207 = vector.broadcast %206 : vector<1x1x128xf32> to vector<8x8x128xf32>
    %208 = arith.mulf %35, %207 : vector<8x8x128xf32>
    %209 = arith.truncf %208 : vector<8x8x128xf32> to vector<8x8x128xbf16>
    "tpu.trace_start"() <{level = 10 : i32, message = "bic,bjc->bij"}> : () -> ()
    %cst_46 = arith.constant dense<0.000000e+00> : vector<8x8x8xf32>
    %210 = tpu.matmul %209, %40, %cst_46 {dimension_numbers = #tpu.dot_dimension_numbers<[2], [2], [1], [1], [0, 0, 0, 1, 1, 1], [0], [0]>} : vector<8x8x128xbf16>, vector<8x8x128xbf16>, vector<8x8x8xf32> -> vector<8x8x8xf32>
    "tpu.trace_stop"() : () -> ()
    %cst_47 = arith.constant dense<0xFF800000> : vector<8x8xf32>
    %211 = vector.multi_reduction <maximumf>, %210, %cst_47 [0] : vector<8x8x8xf32> to vector<8x8xf32>
    %212 = vector.shape_cast %211 : vector<8x8xf32> to vector<1x8x8xf32>
    %213 = vector.broadcast %212 : vector<1x8x8xf32> to vector<8x8x8xf32>
    %214 = arith.subf %210, %213 : vector<8x8x8xf32>
    %215 = math.exp %214 : vector<8x8x8xf32>
    %cst_48 = arith.constant dense<0.000000e+00> : vector<8x8xf32>
    %216 = vector.multi_reduction <add>, %215, %cst_48 [0] : vector<8x8x8xf32> to vector<8x8xf32>
    %217 = vector.shape_cast %216 : vector<8x8xf32> to vector<1x8x8xf32>
    %218 = tpu.reciprocal %217 {approx = true} : vector<1x8x8xf32> -> vector<1x8x8xf32>
    %219 = vector.broadcast %218 : vector<1x8x8xf32> to vector<8x8x8xf32>
    %220 = arith.mulf %215, %219 : vector<8x8x8xf32>
    %221 = arith.truncf %220 : vector<8x8x8xf32> to vector<8x8x8xbf16>
    "tpu.trace_start"() <{level = 10 : i32, message = "bij,bjc->bic"}> : () -> ()
    %cst_49 = arith.constant dense<0.000000e+00> : vector<8x8x128xf32>
    %222 = tpu.matmul %221, %41, %cst_49 {dimension_numbers = #tpu.dot_dimension_numbers<[2], [1], [1], [2], [0, 0, 0, 1, 1, 2], [0], [0]>} : vector<8x8x8xbf16>, vector<8x8x128xbf16>, vector<8x8x128xf32> -> vector<8x8x128xf32>
    "tpu.trace_stop"() : () -> ()
    %223 = vector.broadcast %206 : vector<1x1x128xf32> to vector<8x8x128xf32>
    %224 = arith.mulf %222, %223 : vector<8x8x128xf32>
    %225 = arith.addf %199, %224 : vector<8x8x128xf32>
    %c112_i32_50 = arith.constant 112 : i32
    %226 = vector.broadcast %c112_i32_50 : i32 to vector<1x1x128xi32>
    %227 = arith.cmpi sge, %42, %226 : vector<1x1x128xi32>
    %c128_i32 = arith.constant 128 : i32
    %228 = vector.broadcast %c128_i32 : i32 to vector<1x1x128xi32>
    %229 = arith.cmpi slt, %42, %228 : vector<1x1x128xi32>
    %230 = arith.andi %227, %229 : vector<1x1x128xi1>
    %231 = arith.extui %230 : vector<1x1x128xi1> to vector<1x1x128xi32>
    %232 = arith.sitofp %231 : vector<1x1x128xi32> to vector<1x1x128xf32>
    %233 = vector.broadcast %232 : vector<1x1x128xf32> to vector<8x8x128xf32>
    %234 = arith.mulf %35, %233 : vector<8x8x128xf32>
    %235 = arith.truncf %234 : vector<8x8x128xf32> to vector<8x8x128xbf16>
    "tpu.trace_start"() <{level = 10 : i32, message = "bic,bjc->bij"}> : () -> ()
    %cst_51 = arith.constant dense<0.000000e+00> : vector<8x8x8xf32>
    %236 = tpu.matmul %235, %40, %cst_51 {dimension_numbers = #tpu.dot_dimension_numbers<[2], [2], [1], [1], [0, 0, 0, 1, 1, 1], [0], [0]>} : vector<8x8x128xbf16>, vector<8x8x128xbf16>, vector<8x8x8xf32> -> vector<8x8x8xf32>
    "tpu.trace_stop"() : () -> ()
    %cst_52 = arith.constant dense<0xFF800000> : vector<8x8xf32>
    %237 = vector.multi_reduction <maximumf>, %236, %cst_52 [0] : vector<8x8x8xf32> to vector<8x8xf32>
    %238 = vector.shape_cast %237 : vector<8x8xf32> to vector<1x8x8xf32>
    %239 = vector.broadcast %238 : vector<1x8x8xf32> to vector<8x8x8xf32>
    %240 = arith.subf %236, %239 : vector<8x8x8xf32>
    %241 = math.exp %240 : vector<8x8x8xf32>
    %cst_53 = arith.constant dense<0.000000e+00> : vector<8x8xf32>
    %242 = vector.multi_reduction <add>, %241, %cst_53 [0] : vector<8x8x8xf32> to vector<8x8xf32>
    %243 = vector.shape_cast %242 : vector<8x8xf32> to vector<1x8x8xf32>
    %244 = tpu.reciprocal %243 {approx = true} : vector<1x8x8xf32> -> vector<1x8x8xf32>
    %245 = vector.broadcast %244 : vector<1x8x8xf32> to vector<8x8x8xf32>
    %246 = arith.mulf %241, %245 : vector<8x8x8xf32>
    %247 = arith.truncf %246 : vector<8x8x8xf32> to vector<8x8x8xbf16>
    "tpu.trace_start"() <{level = 10 : i32, message = "bij,bjc->bic"}> : () -> ()
    %cst_54 = arith.constant dense<0.000000e+00> : vector<8x8x128xf32>
    %248 = tpu.matmul %247, %41, %cst_54 {dimension_numbers = #tpu.dot_dimension_numbers<[2], [1], [1], [2], [0, 0, 0, 1, 1, 2], [0], [0]>} : vector<8x8x8xbf16>, vector<8x8x128xbf16>, vector<8x8x128xf32> -> vector<8x8x128xf32>
    "tpu.trace_stop"() : () -> ()
    %249 = vector.broadcast %232 : vector<1x1x128xf32> to vector<8x8x128xf32>
    %250 = arith.mulf %248, %249 : vector<8x8x128xf32>
    %251 = arith.addf %225, %250 : vector<8x8x128xf32>
    %252 = arith.addf %0, %251 : vector<8x8x128xf32>
    %253 = vector.shape_cast %252 : vector<8x8x128xf32> to vector<64x128xf32>
    %254 = arith.truncf %253 : vector<64x128xf32> to vector<64x128xbf16>
    %c0_55 = arith.constant 0 : index
    %c0_56 = arith.constant 0 : index
    %255 = vector.load %arg4[%c0_55, %c0_56] : memref<128x128xbf16, #tpu.memory_space<vmem>>, vector<128x128xbf16>
    %cst_57 = arith.constant dense<0.000000e+00> : vector<64x128xf32>
    %256 = tpu.matmul %254, %255, %cst_57 {dimension_numbers = #tpu.dot_dimension_numbers<[1], [0], [0], [1], [0, 0, 1, 1], [], []>} : vector<64x128xbf16>, vector<128x128xbf16>, vector<64x128xf32> -> vector<64x128xf32>
    %c0_58 = arith.constant 0 : index
    %c0_59 = arith.constant 0 : index
    %257 = vector.load %arg6[%c0_58, %c0_59] : memref<2x128xf32, #tpu.memory_space<vmem>>, vector<1x128xf32>
    %258 = vector.broadcast %257 : vector<1x128xf32> to vector<64x128xf32>
    %259 = arith.addf %256, %258 : vector<64x128xf32>
    %cst_60 = arith.constant 5.000000e-01 : f32
    %260 = vector.broadcast %cst_60 : f32 to vector<64x128xf32>
    %261 = arith.mulf %260, %259 : vector<64x128xf32>
    %cst_61 = arith.constant 0.707106769 : f32
    %262 = vector.broadcast %cst_61 : f32 to vector<64x128xf32>
    %263 = arith.mulf %259, %262 : vector<64x128xf32>
    %cst_62 = arith.constant 0.000000e+00 : f32
    %264 = vector.broadcast %cst_62 : f32 to vector<64x128xf32>
    %265 = arith.cmpf oge, %263, %264 : vector<64x128xf32>
    %cst_63 = arith.constant 1.000000e+00 : f32
    %cst_64 = arith.constant -1.000000e+00 : f32
    %266 = vector.broadcast %cst_63 : f32 to vector<64x128xf32>
    %267 = vector.broadcast %cst_64 : f32 to vector<64x128xf32>
    %268 = arith.select %265, %266, %267 : vector<64x128xi1>, vector<64x128xf32>
    %269 = math.absf %263 : vector<64x128xf32>
    %cst_65 = arith.constant 0.327591091 : f32
    %270 = vector.broadcast %cst_65 : f32 to vector<64x128xf32>
    %271 = arith.mulf %270, %269 : vector<64x128xf32>
    %cst_66 = arith.constant 1.000000e+00 : f32
    %272 = vector.broadcast %cst_66 : f32 to vector<64x128xf32>
    %273 = arith.addf %272, %271 : vector<64x128xf32>
    %cst_67 = arith.constant 1.000000e+00 : f32
    %274 = vector.broadcast %cst_67 : f32 to vector<64x128xf32>
    %275 = arith.divf %274, %273 : vector<64x128xf32>
    %cst_68 = arith.constant 1.06140542 : f32
    %276 = vector.broadcast %cst_68 : f32 to vector<64x128xf32>
    %277 = arith.mulf %276, %275 : vector<64x128xf32>
    %cst_69 = arith.constant -1.45315206 : f32
    %278 = vector.broadcast %cst_69 : f32 to vector<64x128xf32>
    %279 = arith.addf %277, %278 : vector<64x128xf32>
    %280 = arith.mulf %279, %275 : vector<64x128xf32>
    %cst_70 = arith.constant 1.42141378 : f32
    %281 = vector.broadcast %cst_70 : f32 to vector<64x128xf32>
    %282 = arith.addf %280, %281 : vector<64x128xf32>
    %283 = arith.mulf %282, %275 : vector<64x128xf32>
    %cst_71 = arith.constant -0.284496725 : f32
    %284 = vector.broadcast %cst_71 : f32 to vector<64x128xf32>
    %285 = arith.addf %283, %284 : vector<64x128xf32>
    %286 = arith.mulf %285, %275 : vector<64x128xf32>
    %cst_72 = arith.constant 0.254829586 : f32
    %287 = vector.broadcast %cst_72 : f32 to vector<64x128xf32>
    %288 = arith.addf %286, %287 : vector<64x128xf32>
    %289 = arith.mulf %288, %275 : vector<64x128xf32>
    %cst_73 = arith.constant 0.000000e+00 : f32
    %290 = vector.broadcast %cst_73 : f32 to vector<64x128xf32>
    %291 = arith.subf %290, %269 : vector<64x128xf32>
    %292 = arith.mulf %291, %269 : vector<64x128xf32>
    %293 = math.exp %292 : vector<64x128xf32>
    %294 = arith.mulf %289, %293 : vector<64x128xf32>
    %cst_74 = arith.constant 1.000000e+00 : f32
    %295 = vector.broadcast %cst_74 : f32 to vector<64x128xf32>
    %296 = arith.subf %295, %294 : vector<64x128xf32>
    %297 = arith.mulf %268, %296 : vector<64x128xf32>
    %cst_75 = arith.constant 1.000000e+00 : f32
    %298 = vector.broadcast %cst_75 : f32 to vector<64x128xf32>
    %299 = arith.addf %298, %297 : vector<64x128xf32>
    %300 = arith.mulf %261, %299 : vector<64x128xf32>
    %301 = arith.truncf %300 : vector<64x128xf32> to vector<64x128xbf16>
    %c0_76 = arith.constant 0 : index
    %c0_77 = arith.constant 0 : index
    %302 = vector.load %arg5[%c0_76, %c0_77] : memref<128x128xbf16, #tpu.memory_space<vmem>>, vector<128x128xbf16>
    %cst_78 = arith.constant dense<0.000000e+00> : vector<64x128xf32>
    %303 = tpu.matmul %301, %302, %cst_78 {dimension_numbers = #tpu.dot_dimension_numbers<[1], [0], [0], [1], [0, 0, 1, 1], [], []>} : vector<64x128xbf16>, vector<128x128xbf16>, vector<64x128xf32> -> vector<64x128xf32>
    %c1_79 = arith.constant 1 : index
    %c0_80 = arith.constant 0 : index
    %304 = vector.load %arg6[%c1_79, %c0_80] : memref<2x128xf32, #tpu.memory_space<vmem>>, vector<1x128xf32>
    %305 = vector.broadcast %304 : vector<1x128xf32> to vector<64x128xf32>
    %306 = arith.addf %303, %305 : vector<64x128xf32>
    %307 = vector.shape_cast %306 : vector<64x128xf32> to vector<8x8x128xf32>
    %308 = arith.addf %252, %307 : vector<8x8x128xf32>
    %c0_81 = arith.constant 0 : index
    %c0_82 = arith.constant 0 : index
    %c0_83 = arith.constant 0 : index
    %309 = vector.load %arg7[%c0_81, %c0_82, %c0_83] : memref<8x8x128xf32, #tpu.memory_space<vmem>>, vector<8x8x128xf32>
    tpu.vector_store %arg7[%c0_81, %c0_82, %c0_83], %308 {strides = array<i32>} : memref<8x8x128xf32, #tpu.memory_space<vmem>>, vector<8x8x128xf32>,
    return
  }
}

</mosaic_0001>

<bundles_post_ra>
// kernel: tpu_custom_call.1
= control target key start
LH: loop header
LB: loop body
LE: loop exit
PB: predicated region body
PF: predicated region fallthrough
CT: control target
= control target key end

     0   :  { %12 = vsyncpa [#allocation3], 0  ;;  %s10462_s0 = inlined_call_operand.hbm [shape: f32[8,8,128], index: 0, kind: input, shape index: {}]   ;;  %s10463_s1 = inlined_call_operand.vmem [shape: f32[2,128], index: 1, kind: input, shape index: {}]   ;;  %s10464_s2 = inlined_call_operand.hbm [shape: bf16[128,384], index: 2, kind: input, shape index: {}]   ;;  %s10465_s3 = inlined_call_operand.vmem [shape: f32[1,384], index: 3, kind: input, shape index: {}]   ;;  %s10466_s4 = inlined_call_operand.hbm [shape: bf16[128,128], index: 4, kind: input, shape index: {}]   ;;  %s10467_s5 = inlined_call_operand.hbm [shape: bf16[128,128], index: 5, kind: input, shape index: {}]   ;;  %s10468_s6 = inlined_call_operand.vmem [shape: f32[2,128], index: 6, kind: input, shape index: {}]   ;;  %s10469_s7 = inlined_call_operand.hbm [shape: f32[8,8,128], index: 7, kind: output, shape index: {}]  }
   0x1   :  { %13 = vsyncpa [#allocation6], 0 }
   0x2   :  { %14 = vsyncpa [#allocation9], 0 }
   0x3   :  { %15 = vsyncpa [#allocation4], 0  ;;  %s8917_s24 = smov [#allocation5]   ;;  %s8799_s28 = scalar_lea.hbm %s10464_s2, 3072 }
   0x4   :  { %s35_s25 = sshll.u32 %s8917_s24, 4  ;;  %p8800_p0 = scmp.ne.s32.totalorder %s10464_s2, %s8799_s28  ;;  %s36_s25 = int_to_ptr.vmem [resolvable:$true] %s35_s25 }
   0x5   :  { %p8803_p1 = scmp.lt.u32.totalorder %s8799_s28, %s10464_s2 }
   0x7   :  { %p8805_p2 = pnand %p8803_p1, %p8800_p0 }
   0x9   :  { %8808 = shalt.err (!%p8805_p2)
}
   0xa   :  { %s8809_s10 = scalar_lea.vmem %s36_s25, 3072  ;;  %p8814_p4 = scmp.lt.s32.totalorder %s36_s25, %s36_s25 }
   0xb   :  { %p8810_p3 = scmp.ne.s32.totalorder %s36_s25, %s8809_s10  ;;  %p8815_p5 = scmp.lt.s32.totalorder %s8809_s10, %s8809_s10 }
   0xd   :  { %p8816_p6 = por %p8815_p5, %p8814_p4 }
   0xf   :  { %p8817_p7 = pnand %p8816_p6, %p8810_p3 }
  0x11   :  { %8820 = shalt.err (!%p8817_p7)
}
  0x12   :  { %s8918_s11 = smov 192   ;;  %s8919_s12 = smov 12  }
  0x13   :  { %41 = dma.hbm_to_vmem [thread:$0]  %s10464_s2, 3072, %s36_s25, [#allocation6], %s8918_s11, %s8918_s11, %s8919_s12  }
  0x14   :  { %s8920_s15 = smov [#allocation2]   ;;  %s8821_s19 = scalar_lea.hbm %s10462_s0, 1024 }
  0x15   :  { %s21_s16 = sshll.u32 %s8920_s15, 4  ;;  %p8822_p8 = scmp.ne.s32.totalorder %s10462_s0, %s8821_s19  ;;  %s22_s16 = int_to_ptr.vmem [resolvable:$true] %s21_s16 }
  0x16   :  { %p8825_p9 = scmp.lt.u32.totalorder %s8821_s19, %s10462_s0 }
  0x18   :  { %p8827_p10 = pnand %p8825_p9, %p8822_p8 }
  0x1a   :  { %8830 = shalt.err (!%p8827_p10)
}
  0x1b   :  { %s8831_s24 = scalar_lea.vmem %s22_s16, 1024  ;;  %p8836_p12 = scmp.lt.s32.totalorder %s22_s16, %s22_s16 }
  0x1c   :  { %p8832_p11 = scmp.ne.s32.totalorder %s22_s16, %s8831_s24  ;;  %p8837_p13 = scmp.lt.s32.totalorder %s8831_s24, %s8831_s24 }
  0x1e   :  { %p8838_p0 = por %p8837_p13, %p8836_p12 }
  0x20   :  { %p8839_p1 = pnand %p8838_p0, %p8832_p11 }
  0x22   :  { %8842 = shalt.err (!%p8839_p1)
}
  0x23   :  { %s8921_s2 = smov 128   ;;  %s8922_s25 = smov 8  }
  0x24   :  { %27 = dma.hbm_to_vmem [thread:$0]  %s10462_s0, 1024, %s22_s16, [#allocation3], %s8921_s2, %s8921_s2, %s8922_s25  }
  0x25   :  { %s8923_s28 = smov [#allocation7]   ;;  %s8843_s9 = scalar_lea.hbm %s10466_s4, 1024 }
  0x26   :  { %s49_s29 = sshll.u32 %s8923_s28, 4  ;;  %p8844_p2 = scmp.ne.s32.totalorder %s10466_s4, %s8843_s9  ;;  %s50_s29 = int_to_ptr.vmem [resolvable:$true] %s49_s29 }
  0x27   :  { %p8847_p3 = scmp.lt.u32.totalorder %s8843_s9, %s10466_s4 }
  0x29   :  { %p8849_p4 = pnand %p8847_p3, %p8844_p2 }
  0x2b   :  { %8852 = shalt.err (!%p8849_p4)
}
  0x2c   :  { %s8853_s14 = scalar_lea.vmem %s50_s29, 1024  ;;  %p8858_p6 = scmp.lt.s32.totalorder %s50_s29, %s50_s29 }
  0x2d   :  { %p8854_p5 = scmp.ne.s32.totalorder %s50_s29, %s8853_s14  ;;  %p8859_p7 = scmp.lt.s32.totalorder %s8853_s14, %s8853_s14 }
  0x2f   :  { %p8860_p8 = por %p8859_p7, %p8858_p6 }
  0x31   :  { %p8861_p9 = pnand %p8860_p8, %p8854_p5 }
  0x33   :  { %8864 = shalt.err (!%p8861_p9)
}
  0x34   :  { %s8924_s0 = smov 64   ;;  %s8925_s15 = smov 4  }
  0x35   :  { %55 = dma.hbm_to_vmem [thread:$0]  %s10466_s4, 1024, %s50_s29, [#allocation6], %s8924_s0, %s8924_s0, %s8925_s15  }
  0x36   :  { %s8926_s18 = smov [#allocation8]   ;;  %s8865_s22 = scalar_lea.hbm %s10467_s5, 1024 }
  0x37   :  { %s61_s19 = sshll.u32 %s8926_s18, 4  ;;  %p8866_p10 = scmp.ne.s32.totalorder %s10467_s5, %s8865_s22  ;;  %s62_s19 = int_to_ptr.vmem [resolvable:$true] %s61_s19 }
  0x38   :  { %p8869_p11 = scmp.lt.u32.totalorder %s8865_s22, %s10467_s5 }
  0x3a   :  { %p8871_p12 = pnand %p8869_p11, %p8866_p10 }
  0x3c   :  { %8874 = shalt.err (!%p8871_p12)
}
  0x3d   :  { %s8875_s28 = scalar_lea.vmem %s62_s19, 1024  ;;  %p8880_p0 = scmp.lt.s32.totalorder %s62_s19, %s62_s19 }
  0x3e   :  { %p8876_p13 = scmp.ne.s32.totalorder %s62_s19, %s8875_s28  ;;  %p8881_p1 = scmp.lt.s32.totalorder %s8875_s28, %s8875_s28 }
  0x40   :  { %p8882_p2 = por %p8881_p1, %p8880_p0 }
  0x42   :  { %p8883_p3 = pnand %p8882_p2, %p8876_p13 }
  0x44   :  { %8886 = shalt.err (!%p8883_p3)
}
  0x45   :  { %67 = dma.hbm_to_vmem [thread:$0]  %s10467_s5, 1024, %s62_s19, [#allocation9], %s8924_s0, %s8924_s0, %s8925_s15  }
  0x46   :  { %8909 = dma.done.wait [#allocation3], 1024  }
  0x47   :  { %8910 = vsyncadd [#allocation3], 4294966272 }
  0x48   :  { %8911 = dma.done.wait [#allocation6], 4096  }
  0x49   :  { %8912 = vsyncadd [#allocation6], 4294963200 }
  0x4a   :  { %8913 = dma.done.wait [#allocation9], 1024  }
  0x4b   :  { %8914 = vsyncadd [#allocation9], 4294966272  ;;  %v83_v0 = vld [vmem:[#allocation2] sm:$0xff]  ;;  %v85_v1 = vld [vmem:[#allocation2 + $0x10] sm:$0xff]  ;;  %v8927_v63 = vmov 0   ;;  %vm8929_vm0 = vmmov 0  }
  0x4c   :  { %93 = vadd.xlane.f32.xlu0 %v83_v0  ;;  %97 = vadd.xlane.f32.xlu1 %v85_v1  ;;  %v84_v2 = vld [vmem:[#allocation2 + $0x8] sm:$0xff]  ;;  %v86_v3 = vld [vmem:[#allocation2 + $0x18] sm:$0xff]  ;;  %v87_v4 = vld [vmem:[#allocation2 + $0x20] sm:$0xff]  ;;  %vm967_vm2 = vcmask 1043456   ;;  %vm892_vm3 = vcmask 64512  }
  0x4d   :  { %v88_v5 = vld [vmem:[#allocation2 + $0x28] sm:$0xff]  ;;  %v89_v6 = vld [vmem:[#allocation2 + $0x30] sm:$0xff]  ;;  %v90_v7 = vld [vmem:[#allocation2 + $0x38] sm:$0xff]  ;;  %419 = vmatprep.mubr.bf16.mxu0 %v8927_v63 }
  0x4e   :  { %v8551_v8 = vld [vmem:[#allocation5 + $0x4] ss:$12 sps:$4 sm:$0xff]   ;;  %v8553_v9 = vld [vmem:[#allocation5] ss:$12 sps:$4 sm:$0xff]   ;;  %v8554_v10 = vld [vmem:[#allocation5 + $0x1c] ss:$12 sps:$4 sm:$0xff]  }
  0x4f   :  { %v8556_v11 = vld [vmem:[#allocation5 + $0x8] ss:$12 sps:$4 sm:$0xff]   ;;  %387 = vmatprep.subr.bf16.mxu0 %v8551_v8  ;;  %v8557_v44 = vld [vmem:[#allocation5 + $0x18] ss:$12 sps:$4 sm:$0xff]   ;;  %v8560_v46 = vld [vmem:[#allocation5 + $0x20] ss:$12 sps:$4 sm:$0xff]  }
  0x50   :  { %95 = vadd.xlane.f32.xlu0 %v84_v2  ;;  %99 = vadd.xlane.f32.xlu1 %v86_v3  ;;  %v8558_v45 = vld [vmem:[#allocation5 + $0x34] ss:$12 sps:$4 sm:$0xff]   ;;  %v8561_v47 = vld [vmem:[#allocation5 + $0x30] ss:$12 sps:$4 sm:$0xff]   ;;  %v8562_v48 = vld [vmem:[#allocation5 + $0x4c] ss:$12 sps:$4 sm:$0xff]  }
  0x51   :  { %388 = vmatpush1.bf16.msra.mxu0 %v8553_v9  ;;  %7696 = vmatprep.subr.bf16.mxu1 %v8556_v11  ;;  %v8564_v49 = vld [vmem:[#allocation5 + $0x38] ss:$12 sps:$4 sm:$0xff]   ;;  %v8565_v50 = vld [vmem:[#allocation5 + $0x48] ss:$12 sps:$4 sm:$0xff]   ;;  %v8568_v52 = vld [vmem:[#allocation5 + $0x50] ss:$12 sps:$4 sm:$0xff]  }
  0x52   :  { %389 = vmatprep.subr.bf16.mxu0 %v8554_v10  ;;  %7697 = vmatpush3.bf16.msra.mxu1 %v8556_v11  ;;  %v8566_v51 = vld [vmem:[#allocation5 + $0x64] ss:$12 sps:$4 sm:$0xff]   ;;  %v8569_v53 = vld [vmem:[#allocation5 + $0x60] ss:$12 sps:$4 sm:$0xff]   ;;  %v8570_v54 = vld [vmem:[#allocation5 + $0x7c] ss:$12 sps:$4 sm:$0xff]  }
  0x53   :  { %7698 = vmatprep.subr.bf16.mxu1 %v8560_v46  ;;  %v8572_v55 = vld [vmem:[#allocation5 + $0x68] ss:$12 sps:$4 sm:$0xff]   ;;  %v8573_v56 = vld [vmem:[#allocation5 + $0x78] ss:$12 sps:$4 sm:$0xff]   ;;  %v8576_v58 = vld [vmem:[#allocation5 + $0x80] ss:$12 sps:$4 sm:$0xff]  }
  0x54   :  { %101 = vadd.xlane.f32.xlu0 %v87_v4  ;;  %103 = vadd.xlane.f32.xlu1 %v88_v5  ;;  %v8574_v57 = vld [vmem:[#allocation5 + $0x94] ss:$12 sps:$4 sm:$0xff]   ;;  %v8577_v59 = vld [vmem:[#allocation5 + $0x90] ss:$12 sps:$4 sm:$0xff]   ;;  %v8578_v60 = vld [vmem:[#allocation5 + $0xac] ss:$12 sps:$4 sm:$0xff]  }
  0x55   :  { %390 = vmatpush1.bf16.msra.mxu0 %v8557_v44  ;;  %v8580_v61 = vld [vmem:[#allocation5 + $0x98] ss:$12 sps:$4 sm:$0xff]   ;;  %v8581_v62 = vld [vmem:[#allocation5 + $0xa8] ss:$12 sps:$4 sm:$0xff]  }
  0x56   :  { %391 = vmatprep.subr.bf16.mxu0 %v8558_v45  ;;  %7699 = vmatpush3.bf16.msra.mxu1 %v8560_v46 }
  0x57   :  { %7700 = vmatprep.subr.bf16.mxu1 %v8564_v49 }
  0x58   :  { %105 = vadd.xlane.f32.xlu0 %v89_v6  ;;  %107 = vadd.xlane.f32.xlu1 %v90_v7 }
  0x59   :  { %392 = vmatpush1.bf16.msra.mxu0 %v8561_v47 }
  0x5a   :  { %393 = vmatprep.subr.bf16.mxu0 %v8562_v48  ;;  %7701 = vmatpush3.bf16.msra.mxu1 %v8564_v49 }
  0x5b   :  { %7702 = vmatprep.subr.bf16.mxu1 %v8568_v52 }
  0x5d   :  { %394 = vmatpush1.bf16.msra.mxu0 %v8565_v50 }
  0x5e   :  { %395 = vmatprep.subr.bf16.mxu0 %v8566_v51  ;;  %7703 = vmatpush3.bf16.msra.mxu1 %v8568_v52 }
  0x5f   :  { %7704 = vmatprep.subr.bf16.mxu1 %v8572_v55 }
  0x61   :  { %396 = vmatpush1.bf16.msra.mxu0 %v8569_v53 }
  0x62   :  { %397 = vmatprep.subr.bf16.mxu0 %v8570_v54  ;;  %7705 = vmatpush3.bf16.msra.mxu1 %v8572_v55 }
  0x63   :  { %7706 = vmatprep.subr.bf16.mxu1 %v8576_v58 }
  0x65   :  { %398 = vmatpush1.bf16.msra.mxu0 %v8573_v56 }
  0x66   :  { %399 = vmatprep.subr.bf16.mxu0 %v8574_v57  ;;  %7707 = vmatpush3.bf16.msra.mxu1 %v8576_v58 }
  0x67   :  { %7708 = vmatprep.subr.bf16.mxu1 %v8580_v61 }
  0x69   :  { %400 = vmatpush1.bf16.msra.mxu0 %v8577_v59 }
  0x6a   :  { %401 = vmatprep.subr.bf16.mxu0 %v8578_v60  ;;  %7709 = vmatpush3.bf16.msra.mxu1 %v8580_v61 }
  0x6d   :  { %402 = vmatpush1.bf16.msra.mxu0 %v8581_v62 }
  0xd9   :  { %v94_v12 = vpop.xlane.xlu0 %93  ;;  %v98_v13 = vpop.xlane.xlu1 %97 }
  0xda   :  { %v110_v14 = vmul.f32 0.0078125, %v94_v12  ;;  %v112_v15 = vmul.f32 0.0078125, %v98_v13 }
  0xdc   :  { %v9023_v16 = vsub.f32 %v83_v0, %v110_v14  ;;  %v9025_v17 = vsub.f32 %v85_v1, %v112_v15  ;;  %v8582_v0 = vld [vmem:[#allocation5 + $0xb0] ss:$12 sps:$4 sm:$0xff]  }
  0xdd   :  { %v96_v18 = vpop.xlane.xlu0 %95  ;;  %v100_v19 = vpop.xlane.xlu1 %99  ;;  %7710 = vmatprep.subr.bf16.mxu1 %v8582_v0 }
  0xde   :  { %v111_v20 = vmul.f32 0.0078125, %v96_v18  ;;  %v126_v21 = vmul.f32 %v9023_v16, %v9023_v16  ;;  %v113_v22 = vmul.f32 0.0078125, %v100_v19  ;;  %v128_v25 = vmul.f32 %v9025_v17, %v9025_v17  ;;  %7711 = vmatpush3.bf16.msra.mxu1 %v8582_v0 }
  0xe0   :  { %v9029_v23 = vsub.f32 %v84_v2, %v111_v20  ;;  %134 = vadd.xlane.f32.xlu0 %v126_v21  ;;  %v9031_v24 = vsub.f32 %v86_v3, %v113_v22 }
  0xe1   :  { %v102_v26 = vpop.xlane.xlu0 %101  ;;  %v104_v27 = vpop.xlane.xlu1 %103 }
  0xe2   :  { %v114_v28 = vmul.f32 0.0078125, %v102_v26  ;;  %v127_v29 = vmul.f32 %v9029_v23, %v9029_v23  ;;  %v115_v30 = vmul.f32 0.0078125, %v104_v27  ;;  %v129_v33 = vmul.f32 %v9031_v24, %v9031_v24 }
  0xe4   :  { %v9037_v31 = vsub.f32 %v87_v4, %v114_v28  ;;  %138 = vadd.xlane.f32.xlu0 %v128_v25  ;;  %136 = vadd.xlane.f32.xlu1 %v127_v29  ;;  %v9039_v32 = vsub.f32 %v88_v5, %v115_v30  ;;  %v7288_v30 = vld [vmem:[%s10463_s1] ss:$0 sm:$0xff] }
  0xe5   :  { %v106_v34 = vpop.xlane.xlu0 %105  ;;  %v108_v35 = vpop.xlane.xlu1 %107 }
  0xe6   :  { %v116_v36 = vmul.f32 0.0078125, %v106_v34  ;;  %v130_v37 = vmul.f32 %v9037_v31, %v9037_v31  ;;  %v117_v38 = vmul.f32 0.0078125, %v108_v35  ;;  %v131_v41 = vmul.f32 %v9039_v32, %v9039_v32 }
  0xe8   :  { %v9045_v39 = vsub.f32 %v89_v6, %v116_v36  ;;  %140 = vadd.xlane.f32.xlu1 %v129_v33  ;;  %142 = vadd.xlane.f32.xlu0 %v130_v37  ;;  %v9047_v40 = vsub.f32 %v90_v7, %v117_v38  ;;  %v7289_v38 = vld [vmem:[%s10463_s1 + $0x1] ss:$0 sm:$0xff] }
  0xea   :  { %v132_v42 = vmul.f32 %v9045_v39, %v9045_v39  ;;  %v133_v43 = vmul.f32 %v9047_v40, %v9047_v40 }
  0xec   :  { %144 = vadd.xlane.f32.xlu1 %v131_v41  ;;  %146 = vadd.xlane.f32.xlu0 %v132_v42 }
  0xf0   :  { %148 = vadd.xlane.f32.xlu1 %v133_v43 }
 0x16d   :  { %v135_v1 = vpop.xlane.xlu0 %134 }
 0x16e   :  { %v150_v2 = vmul.f32 0.0078125, %v135_v1 }
 0x170   :  { %v158_v3 = vadd.f32 1e-05, %v150_v2 }
 0x171   :  { %v137_v4 = vpop.xlane.xlu1 %136  ;;  %v139_v5 = vpop.xlane.xlu0 %138 }
 0x172   :  { %8599 = vrsqrt.f32 %v158_v3  ;;  %v151_v6 = vmul.f32 0.0078125, %v137_v4  ;;  %v152_v7 = vmul.f32 0.0078125, %v139_v5 }
 0x174   :  { %v159_v8 = vadd.f32 1e-05, %v151_v6  ;;  %v160_v9 = vadd.f32 1e-05, %v152_v7 }
 0x175   :  { %v141_v10 = vpop.xlane.xlu1 %140  ;;  %v143_v11 = vpop.xlane.xlu0 %142 }
 0x176   :  { %8601 = vrsqrt.f32 %v159_v8  ;;  %v153_v12 = vmul.f32 0.0078125, %v141_v10  ;;  %v154_v13 = vmul.f32 0.0078125, %v143_v11 }
 0x177   :  { %8603 = vrsqrt.f32 %v160_v9 }
 0x178   :  { %v161_v14 = vadd.f32 1e-05, %v153_v12  ;;  %v162_v15 = vadd.f32 1e-05, %v154_v13 }
 0x179   :  { %v145_v18 = vpop.xlane.xlu1 %144  ;;  %v147_v19 = vpop.xlane.xlu0 %146 }
 0x17a   :  { %8605 = vrsqrt.f32 %v161_v14  ;;  %v155_v20 = vmul.f32 0.0078125, %v145_v18  ;;  %v156_v21 = vmul.f32 0.0078125, %v147_v19 }
 0x17b   :  { %8607 = vrsqrt.f32 %v162_v15 }
 0x17c   :  { %v8600_v22 = vpop.eup %8599  ;;  %v163_v25 = vadd.f32 1e-05, %v155_v20  ;;  %v164_v26 = vadd.f32 1e-05, %v156_v21 }
 0x17d   :  { %v149_v27 = vpop.xlane.xlu1 %148  ;;  %v174_v28 = vmul.f32 %v8600_v22, %v9023_v16 }
 0x17e   :  { %8609 = vrsqrt.f32 %v163_v25  ;;  %v157_v29 = vmul.f32 0.0078125, %v149_v27 }
 0x17f   :  { %8611 = vrsqrt.f32 %v164_v26  ;;  %v186_v37 = vmul.f32 %v7288_v30, %v174_v28 }
 0x180   :  { %v8602_v33 = vpop.eup %8601  ;;  %v165_v34 = vadd.f32 1e-05, %v157_v29 }
 0x181   :  { %v8604_v35 = vpop.eup %8603  ;;  %v175_v36 = vmul.f32 %v8602_v33, %v9029_v23  ;;  %v198_v45 = vadd.f32 %v7289_v38, %v186_v37 }
 0x182   :  { %8613 = vrsqrt.f32 %v165_v34  ;;  %v176_v16 = vmul.f32 %v8604_v35, %v9025_v17 }
 0x183   :  { %v187_v41 = vmul.f32 %v7288_v30, %v175_v36 }
 0x184   :  { %v8606_v42 = vpop.eup %8605  ;;  %v188_v43 = vmul.f32 %v7288_v30, %v176_v16 }
 0x185   :  { %v8608_v44 = vpop.eup %8607  ;;  %v199_v46 = vadd.f32 %v7289_v38, %v187_v41  ;;  %v177_v47 = vmul.f32 %v8606_v42, %v9031_v24 }
 0x186   :  { %v178_v48 = vmul.f32 %v8608_v44, %v9037_v31  ;;  %v200_v51 = vadd.f32 %v7289_v38, %v188_v43 }
 0x187   :  { %v206_v49 = vpack.c.bf16 %v199_v46, %v198_v45  ;;  %v189_v23 = vmul.f32 %v7288_v30, %v177_v47 }
 0x188   :  { %v8610_v50 = vpop.eup %8609  ;;  %v190_v54 = vmul.f32 %v7288_v30, %v178_v48 }
 0x189   :  { %v8612_v52 = vpop.eup %8611  ;;  %420 = vmatmul.mubr.bf16.vlgmr.msra.gmra.mrb[0].mxu0 %v206_v49  ;;  %7712 = vmatprep.mubr.bf16.mxu1 %v206_v49  ;;  %v201_v53 = vadd.f32 %v7289_v38, %v189_v23  ;;  %v179_v17 = vmul.f32 %v8610_v50, %v9039_v32 }
 0x18a   :  { %429 = vmatprep.mubr.bf16.mxu0 %v8927_v63  ;;  %v180_v55 = vmul.f32 %v8612_v52, %v9045_v39  ;;  %v202_v31 = vadd.f32 %v7289_v38, %v190_v54  ;;  %v10470_v39 = vmov 0.0  }
 0x18b   :  { %v207_v56 = vpack.c.bf16 %v201_v53, %v200_v51  ;;  %v191_v57 = vmul.f32 %v7288_v30, %v179_v17  ;;  %7720 = vmatprep.subr.bf16.mxu1 %v10470_v39  ;;  %7732 = vmatprep.subr.bf16.mxu0 %v10470_v39 }
 0x18c   :  { %v8614_v24 = vpop.eup %8613  ;;  %v192_v60 = vmul.f32 %v7288_v30, %v180_v55 }
 0x18d   :  { %7713 = vmatmul.mubr.bf16.vlgmr.msra.gmra.mrb[0].mxu1 %v207_v56  ;;  %v203_v58 = vadd.f32 %v7289_v38, %v191_v57  ;;  %v181_v59 = vmul.f32 %v8614_v24, %v9047_v40  ;;  %v244_v40 = vlaneseq }
 0x18e   :  { %v204_v0 = vadd.f32 %v7289_v38, %v192_v60 }
 0x18f   :  { %v208_v61 = vpack.c.bf16 %v203_v58, %v202_v31  ;;  %v193_v62 = vmul.f32 %v7288_v30, %v181_v59  ;;  %v245_v2 = vshrl.u32 %v244_v40, 7  ;;  %v9084_v6 = vand.u32 127, %v244_v40 }
 0x191   :  { %430 = vmatmul.mubr.bf16.gmra.mrb[4].mxu0 %v207_v56  ;;  %7716 = vmatprep.mubr.bf16.mxu1 %v208_v61  ;;  %v205_v32 = vadd.f32 %v7289_v38, %v193_v62  ;;  %v246_v3 = vsub.s32 0, %v245_v2  ;;  %v250_v4 = vsub.s32 1, %v245_v2  ;;  %v254_v7 = vsub.s32 2, %v245_v2 }
 0x192   :  { %439 = vmatprep.mubr.bf16.mxu0 %v8927_v63  ;;  %vm552_vm1 = vcmp.lt.s32.totalorder %v9084_v6, 16  ;;  %vm1349_vm4 = vcmp.ge.s32.totalorder %v9084_v6, 16  ;;  %vm1350_vm5 = vcmp.lt.s32.totalorder %v9084_v6, 32  ;;  %vm2121_vm7 = vcmp.ge.s32.totalorder %v9084_v6, 32 }
 0x193   :  { %v209_v1 = vpack.c.bf16 %v205_v32, %v204_v0  ;;  %v9098_v21 = vsel %vm552_vm1, 1.0, %v10470_v39  ;;  %vm1351_vm6 = vmand %vm1349_vm4, %vm1350_vm5  ;;  %vm2122_vm8 = vcmp.lt.s32.totalorder %v9084_v6, 48  ;;  %vm2893_vm10 = vcmp.ge.s32.totalorder %v9084_v6, 48 }
 0x194   :  { %vm2123_vm9 = vmand %vm2121_vm7, %vm2122_vm8  ;;  %vm2894_vm11 = vcmp.lt.s32.totalorder %v9084_v6, 64  ;;  %vm3665_vm13 = vcmp.ge.s32.totalorder %v9084_v6, 64  ;;  %vm3666_vm14 = vcmp.lt.s32.totalorder %v9084_v6, 80  ;;  %vm4437_vm1 = vcmp.ge.s32.totalorder %v9084_v6, 80 }
 0x195   :  { %7717 = vmatmul.mubr.bf16.gmra.mrb[4].mxu1 %v209_v1  ;;  %vm2895_vm12 = vmand %vm2893_vm10, %vm2894_vm11  ;;  %vm5209_vm5 = vcmp.ge.s32.totalorder %v9084_v6, 96  ;;  %vm5981_vm8 = vcmp.ge.s32.totalorder %v9084_v6, 112 }
 0x196   :  { %7722 = vmatprep.mubr.msk.bf16.mxu1 %vm8929_vm0, %v10470_v39  ;;  %vm3667_vm15 = vmand %vm3665_vm13, %vm3666_vm14 }
 0x199   :  { %440 = vmatmul.mubr.bf16.gmra.mrb[8].mxu0 %v208_v61 }
 0x19a   :  { %449 = vmatprep.mubr.bf16.mxu0 %v8927_v63  ;;  %v242_v63 = vld [vmem:[%s10465_s3] sm:$0x7] }
 0x19b   :  { %v9082_v5 = vrot.slane %v242_v63, %v246_v3  ;;  %v9086_v8 = vrot.slane %v242_v63, %v250_v4  ;;  %v9089_v12 = vrot.slane %v242_v63, %v254_v7 }
 0x1a1   :  { %450 = vmatmul.mubr.bf16.gmra.mrb[12].mxu0 %v209_v1 }
 0x1a2   :  { %7734 = vmatprep.mubr.msk.bf16.mxu0 %vm8929_vm0, %v10470_v39 }
 0x25c   :  { %v421_v9 = vpop.f32.mrb[0].mxu0 }
 0x25d   :  { %v422_v10 = vadd.f32 %v421_v9, %v9082_v5  ;;  %v423_v11 = vpop.f32.mrb[1].mxu0 }
 0x25e   :  { %v424_v13 = vadd.f32 %v423_v11, %v9086_v8  ;;  %v425_v14 = vpop.f32.mrb[2].mxu0 }
 0x25f   :  { %v9093_v15 = vmul.f32 0.25, %v422_v10  ;;  %v427_v18 = vpop.f32.mrb[3].mxu0  ;;  %v426_v26 = vadd.f32 %v425_v14, %v9082_v5 }
 0x260   :  { %v9095_v19 = vpack.c.bf16 %v424_v13, %v424_v13  ;;  %v7714_v20 = vpop.f32.mrb[0].mxu1  ;;  %v428_v34 = vadd.f32 %v427_v18, %v9086_v8 }
 0x261   :  { %v503_v22 = vadd.f32 %v7714_v20, %v9089_v12  ;;  %v9101_v25 = vpop.f32.mrb[1].mxu1  ;;  %v556_v33 = vmul.f32 %v9098_v21, %v9093_v15  ;;  %v9116_v41 = vmul.f32 0.25, %v426_v26 }
 0x262   :  { %v7715_v27 = vpop.f32.mrb[2].mxu1  ;;  %7721 = vmatpush3.bf16.xpose.msra.mxu1 %v9095_v19  ;;  %v9124_v48 = vpack.c.bf16 %v428_v34, %v428_v34 }
 0x263   :  { %v543_v28 = vpack.c.bf16 %v503_v22, %v503_v22  ;;  %v506_v29 = vadd.f32 %v7715_v27, %v9089_v12  ;;  %v9106_v30 = vpop.f32.mrb[3].mxu1  ;;  %7726 = vmatprep.subr.bf16.mxu1 %v10470_v39  ;;  %v564_v47 = vpack.c.bf16 %v556_v33, %v556_v33  ;;  %v557_v54 = vmul.f32 %v9098_v21, %v9116_v41 }
 0x264   :  { %v431_v35 = vpop.f32.mrb[4].mxu0 }
 0x265   :  { %v9113_v36 = vsel %vm967_vm2, %v543_v28, 0  ;;  %v544_v37 = vpack.c.bf16 %v506_v29, %v506_v29  ;;  %v432_v38 = vadd.f32 %v431_v35, %v9082_v5  ;;  %v433_v16 = vpop.f32.mrb[5].mxu0  ;;  %v565_v63 = vpack.c.bf16 %v557_v54, %v557_v54 }
 0x266   :  { %v434_v42 = vadd.f32 %v433_v16, %v9086_v8  ;;  %v435_v43 = vpop.f32.mrb[6].mxu0 }
 0x267   :  { %v9120_v44 = vsel %vm967_vm2, %v544_v37, 0  ;;  %v9122_v45 = vmul.f32 0.25, %v432_v38  ;;  %v437_v46 = vpop.f32.mrb[7].mxu0  ;;  %v436_v52 = vadd.f32 %v435_v43, %v9082_v5 }
 0x268   :  { %v9126_v49 = vpack.c.bf16 %v434_v42, %v434_v42  ;;  %v7718_v23 = vpop.f32.mrb[4].mxu1  ;;  %v438_v31 = vadd.f32 %v437_v46, %v9086_v8 }
 0x269   :  { %v519_v50 = vadd.f32 %v7718_v23, %v9089_v12  ;;  %v510_v51 = vpop.f32.mrb[5].mxu1  ;;  %7723 = vmatmul.mubr.bf16.vlgmr.msra.gmra.mrb[8].mxu1 %v564_v47  ;;  %v558_v24 = vmul.f32 %v9098_v21, %v9122_v45  ;;  %v9152_v4 = vmul.f32 0.25, %v436_v52  ;;  %v495_v23 = vadd.f32 %v9101_v25, %v9089_v12 }
 0x26a   :  { %v511_v53 = vadd.f32 %v510_v51, %v9089_v12  ;;  %v7719_v17 = vpop.f32.mrb[6].mxu1  ;;  %7727 = vmatpush3.bf16.xpose.msra.mxu1 %v9124_v48  ;;  %7733 = vmatpush3.bf16.xpose.msra.mxu0 %v9126_v49  ;;  %v9159_v13 = vpack.c.bf16 %v438_v31, %v438_v31 }
 0x26b   :  { %v547_v55 = vpack.c.bf16 %v519_v50, %v519_v50  ;;  %v522_v56 = vadd.f32 %v7719_v17, %v9089_v12  ;;  %v513_v57 = vpop.f32.mrb[7].mxu1  ;;  %7728 = vmatprep.mubr.msk.bf16.mxu1 %vm8929_vm0, %v10470_v39  ;;  %7738 = vmatprep.subr.bf16.mxu1 %v10470_v39  ;;  %v566_v11 = vpack.c.bf16 %v558_v24, %v558_v24 }
 0x26c   :  { %v545_v58 = vpack.c.bf16 %v511_v53, %v511_v53  ;;  %v514_v59 = vadd.f32 %v513_v57, %v9089_v12  ;;  %v441_v60 = vpop.f32.mrb[8].mxu0  ;;  %7744 = vmatprep.subr.bf16.mxu0 %v10470_v39  ;;  %v559_v22 = vmul.f32 %v9098_v21, %v9152_v4  ;;  %v541_v53 = vpack.c.bf16 %v495_v23, %v495_v23 }
 0x26d   :  { %v9145_v61 = vsel %vm967_vm2, %v547_v55, 0  ;;  %v548_v62 = vpack.c.bf16 %v522_v56, %v522_v56  ;;  %v442_v0 = vadd.f32 %v441_v60, %v9082_v5  ;;  %v443_v32 = vpop.f32.mrb[9].mxu0  ;;  %v498_v57 = vadd.f32 %v9106_v30, %v9089_v12 }
 0x26e   :  { %v9149_v1 = vsel %vm967_vm2, %v545_v58, 0  ;;  %v546_v40 = vpack.c.bf16 %v514_v59, %v514_v59  ;;  %v444_v2 = vadd.f32 %v443_v32, %v9086_v8  ;;  %v445_v3 = vpop.f32.mrb[10].mxu0  ;;  %v567_v42 = vpack.c.bf16 %v559_v22, %v559_v22 }
 0x26f   :  { %v9155_v7 = vsel %vm967_vm2, %v548_v62, 0  ;;  %v9157_v9 = vmul.f32 0.25, %v442_v0  ;;  %v447_v10 = vpop.f32.mrb[11].mxu0  ;;  %v446_v20 = vadd.f32 %v445_v3, %v9082_v5  ;;  %v9211_v56 = vsel %vm967_vm2, %v541_v53, 0 }
 0x270   :  { %v9162_v14 = vsel %vm967_vm2, %v546_v40, 0  ;;  %v9164_v18 = vpack.c.bf16 %v444_v2, %v444_v2  ;;  %v448_v27 = vadd.f32 %v447_v10, %v9086_v8  ;;  %v542_v12 = vpack.c.bf16 %v498_v57, %v498_v57 }
 0x271   :  { %7729 = vmatmul.mubr.bf16.vlgmr.msra.gmra.mrb[12].mxu1 %v565_v63  ;;  %7735 = vmatmul.mubr.bf16.vlgmr.msra.gmra.mrb[16].mxu0 %v566_v11  ;;  %v560_v26 = vmul.f32 %v9098_v21, %v9157_v9  ;;  %v9182_v37 = vmul.f32 0.25, %v446_v20 }
 0x272   :  { %7739 = vmatpush3.bf16.xpose.msra.mxu1 %v9159_v13  ;;  %7745 = vmatpush3.bf16.xpose.msra.mxu0 %v9164_v18  ;;  %v9186_v46 = vpack.c.bf16 %v448_v27, %v448_v27  ;;  %v9226_v24 = vsel %vm967_vm2, %v542_v12, 0  ;;  %vm4438_vm2 = vcmp.lt.s32.totalorder %v9084_v6, 96 }
 0x273   :  { %7740 = vmatprep.mubr.msk.bf16.mxu1 %vm8929_vm0, %v10470_v39  ;;  %7746 = vmatprep.mubr.msk.bf16.mxu0 %vm8929_vm0, %v10470_v39  ;;  %v568_v43 = vpack.c.bf16 %v560_v26, %v560_v26  ;;  %v561_v51 = vmul.f32 %v9098_v21, %v9182_v37  ;;  %vm4439_vm4 = vmand %vm4437_vm1, %vm4438_vm2 }
 0x274   :  { %v451_v28 = vpop.f32.mrb[12].mxu0  ;;  %7750 = vmatprep.subr.bf16.mxu1 %v10470_v39  ;;  %7756 = vmatprep.subr.bf16.mxu0 %v10470_v39 }
 0x275   :  { %v452_v29 = vadd.f32 %v451_v28, %v9082_v5  ;;  %v453_v33 = vpop.f32.mrb[13].mxu0  ;;  %v569_v17 = vpack.c.bf16 %v561_v51, %v561_v51 }
 0x276   :  { %v454_v34 = vadd.f32 %v453_v33, %v9086_v8  ;;  %v455_v35 = vpop.f32.mrb[14].mxu0 }
 0x277   :  { %v9184_v38 = vmul.f32 0.25, %v452_v29  ;;  %v457_v16 = vpop.f32.mrb[15].mxu0  ;;  %v456_v50 = vadd.f32 %v455_v35, %v9082_v5 }
 0x278   :  { %v9188_v47 = vpack.c.bf16 %v454_v34, %v454_v34  ;;  %v458_v52 = vadd.f32 %v457_v16, %v9086_v8 }
 0x279   :  { %7741 = vmatmul.mubr.bf16.vlgmr.msra.gmra.mrb[16].mxu1 %v567_v42  ;;  %7747 = vmatmul.mubr.bf16.vlgmr.msra.gmra.mrb[20].mxu0 %v568_v43  ;;  %v562_v25 = vmul.f32 %v9098_v21, %v9184_v38  ;;  %v9206_v5 = vmul.f32 0.25, %v456_v50 }
 0x27a   :  { %7751 = vmatpush3.bf16.xpose.msra.mxu1 %v9186_v46  ;;  %7757 = vmatpush3.bf16.xpose.msra.mxu0 %v9188_v47  ;;  %v9208_v55 = vpack.c.bf16 %v458_v52, %v458_v52 }
 0x27b   :  { %7752 = vmatprep.mubr.msk.bf16.mxu1 %vm8929_vm0, %v10470_v39  ;;  %7758 = vmatprep.mubr.msk.bf16.mxu0 %vm8929_vm0, %v10470_v39  ;;  %v570_v54 = vpack.c.bf16 %v562_v25, %v562_v25  ;;  %v563_v8 = vmul.f32 %v9098_v21, %v9206_v5 }
 0x27c   :  { %7762 = vmatprep.subr.bf16.mxu1 %v10470_v39  ;;  %7768 = vmatprep.subr.bf16.mxu0 %v10470_v39 }
 0x27d   :  { %v571_v30 = vpack.c.bf16 %v563_v8, %v563_v8 }
 0x281   :  { %7753 = vmatmul.mubr.bf16.vlgmr.msra.gmra.mrb[20].mxu1 %v569_v17  ;;  %7759 = vmatmul.mubr.bf16.vlgmr.msra.gmra.mrb[24].mxu0 %v570_v54 }
 0x282   :  { %7763 = vmatpush3.bf16.xpose.msra.mxu1 %v9208_v55  ;;  %7769 = vmatpush3.bf16.msra.mxu0 %v9211_v56 }
 0x283   :  { %7764 = vmatprep.mubr.msk.bf16.mxu1 %vm8929_vm0, %v10470_v39  ;;  %7774 = vmatprep.subr.bf16.mxu1 %v10470_v39 }
 0x284   :  { %7770 = vmatprep.mubr.msk.bf16.mxu0 %vm8929_vm0, %v10470_v39  ;;  %7780 = vmatprep.subr.bf16.mxu0 %v10470_v39 }
 0x289   :  { %7765 = vmatmul.mubr.bf16.vlgmr.msra.gmra.mrb[24].mxu1 %v571_v30 }
 0x28a   :  { %7775 = vmatpush3.bf16.msra.mxu1 %v9226_v24  ;;  %7776 = vmatprep.mubr.msk.bf16.mxu1 %vm8929_vm0, %v10470_v39 }
 0x28b   :  { %7786 = vmatprep.subr.bf16.mxu1 %v10470_v39 }
 0x33c   :  { %v606_v31 = vpop.f32.mrb[8].mxu1 }
 0x33d   :  { %v7724_v58 = vpop.f32.mrb[9].mxu1  ;;  %v893_v22 = vsel %vm892_vm3, %v606_v31, -inf }
 0x33e   :  { %v609_v59 = vpop.f32.mrb[10].mxu1 }
 0x33f   :  { %v7725_v60 = vpop.f32.mrb[11].mxu1 }
 0x344   :  { %v646_v62 = vpop.f32.mrb[12].mxu1  ;;  %v686_v0 = vpop.f32.mrb[16].mxu0 }
 0x345   :  { %v7730_v32 = vpop.f32.mrb[13].mxu1  ;;  %v7736_v40 = vpop.f32.mrb[17].mxu0  ;;  %v894_v23 = vsel %vm892_vm3, %v646_v62, -inf  ;;  %v895_v51 = vsel %vm892_vm3, %v686_v0, -inf }
 0x346   :  { %v649_v2 = vpop.f32.mrb[14].mxu1  ;;  %v689_v3 = vpop.f32.mrb[18].mxu0 }
 0x347   :  { %v7731_v63 = vpop.f32.mrb[15].mxu1  ;;  %v7737_v10 = vpop.f32.mrb[19].mxu0 }
 0x34c   :  { %v726_v11 = vpop.f32.mrb[16].mxu1  ;;  %v766_v20 = vpop.f32.mrb[20].mxu0 }
 0x34d   :  { %v897_v26 = vsel %vm892_vm3, %v766_v20, -inf  ;;  %v7742_v27 = vpop.f32.mrb[17].mxu1  ;;  %v7748_v28 = vpop.f32.mrb[21].mxu0  ;;  %v896_v60 = vsel %vm892_vm3, %v726_v11, -inf }
 0x34e   :  { %v898_v29 = vmax.f32 %v893_v22, %v897_v26  ;;  %v729_v33 = vpop.f32.mrb[18].mxu1  ;;  %v769_v34 = vpop.f32.mrb[22].mxu0 }
 0x34f   :  { %v7743_v35 = vpop.f32.mrb[19].mxu1  ;;  %v7749_v16 = vpop.f32.mrb[23].mxu0 }
 0x354   :  { %v806_v42 = vpop.f32.mrb[20].mxu1  ;;  %v846_v43 = vpop.f32.mrb[24].mxu0 }
 0x355   :  { %v899_v50 = vsel %vm892_vm3, %v806_v42, -inf  ;;  %v901_v25 = vsel %vm892_vm3, %v846_v43, -inf  ;;  %v7754_v52 = vpop.f32.mrb[21].mxu1  ;;  %v7760_v53 = vpop.f32.mrb[25].mxu0 }
 0x356   :  { %v900_v17 = vmax.f32 %v894_v23, %v899_v50  ;;  %v902_v54 = vmax.f32 %v895_v51, %v901_v25  ;;  %v809_v57 = vpop.f32.mrb[22].mxu1  ;;  %v849_v8 = vpop.f32.mrb[26].mxu0 }
 0x357   :  { %v7755_v12 = vpop.f32.mrb[23].mxu1  ;;  %v7761_v30 = vpop.f32.mrb[27].mxu0 }
 0x358   :  { %v905_v58 = vmax.f32 %v898_v29, %v900_v17 }
 0x35c   :  { %v886_v59 = vpop.f32.mrb[24].mxu1 }
 0x35d   :  { %v903_v32 = vsel %vm892_vm3, %v886_v59, -inf  ;;  %v7766_v40 = vpop.f32.mrb[25].mxu1 }
 0x35e   :  { %v904_v2 = vmax.f32 %v896_v60, %v903_v32  ;;  %v889_v3 = vpop.f32.mrb[26].mxu1 }
 0x35f   :  { %v7767_v63 = vpop.f32.mrb[27].mxu1 }
 0x360   :  { %v906_v10 = vmax.f32 %v902_v54, %v904_v2 }
 0x362   :  { %v907_v22 = vmax.f32 %v905_v58, %v906_v10 }
 0x364   :  { %v908_v26 = vsub.f32 %v606_v31, %v907_v22  ;;  %v909_v27 = vsub.f32 %v646_v62, %v907_v22  ;;  %v910_v28 = vsub.f32 %v686_v0, %v907_v22  ;;  %v911_v33 = vsub.f32 %v726_v11, %v907_v22 }
 0x365   :  { %v912_v34 = vsub.f32 %v766_v20, %v907_v22  ;;  %v913_v35 = vsub.f32 %v806_v42, %v907_v22  ;;  %v914_v16 = vsub.f32 %v846_v43, %v907_v22  ;;  %v915_v23 = vsub.f32 %v886_v59, %v907_v22 }
 0x366   :  { %v916_v29 = vmul.f32 1.442695, %v908_v26  ;;  %v918_v50 = vmul.f32 1.442695, %v909_v27  ;;  %v920_v51 = vmul.f32 1.442695, %v910_v28 }
 0x367   :  { %v922_v25 = vmul.f32 1.442695, %v911_v33  ;;  %v924_v52 = vmul.f32 1.442695, %v912_v34  ;;  %v926_v53 = vmul.f32 1.442695, %v913_v35 }
 0x368   :  { %8615 = vpow2.f32 %v916_v29  ;;  %v928_v17 = vmul.f32 1.442695, %v914_v16  ;;  %v930_v31 = vmul.f32 1.442695, %v915_v23 }
 0x369   :  { %8617 = vpow2.f32 %v918_v50 }
 0x36a   :  { %8619 = vpow2.f32 %v920_v51 }
 0x36b   :  { %8621 = vpow2.f32 %v922_v25 }
 0x36c   :  { %8623 = vpow2.f32 %v924_v52 }
 0x36d   :  { %8625 = vpow2.f32 %v926_v53 }
 0x36e   :  { %8627 = vpow2.f32 %v928_v17 }
 0x36f   :  { %8629 = vpow2.f32 %v930_v31 }
 0x372   :  { %v8616_v62 = vpop.eup %8615 }
 0x373   :  { %v8618_v0 = vpop.eup %8617  ;;  %v932_v11 = vsel %vm892_vm3, %v8616_v62, 0.0 }
 0x374   :  { %v8620_v20 = vpop.eup %8619  ;;  %v933_v42 = vsel %vm892_vm3, %v8618_v0, 0.0 }
 0x375   :  { %v8622_v43 = vpop.eup %8621  ;;  %v934_v54 = vadd.f32 %v933_v42, %v932_v11  ;;  %v935_v57 = vsel %vm892_vm3, %v8620_v20, 0.0 }
 0x376   :  { %v8624_v8 = vpop.eup %8623  ;;  %v937_v30 = vsel %vm892_vm3, %v8622_v43, 0.0 }
 0x377   :  { %v936_v12 = vadd.f32 %v935_v57, %v934_v54  ;;  %v8626_v58 = vpop.eup %8625  ;;  %v939_v60 = vsel %vm892_vm3, %v8624_v8, 0.0 }
 0x378   :  { %v8628_v32 = vpop.eup %8627  ;;  %v941_v2 = vsel %vm892_vm3, %v8626_v58, 0.0 }
 0x379   :  { %v938_v59 = vadd.f32 %v937_v30, %v936_v12  ;;  %v8630_v3 = vpop.eup %8629  ;;  %v943_v10 = vsel %vm892_vm3, %v8628_v32, 0.0 }
 0x37a   :  { %v945_v26 = vsel %vm892_vm3, %v8630_v3, 0.0 }
 0x37b   :  { %v940_v40 = vadd.f32 %v939_v60, %v938_v59 }
 0x37d   :  { %v942_v63 = vadd.f32 %v941_v2, %v940_v40 }
 0x37f   :  { %v944_v22 = vadd.f32 %v943_v10, %v942_v63 }
 0x381   :  { %v946_v27 = vadd.f32 %v945_v26, %v944_v22 }
 0x383   :  { %8631 = vrcp.f32 %v946_v27 }
 0x38d   :  { %v8632_v28 = vpop.eup %8631 }
 0x38e   :  { %v948_v33 = vmul.f32 %v8632_v28, %v8616_v62  ;;  %v949_v34 = vmul.f32 %v8632_v28, %v8618_v0  ;;  %v950_v35 = vmul.f32 %v8632_v28, %v8620_v20  ;;  %v951_v16 = vmul.f32 %v8632_v28, %v8622_v43 }
 0x38f   :  { %v952_v23 = vmul.f32 %v8632_v28, %v8624_v8  ;;  %v953_v29 = vmul.f32 %v8632_v28, %v8626_v58  ;;  %v954_v50 = vmul.f32 %v8632_v28, %v8628_v32  ;;  %v955_v51 = vmul.f32 %v8632_v28, %v8630_v3 }
 0x390   :  { %v956_v25 = vpack.c.bf16 %v948_v33, %v948_v33  ;;  %v957_v52 = vpack.c.bf16 %v949_v34, %v949_v34  ;;  %v958_v53 = vpack.c.bf16 %v950_v35, %v950_v35  ;;  %v959_v17 = vpack.c.bf16 %v951_v16, %v951_v16 }
 0x391   :  { %v960_v31 = vpack.c.bf16 %v952_v23, %v952_v23  ;;  %v961_v62 = vpack.c.bf16 %v953_v29, %v953_v29  ;;  %v962_v0 = vpack.c.bf16 %v954_v50, %v954_v50  ;;  %v963_v11 = vpack.c.bf16 %v955_v51, %v955_v51 }
 0x392   :  { %7771 = vmatmul.mubr.msk.bf16.vlgmr.msra.gmra.mrb[28].mxu0 %vm892_vm3, %v956_v25  ;;  %7777 = vmatmul.mubr.msk.bf16.vlgmr.msra.gmra.mrb[28].mxu1 %vm892_vm3, %v957_v52  ;;  %v9283_v20 = vsel %vm1351_vm6, 1.0, %v10470_v39  ;;  %vm5210_vm6 = vcmp.lt.s32.totalorder %v9084_v6, 112 }
 0x393   :  { %7781 = vmatpush3.bf16.msra.mxu0 %v9113_v36  ;;  %7787 = vmatpush3.bf16.msra.mxu1 %v9120_v44  ;;  %v1354_v42 = vmul.f32 %v9283_v20, %v9093_v15  ;;  %v1355_v43 = vmul.f32 %v9283_v20, %v9116_v41  ;;  %v1356_v8 = vmul.f32 %v9283_v20, %v9122_v45  ;;  %vm5211_vm7 = vmand %vm5209_vm5, %vm5210_vm6 }
 0x394   :  { %7782 = vmatprep.mubr.msk.bf16.mxu0 %vm8929_vm0, %v10470_v39  ;;  %7788 = vmatprep.mubr.msk.bf16.mxu1 %vm8929_vm0, %v10470_v39  ;;  %v1357_v12 = vmul.f32 %v9283_v20, %v9152_v4  ;;  %v1358_v59 = vmul.f32 %v9283_v20, %v9157_v9  ;;  %v1359_v60 = vmul.f32 %v9283_v20, %v9182_v37 }
 0x395   :  { %7792 = vmatprep.subr.bf16.mxu0 %v10470_v39  ;;  %7798 = vmatprep.subr.bf16.mxu1 %v10470_v39  ;;  %v1362_v54 = vpack.c.bf16 %v1354_v42, %v1354_v42  ;;  %v1363_v57 = vpack.c.bf16 %v1355_v43, %v1355_v43  ;;  %v1364_v30 = vpack.c.bf16 %v1356_v8, %v1356_v8 }
 0x396   :  { %v1365_v58 = vpack.c.bf16 %v1357_v12, %v1357_v12  ;;  %v1366_v32 = vpack.c.bf16 %v1358_v59, %v1358_v59  ;;  %v1367_v40 = vpack.c.bf16 %v1359_v60, %v1359_v60  ;;  %v1360_v2 = vmul.f32 %v9283_v20, %v9184_v38 }
 0x397   :  { %v1361_v3 = vmul.f32 %v9283_v20, %v9206_v5 }
 0x398   :  { %v1368_v63 = vpack.c.bf16 %v1360_v2, %v1360_v2 }
 0x399   :  { %v1369_v10 = vpack.c.bf16 %v1361_v3, %v1361_v3 }
 0x39a   :  { %7783 = vmatmul.mubr.msk.bf16.vlgmr.msra.gmra.mrb[32].mxu0 %vm892_vm3, %v958_v53  ;;  %7789 = vmatmul.mubr.msk.bf16.vlgmr.msra.gmra.mrb[32].mxu1 %vm892_vm3, %v959_v17 }
 0x39b   :  { %7793 = vmatpush3.bf16.msra.mxu0 %v9149_v1  ;;  %7799 = vmatpush3.bf16.msra.mxu1 %v9162_v14 }
 0x39c   :  { %7794 = vmatprep.mubr.msk.bf16.mxu0 %vm8929_vm0, %v10470_v39  ;;  %7800 = vmatprep.mubr.msk.bf16.mxu1 %vm8929_vm0, %v10470_v39 }
 0x39d   :  { %7804 = vmatprep.subr.bf16.mxu0 %v10470_v39  ;;  %7810 = vmatprep.subr.bf16.mxu1 %v10470_v39 }
 0x3a2   :  { %7795 = vmatmul.mubr.msk.bf16.vlgmr.msra.gmra.mrb[36].mxu0 %vm892_vm3, %v960_v31  ;;  %7801 = vmatmul.mubr.msk.bf16.vlgmr.msra.gmra.mrb[36].mxu1 %vm892_vm3, %v961_v62 }
 0x3a3   :  { %7805 = vmatpush3.bf16.msra.mxu0 %v9145_v61  ;;  %7811 = vmatpush3.bf16.msra.mxu1 %v9155_v7 }
 0x3a4   :  { %7806 = vmatprep.mubr.msk.bf16.mxu0 %vm8929_vm0, %v10470_v39  ;;  %7812 = vmatprep.mubr.msk.bf16.mxu1 %vm8929_vm0, %v10470_v39 }
 0x3a5   :  { %7816 = vmatprep.subr.bf16.mxu0 %v10470_v39  ;;  %7822 = vmatprep.subr.bf16.mxu1 %v10470_v39 }
 0x3aa   :  { %7807 = vmatmul.mubr.msk.bf16.vlgmr.msra.gmra.mrb[40].mxu0 %vm892_vm3, %v962_v0  ;;  %7813 = vmatmul.mubr.msk.bf16.vlgmr.msra.gmra.mrb[40].mxu1 %vm892_vm3, %v963_v11 }
 0x3ab   :  { %7818 = vmatprep.mubr.msk.bf16.mxu0 %vm8929_vm0, %v10470_v39  ;;  %7824 = vmatprep.mubr.msk.bf16.mxu1 %vm8929_vm0, %v10470_v39 }
 0x3ac   :  { %7817 = vmatpush3.bf16.xpose.msra.mxu0 %v9095_v19  ;;  %7823 = vmatpush3.bf16.xpose.msra.mxu1 %v9124_v48 }
 0x3ad   :  { %7828 = vmatprep.subr.bf16.mxu0 %v10470_v39  ;;  %7834 = vmatprep.subr.bf16.mxu1 %v10470_v39 }
 0x3b3   :  { %7819 = vmatmul.mubr.bf16.vlgmr.msra.gmra.mrb[44].mxu0 %v1362_v54  ;;  %7825 = vmatmul.mubr.bf16.vlgmr.msra.gmra.mrb[44].mxu1 %v1363_v57 }
 0x3b4   :  { %7829 = vmatpush3.bf16.xpose.msra.mxu0 %v9126_v49  ;;  %7835 = vmatpush3.bf16.xpose.msra.mxu1 %v9159_v13 }
 0x3b5   :  { %7830 = vmatprep.mubr.msk.bf16.mxu0 %vm8929_vm0, %v10470_v39  ;;  %7836 = vmatprep.mubr.msk.bf16.mxu1 %vm8929_vm0, %v10470_v39 }
 0x3b6   :  { %7840 = vmatprep.subr.bf16.mxu0 %v10470_v39  ;;  %7846 = vmatprep.subr.bf16.mxu1 %v10470_v39 }
 0x3bb   :  { %7831 = vmatmul.mubr.bf16.vlgmr.msra.gmra.mrb[48].mxu0 %v1364_v30  ;;  %7837 = vmatmul.mubr.bf16.vlgmr.msra.gmra.mrb[48].mxu1 %v1365_v58 }
 0x3bc   :  { %7841 = vmatpush3.bf16.xpose.msra.mxu0 %v9164_v18  ;;  %7847 = vmatpush3.bf16.xpose.msra.mxu1 %v9186_v46 }
 0x3bd   :  { %7842 = vmatprep.mubr.msk.bf16.mxu0 %vm8929_vm0, %v10470_v39  ;;  %7848 = vmatprep.mubr.msk.bf16.mxu1 %vm8929_vm0, %v10470_v39 }
 0x3be   :  { %7852 = vmatprep.subr.bf16.mxu0 %v10470_v39  ;;  %7858 = vmatprep.subr.bf16.mxu1 %v10470_v39 }
 0x3c3   :  { %7843 = vmatmul.mubr.bf16.vlgmr.msra.gmra.mrb[52].mxu0 %v1366_v32  ;;  %7849 = vmatmul.mubr.bf16.vlgmr.msra.gmra.mrb[52].mxu1 %v1367_v40 }
 0x3c4   :  { %7853 = vmatpush3.bf16.xpose.msra.mxu0 %v9188_v47  ;;  %7859 = vmatpush3.bf16.xpose.msra.mxu1 %v9208_v55 }
 0x3c5   :  { %7854 = vmatprep.mubr.msk.bf16.mxu0 %vm8929_vm0, %v10470_v39  ;;  %7860 = vmatprep.mubr.msk.bf16.mxu1 %vm8929_vm0, %v10470_v39 }
 0x3c6   :  { %7864 = vmatprep.subr.bf16.mxu0 %v10470_v39  ;;  %7870 = vmatprep.subr.bf16.mxu1 %v10470_v39 }
 0x3cb   :  { %7855 = vmatmul.mubr.bf16.vlgmr.msra.gmra.mrb[56].mxu0 %v1368_v63  ;;  %7861 = vmatmul.mubr.bf16.vlgmr.msra.gmra.mrb[56].mxu1 %v1369_v10 }
 0x3cc   :  { %7865 = vmatpush3.bf16.msra.mxu0 %v9211_v56  ;;  %7871 = vmatpush3.bf16.msra.mxu1 %v9226_v24 }
 0x3cd   :  { %7866 = vmatprep.mubr.msk.bf16.mxu0 %vm8929_vm0, %v10470_v39  ;;  %7872 = vmatprep.mubr.msk.bf16.mxu1 %vm8929_vm0, %v10470_v39 }
 0x3ce   :  { %7876 = vmatprep.subr.bf16.mxu0 %v10470_v39  ;;  %7882 = vmatprep.subr.bf16.mxu1 %v10470_v39 }
 0x465   :  { %v9341_v22 = vpop.f32.mrb[28].mxu0  ;;  %v9343_v26 = vpop.f32.mrb[28].mxu1 }
 0x466   :  { %v7772_v27 = vpop.f32.mrb[29].mxu0  ;;  %v7778_v28 = vpop.f32.mrb[29].mxu1 }
 0x467   :  { %v1008_v33 = vpop.f32.mrb[30].mxu0  ;;  %v1054_v34 = vpop.f32.mrb[30].mxu1 }
 0x468   :  { %v7773_v35 = vpop.f32.mrb[31].mxu0  ;;  %v7779_v16 = vpop.f32.mrb[31].mxu1 }
 0x46d   :  { %v9345_v23 = vpop.f32.mrb[32].mxu0  ;;  %v9347_v29 = vpop.f32.mrb[32].mxu1 }
 0x46e   :  { %v7784_v50 = vpop.f32.mrb[33].mxu0  ;;  %v7790_v51 = vpop.f32.mrb[33].mxu1 }
 0x46f   :  { %v1100_v25 = vpop.f32.mrb[34].mxu0  ;;  %v1146_v52 = vpop.f32.mrb[34].mxu1 }
 0x470   :  { %v7785_v53 = vpop.f32.mrb[35].mxu0  ;;  %v7791_v17 = vpop.f32.mrb[35].mxu1 }
 0x475   :  { %v9349_v31 = vpop.f32.mrb[36].mxu0  ;;  %v9351_v62 = vpop.f32.mrb[36].mxu1 }
 0x476   :  { %10472 = vst [vmem:[#allocation15_spill] sm:$0xff] %v9349_v31  ;;  %10473 = vst [vmem:[#allocation16_spill] sm:$0xff] %v9351_v62  ;;  %v7796_v0 = vpop.f32.mrb[37].mxu0  ;;  %v7802_v11 = vpop.f32.mrb[37].mxu1 }
 0x477   :  { %v1192_v42 = vpop.f32.mrb[38].mxu0  ;;  %v1238_v43 = vpop.f32.mrb[38].mxu1 }
 0x478   :  { %v7797_v54 = vpop.f32.mrb[39].mxu0  ;;  %v7803_v57 = vpop.f32.mrb[39].mxu1 }
 0x47d   :  { %v9353_v8 = vpop.f32.mrb[40].mxu0  ;;  %v9355_v12 = vpop.f32.mrb[40].mxu1 }
 0x47e   :  { %10474 = vst [vmem:[#allocation17_spill] sm:$0xff] %v9353_v8  ;;  %10475 = vst [vmem:[#allocation18_spill] sm:$0xff] %v9355_v12  ;;  %v7808_v30 = vpop.f32.mrb[41].mxu0  ;;  %v7814_v58 = vpop.f32.mrb[41].mxu1 }
 0x47f   :  { %v1284_v59 = vpop.f32.mrb[42].mxu0  ;;  %v1330_v60 = vpop.f32.mrb[42].mxu1 }
 0x480   :  { %v7809_v32 = vpop.f32.mrb[43].mxu0  ;;  %v7815_v40 = vpop.f32.mrb[43].mxu1 }
 0x486   :  { %v1404_v2 = vpop.f32.mrb[44].mxu0  ;;  %v1444_v3 = vpop.f32.mrb[44].mxu1 }
 0x487   :  { %v7820_v63 = vpop.f32.mrb[45].mxu0  ;;  %v7826_v10 = vpop.f32.mrb[45].mxu1  ;;  %v1690_v42 = vsel %vm892_vm3, %v1404_v2, -inf  ;;  %v1691_v43 = vsel %vm892_vm3, %v1444_v3, -inf }
 0x488   :  { %v1407_v27 = vpop.f32.mrb[46].mxu0  ;;  %v1447_v28 = vpop.f32.mrb[46].mxu1 }
 0x489   :  { %v7821_v33 = vpop.f32.mrb[47].mxu0  ;;  %v7827_v34 = vpop.f32.mrb[47].mxu1 }
 0x48e   :  { %v1484_v35 = vpop.f32.mrb[48].mxu0  ;;  %v1524_v16 = vpop.f32.mrb[48].mxu1 }
 0x48f   :  { %v7832_v50 = vpop.f32.mrb[49].mxu0  ;;  %v7838_v51 = vpop.f32.mrb[49].mxu1  ;;  %v1692_v34 = vsel %vm892_vm3, %v1484_v35, -inf }
 0x490   :  { %v1487_v25 = vpop.f32.mrb[50].mxu0  ;;  %v1527_v52 = vpop.f32.mrb[50].mxu1  ;;  %v1693_v50 = vsel %vm892_vm3, %v1524_v16, -inf }
 0x491   :  { %v7833_v53 = vpop.f32.mrb[51].mxu0  ;;  %v7839_v17 = vpop.f32.mrb[51].mxu1 }
 0x496   :  { %v1564_v0 = vpop.f32.mrb[52].mxu0  ;;  %v1604_v11 = vpop.f32.mrb[52].mxu1 }
 0x497   :  { %v1694_v54 = vsel %vm892_vm3, %v1564_v0, -inf  ;;  %v1696_v57 = vsel %vm892_vm3, %v1604_v11, -inf  ;;  %v7844_v30 = vpop.f32.mrb[53].mxu0  ;;  %v7850_v58 = vpop.f32.mrb[53].mxu1 }
 0x498   :  { %v1695_v59 = vmax.f32 %v1690_v42, %v1694_v54  ;;  %v1697_v60 = vmax.f32 %v1691_v43, %v1696_v57  ;;  %v1567_v32 = vpop.f32.mrb[54].mxu0  ;;  %v1607_v40 = vpop.f32.mrb[54].mxu1 }
 0x499   :  { %v7845_v63 = vpop.f32.mrb[55].mxu0  ;;  %v7851_v10 = vpop.f32.mrb[55].mxu1 }
 0x49a   :  { %v1702_v27 = vmax.f32 %v1695_v59, %v1697_v60 }
 0x49e   :  { %v1644_v28 = vpop.f32.mrb[56].mxu0  ;;  %v1684_v33 = vpop.f32.mrb[56].mxu1 }
 0x49f   :  { %v1698_v51 = vsel %vm892_vm3, %v1644_v28, -inf  ;;  %v1700_v25 = vsel %vm892_vm3, %v1684_v33, -inf  ;;  %v7856_v52 = vpop.f32.mrb[57].mxu0  ;;  %v7862_v53 = vpop.f32.mrb[57].mxu1 }
 0x4a0   :  { %v1699_v17 = vmax.f32 %v1692_v34, %v1698_v51  ;;  %v1701_v42 = vmax.f32 %v1693_v50, %v1700_v25  ;;  %v1647_v43 = vpop.f32.mrb[58].mxu0  ;;  %v1687_v54 = vpop.f32.mrb[58].mxu1 }
 0x4a1   :  { %v7857_v57 = vpop.f32.mrb[59].mxu0  ;;  %v7863_v30 = vpop.f32.mrb[59].mxu1 }
 0x4a2   :  { %v1703_v58 = vmax.f32 %v1699_v17, %v1701_v42 }
 0x4a4   :  { %v1704_v59 = vmax.f32 %v1702_v27, %v1703_v58 }
 0x4a6   :  { %v1705_v60 = vsub.f32 %v1404_v2, %v1704_v59  ;;  %v1706_v32 = vsub.f32 %v1444_v3, %v1704_v59  ;;  %v1707_v40 = vsub.f32 %v1484_v35, %v1704_v59  ;;  %v1708_v63 = vsub.f32 %v1524_v16, %v1704_v59 }
 0x4a7   :  { %v1709_v10 = vsub.f32 %v1564_v0, %v1704_v59  ;;  %v1710_v39 = vsub.f32 %v1604_v11, %v1704_v59  ;;  %v1711_v12 = vsub.f32 %v1644_v28, %v1704_v59  ;;  %v1712_v8 = vsub.f32 %v1684_v33, %v1704_v59 }
 0x4a8   :  { %v1713_v62 = vmul.f32 1.442695, %v1705_v60  ;;  %v1715_v31 = vmul.f32 1.442695, %v1706_v32  ;;  %v1717_v52 = vmul.f32 1.442695, %v1707_v40 }
 0x4a9   :  { %v1719_v53 = vmul.f32 1.442695, %v1708_v63  ;;  %v1721_v34 = vmul.f32 1.442695, %v1709_v10  ;;  %v1723_v50 = vmul.f32 1.442695, %v1710_v39 }
 0x4aa   :  { %8633 = vpow2.f32 %v1713_v62  ;;  %v1725_v27 = vmul.f32 1.442695, %v1711_v12  ;;  %v1727_v2 = vmul.f32 1.442695, %v1712_v8 }
 0x4ab   :  { %8635 = vpow2.f32 %v1715_v31 }
 0x4ac   :  { %8637 = vpow2.f32 %v1717_v52 }
 0x4ad   :  { %8639 = vpow2.f32 %v1719_v53 }
 0x4ae   :  { %8641 = vpow2.f32 %v1721_v34 }
 0x4af   :  { %8643 = vpow2.f32 %v1723_v50 }
 0x4b0   :  { %8645 = vpow2.f32 %v1725_v27 }
 0x4b1   :  { %8647 = vpow2.f32 %v1727_v2 }
 0x4b4   :  { %v8634_v3 = vpop.eup %8633 }
 0x4b5   :  { %v8636_v35 = vpop.eup %8635  ;;  %v1729_v16 = vsel %vm892_vm3, %v8634_v3, 0.0 }
 0x4b6   :  { %v8638_v0 = vpop.eup %8637  ;;  %v1730_v11 = vsel %vm892_vm3, %v8636_v35, 0.0 }
 0x4b7   :  { %v8640_v28 = vpop.eup %8639  ;;  %v1731_v62 = vadd.f32 %v1730_v11, %v1729_v16  ;;  %v1732_v31 = vsel %vm892_vm3, %v8638_v0, 0.0  ;;  %v10476_v11 = vmov 0.0  }
 0x4b8   :  { %v8642_v33 = vpop.eup %8641  ;;  %v1734_v39 = vsel %vm892_vm3, %v8640_v28, 0.0 }
 0x4b9   :  { %v1733_v51 = vadd.f32 %v1732_v31, %v1731_v62  ;;  %v8644_v12 = vpop.eup %8643  ;;  %v1736_v8 = vsel %vm892_vm3, %v8642_v33, 0.0 }
 0x4ba   :  { %v8646_v17 = vpop.eup %8645  ;;  %v1738_v43 = vsel %vm892_vm3, %v8644_v12, 0.0 }
 0x4bb   :  { %v1735_v25 = vadd.f32 %v1734_v39, %v1733_v51  ;;  %v8648_v54 = vpop.eup %8647  ;;  %v1740_v30 = vsel %vm892_vm3, %v8646_v17, 0.0 }
 0x4bc   :  { %v1742_v59 = vsel %vm892_vm3, %v8648_v54, 0.0 }
 0x4bd   :  { %v1737_v42 = vadd.f32 %v1736_v8, %v1735_v25 }
 0x4bf   :  { %v1739_v57 = vadd.f32 %v1738_v43, %v1737_v42 }
 0x4c1   :  { %v1741_v58 = vadd.f32 %v1740_v30, %v1739_v57 }
 0x4c3   :  { %v1743_v60 = vadd.f32 %v1742_v59, %v1741_v58 }
 0x4c5   :  { %8649 = vrcp.f32 %v1743_v60 }
 0x4cf   :  { %v8650_v32 = vpop.eup %8649 }
 0x4d0   :  { %v1745_v40 = vmul.f32 %v8650_v32, %v8634_v3  ;;  %v1746_v63 = vmul.f32 %v8650_v32, %v8636_v35  ;;  %v1747_v10 = vmul.f32 %v8650_v32, %v8638_v0  ;;  %v1748_v52 = vmul.f32 %v8650_v32, %v8640_v28 }
 0x4d1   :  { %v1749_v53 = vmul.f32 %v8650_v32, %v8642_v33  ;;  %v1750_v34 = vmul.f32 %v8650_v32, %v8644_v12  ;;  %v1751_v50 = vmul.f32 %v8650_v32, %v8646_v17  ;;  %v1752_v27 = vmul.f32 %v8650_v32, %v8648_v54 }
 0x4d2   :  { %v1753_v2 = vpack.c.bf16 %v1745_v40, %v1745_v40  ;;  %v1754_v16 = vpack.c.bf16 %v1746_v63, %v1746_v63  ;;  %v1755_v3 = vpack.c.bf16 %v1747_v10, %v1747_v10  ;;  %v1756_v35 = vpack.c.bf16 %v1748_v52, %v1748_v52 }
 0x4d3   :  { %v1757_v0 = vpack.c.bf16 %v1749_v53, %v1749_v53  ;;  %v1758_v28 = vpack.c.bf16 %v1750_v34, %v1750_v34  ;;  %v1759_v62 = vpack.c.bf16 %v1751_v50, %v1751_v50  ;;  %v1760_v31 = vpack.c.bf16 %v1752_v27, %v1752_v27 }
 0x4d4   :  { %7867 = vmatmul.mubr.msk.bf16.vlgmr.msra.gmra.mrb[60].mxu0 %vm892_vm3, %v1753_v2  ;;  %7873 = vmatmul.mubr.msk.bf16.vlgmr.msra.gmra.mrb[60].mxu1 %vm892_vm3, %v1754_v16  ;;  %v9408_v33 = vsel %vm2123_vm9, 1.0, %v10476_v11  ;;  %v1333_v52 = vmul.f32 %v9098_v21, %v9341_v22  ;;  %v1334_v53 = vmul.f32 %v9098_v21, %v9343_v26  ;;  %v1335_v22 = vmul.f32 %v9098_v21, %v9345_v23  ;;  %v10477_v23 = vld [vmem:[#allocation15_spill] sm:$0xff] }
 0x4d5   :  { %7877 = vmatpush3.bf16.msra.mxu0 %v9113_v36  ;;  %7883 = vmatpush3.bf16.msra.mxu1 %v9120_v44  ;;  %v2126_v51 = vmul.f32 %v9408_v33, %v9093_v15  ;;  %v2127_v39 = vmul.f32 %v9408_v33, %v9116_v41  ;;  %v2128_v8 = vmul.f32 %v9408_v33, %v9122_v45 }
 0x4d6   :  { %7878 = vmatprep.mubr.msk.bf16.mxu0 %vm8929_vm0, %v10476_v11  ;;  %7884 = vmatprep.mubr.msk.bf16.mxu1 %vm8929_vm0, %v10476_v11  ;;  %v2129_v17 = vmul.f32 %v9408_v33, %v9152_v4  ;;  %v2130_v54 = vmul.f32 %v9408_v33, %v9157_v9  ;;  %v2131_v57 = vmul.f32 %v9408_v33, %v9182_v37 }
 0x4d7   :  { %7888 = vmatprep.subr.bf16.mxu0 %v10476_v11  ;;  %7894 = vmatprep.subr.bf16.mxu1 %v10476_v11  ;;  %v2134_v12 = vpack.c.bf16 %v2126_v51, %v2126_v51  ;;  %v2135_v25 = vpack.c.bf16 %v2127_v39, %v2127_v39  ;;  %v2136_v42 = vpack.c.bf16 %v2128_v8, %v2128_v8 }
 0x4d8   :  { %v2137_v43 = vpack.c.bf16 %v2129_v17, %v2129_v17  ;;  %v2138_v30 = vpack.c.bf16 %v2130_v54, %v2130_v54  ;;  %v2139_v58 = vpack.c.bf16 %v2131_v57, %v2131_v57  ;;  %v2132_v59 = vmul.f32 %v9408_v33, %v9184_v38 }
 0x4d9   :  { %v2133_v60 = vmul.f32 %v9408_v33, %v9206_v5  ;;  %v1336_v26 = vmul.f32 %v9098_v21, %v9347_v29  ;;  %v10478_v29 = vld [vmem:[#allocation16_spill] sm:$0xff] }
 0x4da   :  { %v2140_v32 = vpack.c.bf16 %v2132_v59, %v2132_v59 }
 0x4db   :  { %v2141_v40 = vpack.c.bf16 %v2133_v60, %v2133_v60  ;;  %v1337_v60 = vmul.f32 %v9098_v21, %v10477_v23 }
 0x4dc   :  { %7879 = vmatmul.mubr.msk.bf16.vlgmr.msra.gmra.mrb[64].mxu0 %vm892_vm3, %v1755_v3  ;;  %7885 = vmatmul.mubr.msk.bf16.vlgmr.msra.gmra.mrb[64].mxu1 %vm892_vm3, %v1756_v35 }
 0x4dd   :  { %7889 = vmatpush3.bf16.msra.mxu0 %v9149_v1  ;;  %7895 = vmatpush3.bf16.msra.mxu1 %v9162_v14 }
 0x4de   :  { %7890 = vmatprep.mubr.msk.bf16.mxu0 %vm8929_vm0, %v10476_v11  ;;  %7896 = vmatprep.mubr.msk.bf16.mxu1 %vm8929_vm0, %v10476_v11 }
 0x4df   :  { %7900 = vmatprep.subr.bf16.mxu0 %v10476_v11  ;;  %7906 = vmatprep.subr.bf16.mxu1 %v10476_v11 }
 0x4e4   :  { %7891 = vmatmul.mubr.msk.bf16.vlgmr.msra.gmra.mrb[68].mxu0 %vm892_vm3, %v1757_v0  ;;  %7897 = vmatmul.mubr.msk.bf16.vlgmr.msra.gmra.mrb[68].mxu1 %vm892_vm3, %v1758_v28 }
 0x4e5   :  { %7901 = vmatpush3.bf16.msra.mxu0 %v9145_v61  ;;  %7907 = vmatpush3.bf16.msra.mxu1 %v9155_v7 }
 0x4e6   :  { %7902 = vmatprep.mubr.msk.bf16.mxu0 %vm8929_vm0, %v10476_v11  ;;  %7908 = vmatprep.mubr.msk.bf16.mxu1 %vm8929_vm0, %v10476_v11 }
 0x4e7   :  { %7912 = vmatprep.subr.bf16.mxu0 %v10476_v11  ;;  %7918 = vmatprep.subr.bf16.mxu1 %v10476_v11 }
 0x4ec   :  { %7903 = vmatmul.mubr.msk.bf16.vlgmr.msra.gmra.mrb[72].mxu0 %vm892_vm3, %v1759_v62  ;;  %7909 = vmatmul.mubr.msk.bf16.vlgmr.msra.gmra.mrb[72].mxu1 %vm892_vm3, %v1760_v31 }
 0x4ed   :  { %7914 = vmatprep.mubr.msk.bf16.mxu0 %vm8929_vm0, %v10476_v11  ;;  %7920 = vmatprep.mubr.msk.bf16.mxu1 %vm8929_vm0, %v10476_v11 }
 0x4ee   :  { %7913 = vmatpush3.bf16.xpose.msra.mxu0 %v9095_v19  ;;  %7919 = vmatpush3.bf16.xpose.msra.mxu1 %v9124_v48 }
 0x4ef   :  { %7924 = vmatprep.subr.bf16.mxu0 %v10476_v11  ;;  %7930 = vmatprep.subr.bf16.mxu1 %v10476_v11 }
 0x4f5   :  { %7915 = vmatmul.mubr.bf16.vlgmr.msra.gmra.mrb[76].mxu0 %v2134_v12  ;;  %7921 = vmatmul.mubr.bf16.vlgmr.msra.gmra.mrb[76].mxu1 %v2135_v25 }
 0x4f6   :  { %7925 = vmatpush3.bf16.xpose.msra.mxu0 %v9126_v49  ;;  %7931 = vmatpush3.bf16.xpose.msra.mxu1 %v9159_v13 }
 0x4f7   :  { %7926 = vmatprep.mubr.msk.bf16.mxu0 %vm8929_vm0, %v10476_v11  ;;  %7932 = vmatprep.mubr.msk.bf16.mxu1 %vm8929_vm0, %v10476_v11 }
 0x4f8   :  { %7936 = vmatprep.subr.bf16.mxu0 %v10476_v11  ;;  %7942 = vmatprep.subr.bf16.mxu1 %v10476_v11 }
 0x4fd   :  { %7927 = vmatmul.mubr.bf16.vlgmr.msra.gmra.mrb[80].mxu0 %v2136_v42  ;;  %7933 = vmatmul.mubr.bf16.vlgmr.msra.gmra.mrb[80].mxu1 %v2137_v43 }
 0x4fe   :  { %7937 = vmatpush3.bf16.xpose.msra.mxu0 %v9164_v18  ;;  %7943 = vmatpush3.bf16.xpose.msra.mxu1 %v9186_v46 }
 0x4ff   :  { %7938 = vmatprep.mubr.msk.bf16.mxu0 %vm8929_vm0, %v10476_v11  ;;  %7944 = vmatprep.mubr.msk.bf16.mxu1 %vm8929_vm0, %v10476_v11 }
 0x500   :  { %7948 = vmatprep.subr.bf16.mxu0 %v10476_v11  ;;  %7954 = vmatprep.subr.bf16.mxu1 %v10476_v11 }
 0x505   :  { %7939 = vmatmul.mubr.bf16.vlgmr.msra.gmra.mrb[84].mxu0 %v2138_v30  ;;  %7945 = vmatmul.mubr.bf16.vlgmr.msra.gmra.mrb[84].mxu1 %v2139_v58 }
 0x506   :  { %7949 = vmatpush3.bf16.xpose.msra.mxu0 %v9188_v47  ;;  %7955 = vmatpush3.bf16.xpose.msra.mxu1 %v9208_v55 }
 0x507   :  { %7950 = vmatprep.mubr.msk.bf16.mxu0 %vm8929_vm0, %v10476_v11  ;;  %7956 = vmatprep.mubr.msk.bf16.mxu1 %vm8929_vm0, %v10476_v11 }
 0x508   :  { %7960 = vmatprep.subr.bf16.mxu0 %v10476_v11  ;;  %7966 = vmatprep.subr.bf16.mxu1 %v10476_v11 }
 0x50d   :  { %7951 = vmatmul.mubr.bf16.vlgmr.msra.gmra.mrb[88].mxu0 %v2140_v32  ;;  %7957 = vmatmul.mubr.bf16.vlgmr.msra.gmra.mrb[88].mxu1 %v2141_v40  ;;  %v1338_v32 = vmul.f32 %v9098_v21, %v10478_v29 }
 0x50e   :  { %7961 = vmatpush3.bf16.msra.mxu0 %v9211_v56  ;;  %7967 = vmatpush3.bf16.msra.mxu1 %v9226_v24 }
 0x50f   :  { %7962 = vmatprep.mubr.msk.bf16.mxu0 %vm8929_vm0, %v10476_v11  ;;  %7968 = vmatprep.mubr.msk.bf16.mxu1 %vm8929_vm0, %v10476_v11 }
 0x510   :  { %7972 = vmatprep.subr.bf16.mxu0 %v10476_v11  ;;  %7978 = vmatprep.subr.bf16.mxu1 %v10476_v11 }
 0x5a7   :  { %v1798_v63 = vpop.f32.mrb[60].mxu0  ;;  %v1841_v10 = vpop.f32.mrb[60].mxu1 }
 0x5a8   :  { %v2105_v34 = vmul.f32 %v9283_v20, %v1798_v63  ;;  %v2106_v50 = vmul.f32 %v9283_v20, %v1841_v10  ;;  %v7868_v27 = vpop.f32.mrb[61].mxu0  ;;  %v7874_v2 = vpop.f32.mrb[61].mxu1 }
 0x5a9   :  { %v1801_v16 = vpop.f32.mrb[62].mxu0  ;;  %v1844_v3 = vpop.f32.mrb[62].mxu1 }
 0x5aa   :  { %v9472_v35 = vadd.f32 %v2105_v34, %v1333_v52  ;;  %v9474_v0 = vadd.f32 %v2106_v50, %v1334_v53  ;;  %v7869_v28 = vpop.f32.mrb[63].mxu0  ;;  %v7875_v62 = vpop.f32.mrb[63].mxu1 }
 0x5ab   :  { %v10481_v62 = vld [vmem:[#allocation17_spill] sm:$0xff] }
 0x5af   :  { %v1884_v31 = vpop.f32.mrb[64].mxu0  ;;  %v1927_v51 = vpop.f32.mrb[64].mxu1 }
 0x5b0   :  { %v2107_v39 = vmul.f32 %v9283_v20, %v1884_v31  ;;  %v2108_v12 = vmul.f32 %v9283_v20, %v1927_v51  ;;  %v7880_v25 = vpop.f32.mrb[65].mxu0  ;;  %v7886_v8 = vpop.f32.mrb[65].mxu1  ;;  %v1339_v31 = vmul.f32 %v9098_v21, %v10481_v62  ;;  %v10482_v51 = vld [vmem:[#allocation18_spill] sm:$0xff] }
 0x5b1   :  { %v1887_v17 = vpop.f32.mrb[66].mxu0  ;;  %v1930_v42 = vpop.f32.mrb[66].mxu1 }
 0x5b2   :  { %v9482_v43 = vadd.f32 %v2107_v39, %v1335_v22  ;;  %v9484_v54 = vadd.f32 %v2108_v12, %v1336_v26  ;;  %v7881_v57 = vpop.f32.mrb[67].mxu0  ;;  %v7887_v30 = vpop.f32.mrb[67].mxu1  ;;  %v1340_v22 = vmul.f32 %v9098_v21, %v10482_v51 }
 0x5b7   :  { %v1970_v58 = vpop.f32.mrb[68].mxu0  ;;  %v2013_v59 = vpop.f32.mrb[68].mxu1 }
 0x5b8   :  { %v2109_v40 = vmul.f32 %v9283_v20, %v1970_v58  ;;  %v2110_v63 = vmul.f32 %v9283_v20, %v2013_v59  ;;  %v7892_v10 = vpop.f32.mrb[69].mxu0  ;;  %v7898_v52 = vpop.f32.mrb[69].mxu1 }
 0x5b9   :  { %v1973_v53 = vpop.f32.mrb[70].mxu0  ;;  %v2016_v34 = vpop.f32.mrb[70].mxu1 }
 0x5ba   :  { %v9492_v50 = vadd.f32 %v2109_v40, %v1337_v60  ;;  %v9494_v27 = vadd.f32 %v2110_v63, %v1338_v32  ;;  %v7893_v2 = vpop.f32.mrb[71].mxu0  ;;  %v7899_v16 = vpop.f32.mrb[71].mxu1 }
 0x5bc   :  { %10479 = vst [vmem:[#allocation15_spill] sm:$0xff] %v9492_v50  ;;  %10480 = vst [vmem:[#allocation16_spill] sm:$0xff] %v9494_v27 }
 0x5bf   :  { %v2056_v3 = vpop.f32.mrb[72].mxu0  ;;  %v2099_v28 = vpop.f32.mrb[72].mxu1 }
 0x5c0   :  { %v2111_v26 = vmul.f32 %v9283_v20, %v2056_v3  ;;  %v2112_v39 = vmul.f32 %v9283_v20, %v2099_v28  ;;  %v7904_v12 = vpop.f32.mrb[73].mxu0  ;;  %v7910_v25 = vpop.f32.mrb[73].mxu1 }
 0x5c1   :  { %v2059_v8 = vpop.f32.mrb[74].mxu0  ;;  %v2102_v17 = vpop.f32.mrb[74].mxu1 }
 0x5c2   :  { %v9502_v42 = vadd.f32 %v2111_v26, %v1339_v31  ;;  %v9504_v57 = vadd.f32 %v2112_v39, %v1340_v22  ;;  %v7905_v30 = vpop.f32.mrb[75].mxu0  ;;  %v7911_v58 = vpop.f32.mrb[75].mxu1 }
 0x5c4   :  { %10483 = vst [vmem:[#allocation17_spill] sm:$0xff] %v9502_v42  ;;  %10484 = vst [vmem:[#allocation18_spill] sm:$0xff] %v9504_v57 }
 0x5c8   :  { %v2176_v59 = vpop.f32.mrb[76].mxu0  ;;  %v2216_v23 = vpop.f32.mrb[76].mxu1 }
 0x5c9   :  { %v7916_v60 = vpop.f32.mrb[77].mxu0  ;;  %v7922_v29 = vpop.f32.mrb[77].mxu1  ;;  %v2462_v31 = vsel %vm892_vm3, %v2176_v59, -inf  ;;  %v2463_v51 = vsel %vm892_vm3, %v2216_v23, -inf }
 0x5ca   :  { %v2179_v32 = vpop.f32.mrb[78].mxu0  ;;  %v2219_v21 = vpop.f32.mrb[78].mxu1 }
 0x5cb   :  { %v7917_v40 = vpop.f32.mrb[79].mxu0  ;;  %v7923_v63 = vpop.f32.mrb[79].mxu1 }
 0x5d0   :  { %v2256_v10 = vpop.f32.mrb[80].mxu0  ;;  %v2296_v20 = vpop.f32.mrb[80].mxu1 }
 0x5d1   :  { %v7928_v52 = vpop.f32.mrb[81].mxu0  ;;  %v7934_v53 = vpop.f32.mrb[81].mxu1  ;;  %v2464_v40 = vsel %vm892_vm3, %v2256_v10, -inf  ;;  %v2465_v63 = vsel %vm892_vm3, %v2296_v20, -inf }
 0x5d2   :  { %v2259_v34 = vpop.f32.mrb[82].mxu0  ;;  %v2299_v2 = vpop.f32.mrb[82].mxu1 }
 0x5d3   :  { %v7929_v16 = vpop.f32.mrb[83].mxu0  ;;  %v7935_v3 = vpop.f32.mrb[83].mxu1 }
 0x5d8   :  { %v2336_v28 = vpop.f32.mrb[84].mxu0  ;;  %v2376_v62 = vpop.f32.mrb[84].mxu1 }
 0x5d9   :  { %v2466_v22 = vsel %vm892_vm3, %v2336_v28, -inf  ;;  %v2468_v26 = vsel %vm892_vm3, %v2376_v62, -inf  ;;  %v7940_v39 = vpop.f32.mrb[85].mxu0  ;;  %v7946_v12 = vpop.f32.mrb[85].mxu1 }
 0x5da   :  { %v2467_v25 = vmax.f32 %v2462_v31, %v2466_v22  ;;  %v2469_v8 = vmax.f32 %v2463_v51, %v2468_v26  ;;  %v2339_v17 = vpop.f32.mrb[86].mxu0  ;;  %v2379_v30 = vpop.f32.mrb[86].mxu1 }
 0x5db   :  { %v7941_v58 = vpop.f32.mrb[87].mxu0  ;;  %v7947_v60 = vpop.f32.mrb[87].mxu1 }
 0x5dc   :  { %v2474_v29 = vmax.f32 %v2467_v25, %v2469_v8 }
 0x5e0   :  { %v2416_v32 = vpop.f32.mrb[88].mxu0  ;;  %v2456_v21 = vpop.f32.mrb[88].mxu1 }
 0x5e1   :  { %v2470_v52 = vsel %vm892_vm3, %v2416_v32, -inf  ;;  %v2472_v53 = vsel %vm892_vm3, %v2456_v21, -inf  ;;  %v7952_v34 = vpop.f32.mrb[89].mxu0  ;;  %v7958_v2 = vpop.f32.mrb[89].mxu1 }
 0x5e2   :  { %v2471_v16 = vmax.f32 %v2464_v40, %v2470_v52  ;;  %v2473_v3 = vmax.f32 %v2465_v63, %v2472_v53  ;;  %v2419_v31 = vpop.f32.mrb[90].mxu0  ;;  %v2459_v51 = vpop.f32.mrb[90].mxu1 }
 0x5e3   :  { %v7953_v22 = vpop.f32.mrb[91].mxu0  ;;  %v7959_v26 = vpop.f32.mrb[91].mxu1 }
 0x5e4   :  { %v2475_v39 = vmax.f32 %v2471_v16, %v2473_v3 }
 0x5e6   :  { %v2476_v12 = vmax.f32 %v2474_v29, %v2475_v39 }
 0x5e8   :  { %v2477_v25 = vsub.f32 %v2176_v59, %v2476_v12  ;;  %v2478_v8 = vsub.f32 %v2216_v23, %v2476_v12  ;;  %v2479_v17 = vsub.f32 %v2256_v10, %v2476_v12  ;;  %v2480_v30 = vsub.f32 %v2296_v20, %v2476_v12 }
 0x5e9   :  { %v2481_v58 = vsub.f32 %v2336_v28, %v2476_v12  ;;  %v2482_v60 = vsub.f32 %v2376_v62, %v2476_v12  ;;  %v2483_v57 = vsub.f32 %v2416_v32, %v2476_v12  ;;  %v2484_v42 = vsub.f32 %v2456_v21, %v2476_v12 }
 0x5ea   :  { %v2485_v27 = vmul.f32 1.442695, %v2477_v25  ;;  %v2487_v50 = vmul.f32 1.442695, %v2478_v8  ;;  %v2489_v34 = vmul.f32 1.442695, %v2479_v17 }
 0x5eb   :  { %v2491_v2 = vmul.f32 1.442695, %v2480_v30  ;;  %v2493_v40 = vmul.f32 1.442695, %v2481_v58  ;;  %v2495_v63 = vmul.f32 1.442695, %v2482_v60 }
 0x5ec   :  { %8651 = vpow2.f32 %v2485_v27  ;;  %v2497_v29 = vmul.f32 1.442695, %v2483_v57  ;;  %v2499_v59 = vmul.f32 1.442695, %v2484_v42 }
 0x5ed   :  { %8653 = vpow2.f32 %v2487_v50 }
 0x5ee   :  { %8655 = vpow2.f32 %v2489_v34 }
 0x5ef   :  { %8657 = vpow2.f32 %v2491_v2 }
 0x5f0   :  { %8659 = vpow2.f32 %v2493_v40 }
 0x5f1   :  { %8661 = vpow2.f32 %v2495_v63 }
 0x5f2   :  { %8663 = vpow2.f32 %v2497_v29 }
 0x5f3   :  { %8665 = vpow2.f32 %v2499_v59 }
 0x5f6   :  { %v8652_v23 = vpop.eup %8651 }
 0x5f7   :  { %v8654_v10 = vpop.eup %8653  ;;  %v2501_v20 = vsel %vm892_vm3, %v8652_v23, 0.0 }
 0x5f8   :  { %v8656_v28 = vpop.eup %8655  ;;  %v2502_v62 = vsel %vm892_vm3, %v8654_v10, 0.0 }
 0x5f9   :  { %v8658_v32 = vpop.eup %8657  ;;  %v2503_v27 = vadd.f32 %v2502_v62, %v2501_v20  ;;  %v2504_v50 = vsel %vm892_vm3, %v8656_v28, 0.0 }
 0x5fa   :  { %v8660_v21 = vpop.eup %8659  ;;  %v2506_v53 = vsel %vm892_vm3, %v8658_v32, 0.0 }
 0x5fb   :  { %v2505_v52 = vadd.f32 %v2504_v50, %v2503_v27  ;;  %v8662_v57 = vpop.eup %8661  ;;  %v2508_v42 = vsel %vm892_vm3, %v8660_v21, 0.0  ;;  %v9557_v50 = vsel %vm2895_vm12, 1.0, %v10476_v11 }
 0x5fc   :  { %v8664_v3 = vpop.eup %8663  ;;  %v2510_v51 = vsel %vm892_vm3, %v8662_v57, 0.0 }
 0x5fd   :  { %v2507_v16 = vadd.f32 %v2506_v53, %v2505_v52  ;;  %v8666_v22 = vpop.eup %8665  ;;  %v2512_v39 = vsel %vm892_vm3, %v8664_v3, 0.0  ;;  %v2899_v52 = vmul.f32 %v9557_v50, %v9116_v41 }
 0x5fe   :  { %v2514_v25 = vsel %vm892_vm3, %v8666_v22, 0.0 }
 0x5ff   :  { %v2509_v31 = vadd.f32 %v2508_v42, %v2507_v16  ;;  %v2900_v16 = vmul.f32 %v9557_v50, %v9122_v45  ;;  %v2901_v42 = vmul.f32 %v9557_v50, %v9152_v4 }
 0x601   :  { %v2511_v26 = vadd.f32 %v2510_v51, %v2509_v31  ;;  %v2909_v31 = vpack.c.bf16 %v2901_v42, %v2901_v42  ;;  %v2902_v51 = vmul.f32 %v9557_v50, %v9157_v9 }
 0x603   :  { %v2513_v12 = vadd.f32 %v2512_v39, %v2511_v26  ;;  %v2910_v26 = vpack.c.bf16 %v2902_v51, %v2902_v51 }
 0x605   :  { %v2515_v8 = vadd.f32 %v2514_v25, %v2513_v12  ;;  %v2904_v12 = vmul.f32 %v9557_v50, %v9184_v38  ;;  %v2905_v25 = vmul.f32 %v9557_v50, %v9206_v5 }
 0x607   :  { %8667 = vrcp.f32 %v2515_v8  ;;  %v2912_v8 = vpack.c.bf16 %v2904_v12, %v2904_v12 }
 0x611   :  { %v8668_v17 = vpop.eup %8667 }
 0x612   :  { %v2517_v30 = vmul.f32 %v8668_v17, %v8652_v23  ;;  %v2518_v58 = vmul.f32 %v8668_v17, %v8654_v10  ;;  %v2519_v60 = vmul.f32 %v8668_v17, %v8656_v28  ;;  %v2520_v34 = vmul.f32 %v8668_v17, %v8658_v32 }
 0x613   :  { %v2521_v2 = vmul.f32 %v8668_v17, %v8660_v21  ;;  %v2522_v40 = vmul.f32 %v8668_v17, %v8662_v57  ;;  %v2523_v63 = vmul.f32 %v8668_v17, %v8664_v3  ;;  %v2524_v29 = vmul.f32 %v8668_v17, %v8666_v22 }
 0x614   :  { %v2525_v59 = vpack.c.bf16 %v2517_v30, %v2517_v30  ;;  %v2526_v20 = vpack.c.bf16 %v2518_v58, %v2518_v58  ;;  %v2527_v23 = vpack.c.bf16 %v2519_v60, %v2519_v60  ;;  %v2528_v10 = vpack.c.bf16 %v2520_v34, %v2520_v34 }
 0x615   :  { %v2529_v28 = vpack.c.bf16 %v2521_v2, %v2521_v2  ;;  %v2530_v62 = vpack.c.bf16 %v2522_v40, %v2522_v40  ;;  %v2531_v32 = vpack.c.bf16 %v2523_v63, %v2523_v63  ;;  %v2532_v27 = vpack.c.bf16 %v2524_v29, %v2524_v29 }
 0x616   :  { %7963 = vmatmul.mubr.msk.bf16.vlgmr.msra.gmra.mrb[92].mxu0 %vm892_vm3, %v2525_v59  ;;  %7969 = vmatmul.mubr.msk.bf16.vlgmr.msra.gmra.mrb[92].mxu1 %vm892_vm3, %v2526_v20  ;;  %v2898_v21 = vmul.f32 %v9557_v50, %v9093_v15  ;;  %v2907_v57 = vpack.c.bf16 %v2899_v52, %v2899_v52  ;;  %v2908_v3 = vpack.c.bf16 %v2900_v16, %v2900_v16 }
 0x617   :  { %7973 = vmatpush3.bf16.msra.mxu0 %v9113_v36  ;;  %7979 = vmatpush3.bf16.msra.mxu1 %v9120_v44  ;;  %v2903_v22 = vmul.f32 %v9557_v50, %v9182_v37  ;;  %v2913_v17 = vpack.c.bf16 %v2905_v25, %v2905_v25 }
 0x618   :  { %7974 = vmatprep.mubr.msk.bf16.mxu0 %vm8929_vm0, %v10476_v11  ;;  %7980 = vmatprep.mubr.msk.bf16.mxu1 %vm8929_vm0, %v10476_v11  ;;  %v2906_v53 = vpack.c.bf16 %v2898_v21, %v2898_v21 }
 0x619   :  { %7984 = vmatprep.subr.bf16.mxu0 %v10476_v11  ;;  %7990 = vmatprep.subr.bf16.mxu1 %v10476_v11  ;;  %v2911_v39 = vpack.c.bf16 %v2903_v22, %v2903_v22 }
 0x61e   :  { %7975 = vmatmul.mubr.msk.bf16.vlgmr.msra.gmra.mrb[96].mxu0 %vm892_vm3, %v2527_v23  ;;  %7981 = vmatmul.mubr.msk.bf16.vlgmr.msra.gmra.mrb[96].mxu1 %vm892_vm3, %v2528_v10 }
 0x61f   :  { %7985 = vmatpush3.bf16.msra.mxu0 %v9149_v1  ;;  %7991 = vmatpush3.bf16.msra.mxu1 %v9162_v14 }
 0x620   :  { %7986 = vmatprep.mubr.msk.bf16.mxu0 %vm8929_vm0, %v10476_v11  ;;  %7992 = vmatprep.mubr.msk.bf16.mxu1 %vm8929_vm0, %v10476_v11 }
 0x621   :  { %7996 = vmatprep.subr.bf16.mxu0 %v10476_v11  ;;  %8002 = vmatprep.subr.bf16.mxu1 %v10476_v11 }
 0x626   :  { %7987 = vmatmul.mubr.msk.bf16.vlgmr.msra.gmra.mrb[100].mxu0 %vm892_vm3, %v2529_v28  ;;  %7993 = vmatmul.mubr.msk.bf16.vlgmr.msra.gmra.mrb[100].mxu1 %vm892_vm3, %v2530_v62 }
 0x627   :  { %7997 = vmatpush3.bf16.msra.mxu0 %v9145_v61  ;;  %8003 = vmatpush3.bf16.msra.mxu1 %v9155_v7 }
 0x628   :  { %7998 = vmatprep.mubr.msk.bf16.mxu0 %vm8929_vm0, %v10476_v11  ;;  %8004 = vmatprep.mubr.msk.bf16.mxu1 %vm8929_vm0, %v10476_v11 }
 0x629   :  { %8008 = vmatprep.subr.bf16.mxu0 %v10476_v11  ;;  %8014 = vmatprep.subr.bf16.mxu1 %v10476_v11 }
 0x62e   :  { %7999 = vmatmul.mubr.msk.bf16.vlgmr.msra.gmra.mrb[104].mxu0 %vm892_vm3, %v2531_v32  ;;  %8005 = vmatmul.mubr.msk.bf16.vlgmr.msra.gmra.mrb[104].mxu1 %vm892_vm3, %v2532_v27 }
 0x62f   :  { %8010 = vmatprep.mubr.msk.bf16.mxu0 %vm8929_vm0, %v10476_v11  ;;  %8016 = vmatprep.mubr.msk.bf16.mxu1 %vm8929_vm0, %v10476_v11 }
 0x630   :  { %8009 = vmatpush3.bf16.xpose.msra.mxu0 %v9095_v19  ;;  %8015 = vmatpush3.bf16.xpose.msra.mxu1 %v9124_v48 }
 0x631   :  { %8020 = vmatprep.subr.bf16.mxu0 %v10476_v11  ;;  %8026 = vmatprep.subr.bf16.mxu1 %v10476_v11 }
 0x637   :  { %8011 = vmatmul.mubr.bf16.vlgmr.msra.gmra.mrb[108].mxu0 %v2906_v53  ;;  %8017 = vmatmul.mubr.bf16.vlgmr.msra.gmra.mrb[108].mxu1 %v2907_v57 }
 0x638   :  { %8021 = vmatpush3.bf16.xpose.msra.mxu0 %v9126_v49  ;;  %8027 = vmatpush3.bf16.xpose.msra.mxu1 %v9159_v13 }
 0x639   :  { %8022 = vmatprep.mubr.msk.bf16.mxu0 %vm8929_vm0, %v10476_v11  ;;  %8028 = vmatprep.mubr.msk.bf16.mxu1 %vm8929_vm0, %v10476_v11 }
 0x63a   :  { %8032 = vmatprep.subr.bf16.mxu0 %v10476_v11  ;;  %8038 = vmatprep.subr.bf16.mxu1 %v10476_v11 }
 0x63f   :  { %8023 = vmatmul.mubr.bf16.vlgmr.msra.gmra.mrb[112].mxu0 %v2908_v3  ;;  %8029 = vmatmul.mubr.bf16.vlgmr.msra.gmra.mrb[112].mxu1 %v2909_v31 }
 0x640   :  { %8033 = vmatpush3.bf16.xpose.msra.mxu0 %v9164_v18  ;;  %8039 = vmatpush3.bf16.xpose.msra.mxu1 %v9186_v46 }
 0x641   :  { %8034 = vmatprep.mubr.msk.bf16.mxu0 %vm8929_vm0, %v10476_v11  ;;  %8040 = vmatprep.mubr.msk.bf16.mxu1 %vm8929_vm0, %v10476_v11 }
 0x642   :  { %8044 = vmatprep.subr.bf16.mxu0 %v10476_v11  ;;  %8050 = vmatprep.subr.bf16.mxu1 %v10476_v11 }
 0x647   :  { %8035 = vmatmul.mubr.bf16.vlgmr.msra.gmra.mrb[116].mxu0 %v2910_v26  ;;  %8041 = vmatmul.mubr.bf16.vlgmr.msra.gmra.mrb[116].mxu1 %v2911_v39 }
 0x648   :  { %8045 = vmatpush3.bf16.xpose.msra.mxu0 %v9188_v47  ;;  %8051 = vmatpush3.bf16.xpose.msra.mxu1 %v9208_v55 }
 0x649   :  { %8046 = vmatprep.mubr.msk.bf16.mxu0 %vm8929_vm0, %v10476_v11  ;;  %8052 = vmatprep.mubr.msk.bf16.mxu1 %vm8929_vm0, %v10476_v11 }
 0x64a   :  { %8056 = vmatprep.subr.bf16.mxu0 %v10476_v11  ;;  %8062 = vmatprep.subr.bf16.mxu1 %v10476_v11 }
 0x64f   :  { %8047 = vmatmul.mubr.bf16.vlgmr.msra.gmra.mrb[120].mxu0 %v2912_v8  ;;  %8053 = vmatmul.mubr.bf16.vlgmr.msra.gmra.mrb[120].mxu1 %v2913_v17  ;;  %v10485_v8 = vld [vmem:[#allocation15_spill] sm:$0xff] }
 0x650   :  { %8057 = vmatpush3.bf16.msra.mxu0 %v9211_v56  ;;  %8063 = vmatpush3.bf16.msra.mxu1 %v9226_v24 }
 0x651   :  { %8058 = vmatprep.mubr.msk.bf16.mxu0 %vm8929_vm0, %v10476_v11  ;;  %8064 = vmatprep.mubr.msk.bf16.mxu1 %vm8929_vm0, %v10476_v11 }
 0x652   :  { %8068 = vmatprep.subr.bf16.mxu0 %v10476_v11  ;;  %8074 = vmatprep.subr.bf16.mxu1 %v10476_v11 }
 0x6e9   :  { %v2570_v30 = vpop.f32.mrb[92].mxu0  ;;  %v2613_v58 = vpop.f32.mrb[92].mxu1 }
 0x6ea   :  { %v2877_v60 = vmul.f32 %v9408_v33, %v2570_v30  ;;  %v2878_v34 = vmul.f32 %v9408_v33, %v2613_v58  ;;  %v7964_v2 = vpop.f32.mrb[93].mxu0  ;;  %v7970_v40 = vpop.f32.mrb[93].mxu1 }
 0x6eb   :  { %v2573_v63 = vpop.f32.mrb[94].mxu0  ;;  %v2616_v29 = vpop.f32.mrb[94].mxu1 }
 0x6ec   :  { %v9618_v59 = vadd.f32 %v2877_v60, %v9472_v35  ;;  %v9621_v20 = vadd.f32 %v2878_v34, %v9474_v0  ;;  %v7965_v23 = vpop.f32.mrb[95].mxu0  ;;  %v7971_v10 = vpop.f32.mrb[95].mxu1 }
 0x6f1   :  { %v2656_v28 = vpop.f32.mrb[96].mxu0  ;;  %v2699_v62 = vpop.f32.mrb[96].mxu1 }
 0x6f2   :  { %v2879_v32 = vmul.f32 %v9408_v33, %v2656_v28  ;;  %v2880_v27 = vmul.f32 %v9408_v33, %v2699_v62  ;;  %v7976_v21 = vpop.f32.mrb[97].mxu0  ;;  %v7982_v52 = vpop.f32.mrb[97].mxu1  ;;  %v10489_v28 = vld [vmem:[#allocation17_spill] sm:$0xff] }
 0x6f3   :  { %v2659_v53 = vpop.f32.mrb[98].mxu0  ;;  %v2702_v57 = vpop.f32.mrb[98].mxu1 }
 0x6f4   :  { %v9626_v16 = vadd.f32 %v2879_v32, %v9482_v43  ;;  %v9629_v35 = vadd.f32 %v2880_v27, %v9484_v54  ;;  %v7977_v0 = vpop.f32.mrb[99].mxu0  ;;  %v7983_v42 = vpop.f32.mrb[99].mxu1  ;;  %v10487_v43 = vld [vmem:[#allocation16_spill] sm:$0xff]  ;;  %v10491_v32 = vld [vmem:[#allocation18_spill] sm:$0xff] }
 0x6f9   :  { %v2742_v3 = vpop.f32.mrb[100].mxu0  ;;  %v2785_v31 = vpop.f32.mrb[100].mxu1 }
 0x6fa   :  { %v2881_v51 = vmul.f32 %v9408_v33, %v2742_v3  ;;  %v2882_v22 = vmul.f32 %v9408_v33, %v2785_v31  ;;  %v7988_v26 = vpop.f32.mrb[101].mxu0  ;;  %v7994_v39 = vpop.f32.mrb[101].mxu1 }
 0x6fb   :  { %v2745_v12 = vpop.f32.mrb[102].mxu0  ;;  %v2788_v25 = vpop.f32.mrb[102].mxu1 }
 0x6fc   :  { %v9634_v17 = vadd.f32 %v2881_v51, %v10485_v8  ;;  %v9637_v30 = vadd.f32 %v2882_v22, %v10487_v43  ;;  %v7989_v54 = vpop.f32.mrb[103].mxu0  ;;  %v7995_v58 = vpop.f32.mrb[103].mxu1 }
 0x6fe   :  { %10486 = vst [vmem:[#allocation15_spill] sm:$0xff] %v9634_v17  ;;  %10488 = vst [vmem:[#allocation16_spill] sm:$0xff] %v9637_v30 }
 0x701   :  { %v2828_v60 = vpop.f32.mrb[104].mxu0  ;;  %v2871_v34 = vpop.f32.mrb[104].mxu1 }
 0x702   :  { %v2883_v2 = vmul.f32 %v9408_v33, %v2828_v60  ;;  %v2884_v40 = vmul.f32 %v9408_v33, %v2871_v34  ;;  %v8000_v63 = vpop.f32.mrb[105].mxu0  ;;  %v8006_v29 = vpop.f32.mrb[105].mxu1 }
 0x703   :  { %v2831_v23 = vpop.f32.mrb[106].mxu0  ;;  %v2874_v10 = vpop.f32.mrb[106].mxu1 }
 0x704   :  { %v9642_v62 = vadd.f32 %v2883_v2, %v10489_v28  ;;  %v9645_v27 = vadd.f32 %v2884_v40, %v10491_v32  ;;  %v8001_v21 = vpop.f32.mrb[107].mxu0  ;;  %v8007_v52 = vpop.f32.mrb[107].mxu1 }
 0x706   :  { %10490 = vst [vmem:[#allocation17_spill] sm:$0xff] %v9642_v62  ;;  %10492 = vst [vmem:[#allocation18_spill] sm:$0xff] %v9645_v27 }
 0x70a   :  { %v2948_v53 = vpop.f32.mrb[108].mxu0  ;;  %v2988_v57 = vpop.f32.mrb[108].mxu1 }
 0x70b   :  { %v8012_v0 = vpop.f32.mrb[109].mxu0  ;;  %v8018_v42 = vpop.f32.mrb[109].mxu1  ;;  %v3234_v34 = vsel %vm892_vm3, %v2948_v53, -inf  ;;  %v3235_v2 = vsel %vm892_vm3, %v2988_v57, -inf }
 0x70c   :  { %v2951_v3 = vpop.f32.mrb[110].mxu0  ;;  %v2991_v31 = vpop.f32.mrb[110].mxu1 }
 0x70d   :  { %v8013_v51 = vpop.f32.mrb[111].mxu0  ;;  %v8019_v33 = vpop.f32.mrb[111].mxu1 }
 0x712   :  { %v3028_v22 = vpop.f32.mrb[112].mxu0  ;;  %v3068_v26 = vpop.f32.mrb[112].mxu1 }
 0x713   :  { %v8024_v39 = vpop.f32.mrb[113].mxu0  ;;  %v8030_v12 = vpop.f32.mrb[113].mxu1  ;;  %v3236_v51 = vsel %vm892_vm3, %v3028_v22, -inf  ;;  %v3237_v33 = vsel %vm892_vm3, %v3068_v26, -inf }
 0x714   :  { %v3031_v25 = vpop.f32.mrb[114].mxu0  ;;  %v3071_v8 = vpop.f32.mrb[114].mxu1 }
 0x715   :  { %v8025_v43 = vpop.f32.mrb[115].mxu0  ;;  %v8031_v54 = vpop.f32.mrb[115].mxu1 }
 0x71a   :  { %v3108_v58 = vpop.f32.mrb[116].mxu0  ;;  %v3148_v60 = vpop.f32.mrb[116].mxu1 }
 0x71b   :  { %v3238_v40 = vsel %vm892_vm3, %v3108_v58, -inf  ;;  %v3240_v63 = vsel %vm892_vm3, %v3148_v60, -inf  ;;  %v8036_v29 = vpop.f32.mrb[117].mxu0  ;;  %v8042_v23 = vpop.f32.mrb[117].mxu1 }
 0x71c   :  { %v3239_v10 = vmax.f32 %v3234_v34, %v3238_v40  ;;  %v3241_v28 = vmax.f32 %v3235_v2, %v3240_v63  ;;  %v3111_v32 = vpop.f32.mrb[118].mxu0  ;;  %v3151_v21 = vpop.f32.mrb[118].mxu1 }
 0x71d   :  { %v8037_v52 = vpop.f32.mrb[119].mxu0  ;;  %v8043_v0 = vpop.f32.mrb[119].mxu1 }
 0x71e   :  { %v3246_v42 = vmax.f32 %v3239_v10, %v3241_v28 }
 0x722   :  { %v3188_v3 = vpop.f32.mrb[120].mxu0  ;;  %v3228_v31 = vpop.f32.mrb[120].mxu1 }
 0x723   :  { %v3242_v39 = vsel %vm892_vm3, %v3188_v3, -inf  ;;  %v3244_v12 = vsel %vm892_vm3, %v3228_v31, -inf  ;;  %v8048_v25 = vpop.f32.mrb[121].mxu0  ;;  %v8054_v8 = vpop.f32.mrb[121].mxu1 }
 0x724   :  { %v3243_v43 = vmax.f32 %v3236_v51, %v3242_v39  ;;  %v3245_v54 = vmax.f32 %v3237_v33, %v3244_v12  ;;  %v3191_v34 = vpop.f32.mrb[122].mxu0  ;;  %v3231_v2 = vpop.f32.mrb[122].mxu1 }
 0x725   :  { %v8049_v40 = vpop.f32.mrb[123].mxu0  ;;  %v8055_v63 = vpop.f32.mrb[123].mxu1 }
 0x726   :  { %v3247_v29 = vmax.f32 %v3243_v43, %v3245_v54 }
 0x728   :  { %v3248_v23 = vmax.f32 %v3246_v42, %v3247_v29 }
 0x72a   :  { %v3249_v10 = vsub.f32 %v2948_v53, %v3248_v23  ;;  %v3250_v28 = vsub.f32 %v2988_v57, %v3248_v23  ;;  %v3251_v32 = vsub.f32 %v3028_v22, %v3248_v23  ;;  %v3252_v21 = vsub.f32 %v3068_v26, %v3248_v23 }
 0x72b   :  { %v3253_v52 = vsub.f32 %v3108_v58, %v3248_v23  ;;  %v3254_v0 = vsub.f32 %v3148_v60, %v3248_v23  ;;  %v3255_v27 = vsub.f32 %v3188_v3, %v3248_v23  ;;  %v3256_v62 = vsub.f32 %v3228_v31, %v3248_v23 }
 0x72c   :  { %v3257_v30 = vmul.f32 1.442695, %v3249_v10  ;;  %v3259_v17 = vmul.f32 1.442695, %v3250_v28  ;;  %v3261_v25 = vmul.f32 1.442695, %v3251_v32 }
 0x72d   :  { %v3263_v8 = vmul.f32 1.442695, %v3252_v21  ;;  %v3265_v51 = vmul.f32 1.442695, %v3253_v52  ;;  %v3267_v33 = vmul.f32 1.442695, %v3254_v0 }
 0x72e   :  { %8669 = vpow2.f32 %v3257_v30  ;;  %v3269_v42 = vmul.f32 1.442695, %v3255_v27  ;;  %v3271_v53 = vmul.f32 1.442695, %v3256_v62 }
 0x72f   :  { %8671 = vpow2.f32 %v3259_v17 }
 0x730   :  { %8673 = vpow2.f32 %v3261_v25 }
 0x731   :  { %8675 = vpow2.f32 %v3263_v8 }
 0x732   :  { %8677 = vpow2.f32 %v3265_v51 }
 0x733   :  { %8679 = vpow2.f32 %v3267_v33 }
 0x734   :  { %8681 = vpow2.f32 %v3269_v42 }
 0x735   :  { %8683 = vpow2.f32 %v3271_v53 }
 0x738   :  { %v8670_v57 = vpop.eup %8669 }
 0x739   :  { %v8672_v22 = vpop.eup %8671  ;;  %v3273_v26 = vsel %vm892_vm3, %v8670_v57, 0.0 }
 0x73a   :  { %v8674_v58 = vpop.eup %8673  ;;  %v3274_v60 = vsel %vm892_vm3, %v8672_v22, 0.0 }
 0x73b   :  { %v8676_v3 = vpop.eup %8675  ;;  %v3275_v30 = vadd.f32 %v3274_v60, %v3273_v26  ;;  %v3276_v17 = vsel %vm892_vm3, %v8674_v58, 0.0 }
 0x73c   :  { %v8678_v31 = vpop.eup %8677  ;;  %v3278_v12 = vsel %vm892_vm3, %v8676_v3, 0.0 }
 0x73d   :  { %v3277_v39 = vadd.f32 %v3276_v17, %v3275_v30  ;;  %v8680_v27 = vpop.eup %8679  ;;  %v3280_v62 = vsel %vm892_vm3, %v8678_v31, 0.0  ;;  %v9698_v17 = vsel %vm3667_vm15, 1.0, %v10476_v11 }
 0x73e   :  { %v8682_v54 = vpop.eup %8681  ;;  %v3282_v2 = vsel %vm892_vm3, %v8680_v27, 0.0 }
 0x73f   :  { %v3279_v43 = vadd.f32 %v3278_v12, %v3277_v39  ;;  %v8684_v40 = vpop.eup %8683  ;;  %v3284_v29 = vsel %vm892_vm3, %v8682_v54, 0.0  ;;  %v3671_v39 = vmul.f32 %v9698_v17, %v9116_v41 }
 0x740   :  { %v3286_v10 = vsel %vm892_vm3, %v8684_v40, 0.0 }
 0x741   :  { %v3281_v34 = vadd.f32 %v3280_v62, %v3279_v43  ;;  %v3672_v43 = vmul.f32 %v9698_v17, %v9122_v45  ;;  %v3673_v62 = vmul.f32 %v9698_v17, %v9152_v4 }
 0x743   :  { %v3283_v63 = vadd.f32 %v3282_v2, %v3281_v34  ;;  %v3681_v34 = vpack.c.bf16 %v3673_v62, %v3673_v62  ;;  %v3674_v2 = vmul.f32 %v9698_v17, %v9157_v9 }
 0x745   :  { %v3285_v23 = vadd.f32 %v3284_v29, %v3283_v63  ;;  %v3682_v63 = vpack.c.bf16 %v3674_v2, %v3674_v2 }
 0x747   :  { %v3287_v28 = vadd.f32 %v3286_v10, %v3285_v23  ;;  %v3676_v23 = vmul.f32 %v9698_v17, %v9184_v38  ;;  %v3677_v10 = vmul.f32 %v9698_v17, %v9206_v5 }
 0x749   :  { %8685 = vrcp.f32 %v3287_v28  ;;  %v3684_v28 = vpack.c.bf16 %v3676_v23, %v3676_v23 }
 0x753   :  { %v8686_v32 = vpop.eup %8685 }
 0x754   :  { %v3289_v21 = vmul.f32 %v8686_v32, %v8670_v57  ;;  %v3290_v52 = vmul.f32 %v8686_v32, %v8672_v22  ;;  %v3291_v0 = vmul.f32 %v8686_v32, %v8674_v58  ;;  %v3292_v25 = vmul.f32 %v8686_v32, %v8676_v3 }
 0x755   :  { %v3293_v8 = vmul.f32 %v8686_v32, %v8678_v31  ;;  %v3294_v51 = vmul.f32 %v8686_v32, %v8680_v27  ;;  %v3295_v33 = vmul.f32 %v8686_v32, %v8682_v54  ;;  %v3296_v42 = vmul.f32 %v8686_v32, %v8684_v40 }
 0x756   :  { %v3297_v53 = vpack.c.bf16 %v3289_v21, %v3289_v21  ;;  %v3298_v26 = vpack.c.bf16 %v3290_v52, %v3290_v52  ;;  %v3299_v57 = vpack.c.bf16 %v3291_v0, %v3291_v0  ;;  %v3300_v22 = vpack.c.bf16 %v3292_v25, %v3292_v25 }
 0x757   :  { %v3301_v58 = vpack.c.bf16 %v3293_v8, %v3293_v8  ;;  %v3302_v60 = vpack.c.bf16 %v3294_v51, %v3294_v51  ;;  %v3303_v3 = vpack.c.bf16 %v3295_v33, %v3295_v33  ;;  %v3304_v30 = vpack.c.bf16 %v3296_v42, %v3296_v42 }
 0x758   :  { %8059 = vmatmul.mubr.msk.bf16.vlgmr.msra.gmra.mrb[124].mxu0 %vm892_vm3, %v3297_v53  ;;  %8065 = vmatmul.mubr.msk.bf16.vlgmr.msra.gmra.mrb[124].mxu1 %vm892_vm3, %v3298_v26  ;;  %v3670_v31 = vmul.f32 %v9698_v17, %v9093_v15  ;;  %v3679_v27 = vpack.c.bf16 %v3671_v39, %v3671_v39  ;;  %v3680_v54 = vpack.c.bf16 %v3672_v43, %v3672_v43 }
 0x759   :  { %8069 = vmatpush3.bf16.msra.mxu0 %v9113_v36  ;;  %8075 = vmatpush3.bf16.msra.mxu1 %v9120_v44  ;;  %v3675_v40 = vmul.f32 %v9698_v17, %v9182_v37  ;;  %v3685_v32 = vpack.c.bf16 %v3677_v10, %v3677_v10 }
 0x75a   :  { %8070 = vmatprep.mubr.msk.bf16.mxu0 %vm8929_vm0, %v10476_v11  ;;  %8076 = vmatprep.mubr.msk.bf16.mxu1 %vm8929_vm0, %v10476_v11  ;;  %v3678_v12 = vpack.c.bf16 %v3670_v31, %v3670_v31 }
 0x75b   :  { %8080 = vmatprep.subr.bf16.mxu0 %v10476_v11  ;;  %8086 = vmatprep.subr.bf16.mxu1 %v10476_v11  ;;  %v3683_v29 = vpack.c.bf16 %v3675_v40, %v3675_v40 }
 0x760   :  { %8071 = vmatmul.mubr.msk.bf16.vlgmr.msra.gmra.mrb[128].mxu0 %vm892_vm3, %v3299_v57  ;;  %8077 = vmatmul.mubr.msk.bf16.vlgmr.msra.gmra.mrb[128].mxu1 %vm892_vm3, %v3300_v22 }
 0x761   :  { %8081 = vmatpush3.bf16.msra.mxu0 %v9149_v1  ;;  %8087 = vmatpush3.bf16.msra.mxu1 %v9162_v14 }
 0x762   :  { %8082 = vmatprep.mubr.msk.bf16.mxu0 %vm8929_vm0, %v10476_v11  ;;  %8088 = vmatprep.mubr.msk.bf16.mxu1 %vm8929_vm0, %v10476_v11 }
 0x763   :  { %8092 = vmatprep.subr.bf16.mxu0 %v10476_v11  ;;  %8098 = vmatprep.subr.bf16.mxu1 %v10476_v11 }
 0x768   :  { %8083 = vmatmul.mubr.msk.bf16.vlgmr.msra.gmra.mrb[132].mxu0 %vm892_vm3, %v3301_v58  ;;  %8089 = vmatmul.mubr.msk.bf16.vlgmr.msra.gmra.mrb[132].mxu1 %vm892_vm3, %v3302_v60 }
 0x769   :  { %8093 = vmatpush3.bf16.msra.mxu0 %v9145_v61  ;;  %8099 = vmatpush3.bf16.msra.mxu1 %v9155_v7 }
 0x76a   :  { %8094 = vmatprep.mubr.msk.bf16.mxu0 %vm8929_vm0, %v10476_v11  ;;  %8100 = vmatprep.mubr.msk.bf16.mxu1 %vm8929_vm0, %v10476_v11 }
 0x76b   :  { %8104 = vmatprep.subr.bf16.mxu0 %v10476_v11  ;;  %8110 = vmatprep.subr.bf16.mxu1 %v10476_v11 }
 0x770   :  { %8095 = vmatmul.mubr.msk.bf16.vlgmr.msra.gmra.mrb[136].mxu0 %vm892_vm3, %v3303_v3  ;;  %8101 = vmatmul.mubr.msk.bf16.vlgmr.msra.gmra.mrb[136].mxu1 %vm892_vm3, %v3304_v30 }
 0x771   :  { %8106 = vmatprep.mubr.msk.bf16.mxu0 %vm8929_vm0, %v10476_v11  ;;  %8112 = vmatprep.mubr.msk.bf16.mxu1 %vm8929_vm0, %v10476_v11 }
 0x772   :  { %8105 = vmatpush3.bf16.xpose.msra.mxu0 %v9095_v19  ;;  %8111 = vmatpush3.bf16.xpose.msra.mxu1 %v9124_v48 }
 0x773   :  { %8116 = vmatprep.subr.bf16.mxu0 %v10476_v11  ;;  %8122 = vmatprep.subr.bf16.mxu1 %v10476_v11 }
 0x779   :  { %8107 = vmatmul.mubr.bf16.vlgmr.msra.gmra.mrb[140].mxu0 %v3678_v12  ;;  %8113 = vmatmul.mubr.bf16.vlgmr.msra.gmra.mrb[140].mxu1 %v3679_v27 }
 0x77a   :  { %8117 = vmatpush3.bf16.xpose.msra.mxu0 %v9126_v49  ;;  %8123 = vmatpush3.bf16.xpose.msra.mxu1 %v9159_v13 }
 0x77b   :  { %8118 = vmatprep.mubr.msk.bf16.mxu0 %vm8929_vm0, %v10476_v11  ;;  %8124 = vmatprep.mubr.msk.bf16.mxu1 %vm8929_vm0, %v10476_v11 }
 0x77c   :  { %8128 = vmatprep.subr.bf16.mxu0 %v10476_v11  ;;  %8134 = vmatprep.subr.bf16.mxu1 %v10476_v11 }
 0x781   :  { %8119 = vmatmul.mubr.bf16.vlgmr.msra.gmra.mrb[144].mxu0 %v3680_v54  ;;  %8125 = vmatmul.mubr.bf16.vlgmr.msra.gmra.mrb[144].mxu1 %v3681_v34 }
 0x782   :  { %8129 = vmatpush3.bf16.xpose.msra.mxu0 %v9164_v18  ;;  %8135 = vmatpush3.bf16.xpose.msra.mxu1 %v9186_v46 }
 0x783   :  { %8130 = vmatprep.mubr.msk.bf16.mxu0 %vm8929_vm0, %v10476_v11  ;;  %8136 = vmatprep.mubr.msk.bf16.mxu1 %vm8929_vm0, %v10476_v11 }
 0x784   :  { %8140 = vmatprep.subr.bf16.mxu0 %v10476_v11  ;;  %8146 = vmatprep.subr.bf16.mxu1 %v10476_v11 }
 0x789   :  { %8131 = vmatmul.mubr.bf16.vlgmr.msra.gmra.mrb[148].mxu0 %v3682_v63  ;;  %8137 = vmatmul.mubr.bf16.vlgmr.msra.gmra.mrb[148].mxu1 %v3683_v29 }
 0x78a   :  { %8141 = vmatpush3.bf16.xpose.msra.mxu0 %v9188_v47  ;;  %8147 = vmatpush3.bf16.xpose.msra.mxu1 %v9208_v55 }
 0x78b   :  { %8142 = vmatprep.mubr.msk.bf16.mxu0 %vm8929_vm0, %v10476_v11  ;;  %8148 = vmatprep.mubr.msk.bf16.mxu1 %vm8929_vm0, %v10476_v11 }
 0x78c   :  { %8152 = vmatprep.subr.bf16.mxu0 %v10476_v11  ;;  %8158 = vmatprep.subr.bf16.mxu1 %v10476_v11 }
 0x791   :  { %8143 = vmatmul.mubr.bf16.vlgmr.msra.gmra.mrb[152].mxu0 %v3684_v28  ;;  %8149 = vmatmul.mubr.bf16.vlgmr.msra.gmra.mrb[152].mxu1 %v3685_v32  ;;  %v10493_v28 = vld [vmem:[#allocation15_spill] sm:$0xff] }
 0x792   :  { %8153 = vmatpush3.bf16.msra.mxu0 %v9211_v56  ;;  %8159 = vmatpush3.bf16.msra.mxu1 %v9226_v24 }
 0x793   :  { %8154 = vmatprep.mubr.msk.bf16.mxu0 %vm8929_vm0, %v10476_v11  ;;  %8160 = vmatprep.mubr.msk.bf16.mxu1 %vm8929_vm0, %v10476_v11 }
 0x794   :  { %8164 = vmatprep.subr.bf16.mxu0 %v10476_v11  ;;  %8170 = vmatprep.subr.bf16.mxu1 %v10476_v11 }
 0x82b   :  { %v3342_v21 = vpop.f32.mrb[124].mxu0  ;;  %v3385_v52 = vpop.f32.mrb[124].mxu1 }
 0x82c   :  { %v3649_v0 = vmul.f32 %v9557_v50, %v3342_v21  ;;  %v3650_v25 = vmul.f32 %v9557_v50, %v3385_v52  ;;  %v8060_v8 = vpop.f32.mrb[125].mxu0  ;;  %v8066_v51 = vpop.f32.mrb[125].mxu1 }
 0x82d   :  { %v3345_v33 = vpop.f32.mrb[126].mxu0  ;;  %v3388_v42 = vpop.f32.mrb[126].mxu1 }
 0x82e   :  { %v9759_v53 = vadd.f32 %v3649_v0, %v9618_v59  ;;  %v9762_v26 = vadd.f32 %v3650_v25, %v9621_v20  ;;  %v8061_v57 = vpop.f32.mrb[127].mxu0  ;;  %v8067_v22 = vpop.f32.mrb[127].mxu1 }
 0x833   :  { %v3428_v58 = vpop.f32.mrb[128].mxu0  ;;  %v3471_v60 = vpop.f32.mrb[128].mxu1 }
 0x834   :  { %v3651_v3 = vmul.f32 %v9557_v50, %v3428_v58  ;;  %v3652_v30 = vmul.f32 %v9557_v50, %v3471_v60  ;;  %v8072_v31 = vpop.f32.mrb[129].mxu0  ;;  %v8078_v39 = vpop.f32.mrb[129].mxu1  ;;  %v10497_v58 = vld [vmem:[#allocation17_spill] sm:$0xff] }
 0x835   :  { %v3431_v12 = vpop.f32.mrb[130].mxu0  ;;  %v3474_v27 = vpop.f32.mrb[130].mxu1 }
 0x836   :  { %v9767_v43 = vadd.f32 %v3651_v3, %v9626_v16  ;;  %v9770_v59 = vadd.f32 %v3652_v30, %v9629_v35  ;;  %v8073_v20 = vpop.f32.mrb[131].mxu0  ;;  %v8079_v62 = vpop.f32.mrb[131].mxu1  ;;  %v10495_v16 = vld [vmem:[#allocation16_spill] sm:$0xff]  ;;  %v10499_v3 = vld [vmem:[#allocation18_spill] sm:$0xff] }
 0x83b   :  { %v3514_v54 = vpop.f32.mrb[132].mxu0  ;;  %v3557_v34 = vpop.f32.mrb[132].mxu1 }
 0x83c   :  { %v3653_v2 = vmul.f32 %v9557_v50, %v3514_v54  ;;  %v3654_v40 = vmul.f32 %v9557_v50, %v3557_v34  ;;  %v8084_v63 = vpop.f32.mrb[133].mxu0  ;;  %v8090_v29 = vpop.f32.mrb[133].mxu1 }
 0x83d   :  { %v3517_v23 = vpop.f32.mrb[134].mxu0  ;;  %v3560_v10 = vpop.f32.mrb[134].mxu1 }
 0x83e   :  { %v9775_v32 = vadd.f32 %v3653_v2, %v10493_v28  ;;  %v9778_v21 = vadd.f32 %v3654_v40, %v10495_v16  ;;  %v8085_v35 = vpop.f32.mrb[135].mxu0  ;;  %v8091_v52 = vpop.f32.mrb[135].mxu1 }
 0x840   :  { %10494 = vst [vmem:[#allocation15_spill] sm:$0xff] %v9775_v32  ;;  %10496 = vst [vmem:[#allocation16_spill] sm:$0xff] %v9778_v21 }
 0x843   :  { %v3600_v0 = vpop.f32.mrb[136].mxu0  ;;  %v3643_v25 = vpop.f32.mrb[136].mxu1 }
 0x844   :  { %v3655_v8 = vmul.f32 %v9557_v50, %v3600_v0  ;;  %v3656_v51 = vmul.f32 %v9557_v50, %v3643_v25  ;;  %v8096_v33 = vpop.f32.mrb[137].mxu0  ;;  %v8102_v42 = vpop.f32.mrb[137].mxu1 }
 0x845   :  { %v3603_v57 = vpop.f32.mrb[138].mxu0  ;;  %v3646_v22 = vpop.f32.mrb[138].mxu1 }
 0x846   :  { %v9783_v60 = vadd.f32 %v3655_v8, %v10497_v58  ;;  %v9786_v30 = vadd.f32 %v3656_v51, %v10499_v3  ;;  %v8097_v31 = vpop.f32.mrb[139].mxu0  ;;  %v8103_v39 = vpop.f32.mrb[139].mxu1 }
 0x848   :  { %10498 = vst [vmem:[#allocation17_spill] sm:$0xff] %v9783_v60  ;;  %10500 = vst [vmem:[#allocation18_spill] sm:$0xff] %v9786_v30 }
 0x84c   :  { %v3720_v12 = vpop.f32.mrb[140].mxu0  ;;  %v3760_v27 = vpop.f32.mrb[140].mxu1 }
 0x84d   :  { %v8108_v20 = vpop.f32.mrb[141].mxu0  ;;  %v8114_v62 = vpop.f32.mrb[141].mxu1  ;;  %v4006_v25 = vsel %vm892_vm3, %v3720_v12, -inf  ;;  %v4007_v8 = vsel %vm892_vm3, %v3760_v27, -inf }
 0x84e   :  { %v3723_v54 = vpop.f32.mrb[142].mxu0  ;;  %v3763_v34 = vpop.f32.mrb[142].mxu1 }
 0x84f   :  { %v8109_v2 = vpop.f32.mrb[143].mxu0  ;;  %v8115_v50 = vpop.f32.mrb[143].mxu1 }
 0x854   :  { %v3800_v40 = vpop.f32.mrb[144].mxu0  ;;  %v3840_v63 = vpop.f32.mrb[144].mxu1 }
 0x855   :  { %v8120_v29 = vpop.f32.mrb[145].mxu0  ;;  %v8126_v23 = vpop.f32.mrb[145].mxu1  ;;  %v4008_v2 = vsel %vm892_vm3, %v3800_v40, -inf  ;;  %v4009_v50 = vsel %vm892_vm3, %v3840_v63, -inf }
 0x856   :  { %v3803_v10 = vpop.f32.mrb[146].mxu0  ;;  %v3843_v28 = vpop.f32.mrb[146].mxu1 }
 0x857   :  { %v8121_v16 = vpop.f32.mrb[147].mxu0  ;;  %v8127_v35 = vpop.f32.mrb[147].mxu1 }
 0x85c   :  { %v3880_v52 = vpop.f32.mrb[148].mxu0  ;;  %v3920_v0 = vpop.f32.mrb[148].mxu1 }
 0x85d   :  { %v4010_v51 = vsel %vm892_vm3, %v3880_v52, -inf  ;;  %v4012_v33 = vsel %vm892_vm3, %v3920_v0, -inf  ;;  %v8132_v42 = vpop.f32.mrb[149].mxu0  ;;  %v8138_v57 = vpop.f32.mrb[149].mxu1 }
 0x85e   :  { %v4011_v22 = vmax.f32 %v4006_v25, %v4010_v51  ;;  %v4013_v58 = vmax.f32 %v4007_v8, %v4012_v33  ;;  %v3883_v3 = vpop.f32.mrb[150].mxu0  ;;  %v3923_v31 = vpop.f32.mrb[150].mxu1 }
 0x85f   :  { %v8133_v39 = vpop.f32.mrb[151].mxu0  ;;  %v8139_v20 = vpop.f32.mrb[151].mxu1 }
 0x860   :  { %v4018_v62 = vmax.f32 %v4011_v22, %v4013_v58 }
 0x864   :  { %v3960_v54 = vpop.f32.mrb[152].mxu0  ;;  %v4000_v34 = vpop.f32.mrb[152].mxu1 }
 0x865   :  { %v4014_v29 = vsel %vm892_vm3, %v3960_v54, -inf  ;;  %v4016_v23 = vsel %vm892_vm3, %v4000_v34, -inf  ;;  %v8144_v10 = vpop.f32.mrb[153].mxu0  ;;  %v8150_v28 = vpop.f32.mrb[153].mxu1 }
 0x866   :  { %v4015_v16 = vmax.f32 %v4008_v2, %v4014_v29  ;;  %v4017_v35 = vmax.f32 %v4009_v50, %v4016_v23  ;;  %v3963_v25 = vpop.f32.mrb[154].mxu0  ;;  %v4003_v8 = vpop.f32.mrb[154].mxu1 }
 0x867   :  { %v8145_v51 = vpop.f32.mrb[155].mxu0  ;;  %v8151_v33 = vpop.f32.mrb[155].mxu1 }
 0x868   :  { %v4019_v42 = vmax.f32 %v4015_v16, %v4017_v35 }
 0x86a   :  { %v4020_v57 = vmax.f32 %v4018_v62, %v4019_v42 }
 0x86c   :  { %v4021_v22 = vsub.f32 %v3720_v12, %v4020_v57  ;;  %v4022_v58 = vsub.f32 %v3760_v27, %v4020_v57  ;;  %v4023_v3 = vsub.f32 %v3800_v40, %v4020_v57  ;;  %v4024_v31 = vsub.f32 %v3840_v63, %v4020_v57 }
 0x86d   :  { %v4025_v39 = vsub.f32 %v3880_v52, %v4020_v57  ;;  %v4026_v20 = vsub.f32 %v3920_v0, %v4020_v57  ;;  %v4027_v30 = vsub.f32 %v3960_v54, %v4020_v57  ;;  %v4028_v60 = vsub.f32 %v4000_v34, %v4020_v57 }
 0x86e   :  { %v4029_v21 = vmul.f32 1.442695, %v4021_v22  ;;  %v4031_v32 = vmul.f32 1.442695, %v4022_v58  ;;  %v4033_v10 = vmul.f32 1.442695, %v4023_v3 }
 0x86f   :  { %v4035_v28 = vmul.f32 1.442695, %v4024_v31  ;;  %v4037_v2 = vmul.f32 1.442695, %v4025_v39  ;;  %v4039_v50 = vmul.f32 1.442695, %v4026_v20 }
 0x870   :  { %8687 = vpow2.f32 %v4029_v21  ;;  %v4041_v62 = vmul.f32 1.442695, %v4027_v30  ;;  %v4043_v12 = vmul.f32 1.442695, %v4028_v60 }
 0x871   :  { %8689 = vpow2.f32 %v4031_v32 }
 0x872   :  { %8691 = vpow2.f32 %v4033_v10 }
 0x873   :  { %8693 = vpow2.f32 %v4035_v28 }
 0x874   :  { %8695 = vpow2.f32 %v4037_v2 }
 0x875   :  { %8697 = vpow2.f32 %v4039_v50 }
 0x876   :  { %8699 = vpow2.f32 %v4041_v62 }
 0x877   :  { %8701 = vpow2.f32 %v4043_v12 }
 0x87a   :  { %v8688_v27 = vpop.eup %8687 }
 0x87b   :  { %v8690_v40 = vpop.eup %8689  ;;  %v4045_v63 = vsel %vm892_vm3, %v8688_v27, 0.0 }
 0x87c   :  { %v8692_v52 = vpop.eup %8691  ;;  %v4046_v0 = vsel %vm892_vm3, %v8690_v40, 0.0 }
 0x87d   :  { %v8694_v54 = vpop.eup %8693  ;;  %v4047_v21 = vadd.f32 %v4046_v0, %v4045_v63  ;;  %v4048_v32 = vsel %vm892_vm3, %v8692_v52, 0.0 }
 0x87e   :  { %v8696_v34 = vpop.eup %8695  ;;  %v4050_v23 = vsel %vm892_vm3, %v8694_v54, 0.0 }
 0x87f   :  { %v4049_v29 = vadd.f32 %v4048_v32, %v4047_v21  ;;  %v8698_v30 = vpop.eup %8697  ;;  %v4052_v60 = vsel %vm892_vm3, %v8696_v34, 0.0  ;;  %v9839_v32 = vsel %vm4439_vm4, 1.0, %v10476_v11 }
 0x880   :  { %v8700_v35 = vpop.eup %8699  ;;  %v4054_v8 = vsel %vm892_vm3, %v8698_v30, 0.0 }
 0x881   :  { %v4051_v16 = vadd.f32 %v4050_v23, %v4049_v29  ;;  %v8702_v51 = vpop.eup %8701  ;;  %v4056_v42 = vsel %vm892_vm3, %v8700_v35, 0.0  ;;  %v4443_v29 = vmul.f32 %v9839_v32, %v9116_v41 }
 0x882   :  { %v4058_v22 = vsel %vm892_vm3, %v8702_v51, 0.0 }
 0x883   :  { %v4053_v25 = vadd.f32 %v4052_v60, %v4051_v16  ;;  %v4444_v16 = vmul.f32 %v9839_v32, %v9122_v45  ;;  %v4445_v60 = vmul.f32 %v9839_v32, %v9152_v4 }
 0x885   :  { %v4055_v33 = vadd.f32 %v4054_v8, %v4053_v25  ;;  %v4453_v25 = vpack.c.bf16 %v4445_v60, %v4445_v60  ;;  %v4446_v8 = vmul.f32 %v9839_v32, %v9157_v9 }
 0x887   :  { %v4057_v57 = vadd.f32 %v4056_v42, %v4055_v33  ;;  %v4454_v33 = vpack.c.bf16 %v4446_v8, %v4446_v8 }
 0x889   :  { %v4059_v58 = vadd.f32 %v4058_v22, %v4057_v57  ;;  %v4448_v57 = vmul.f32 %v9839_v32, %v9184_v38  ;;  %v4449_v22 = vmul.f32 %v9839_v32, %v9206_v5 }
 0x88b   :  { %8703 = vrcp.f32 %v4059_v58  ;;  %v4456_v58 = vpack.c.bf16 %v4448_v57, %v4448_v57 }
 0x895   :  { %v8704_v3 = vpop.eup %8703 }
 0x896   :  { %v4061_v31 = vmul.f32 %v8704_v3, %v8688_v27  ;;  %v4062_v39 = vmul.f32 %v8704_v3, %v8690_v40  ;;  %v4063_v20 = vmul.f32 %v8704_v3, %v8692_v52  ;;  %v4064_v10 = vmul.f32 %v8704_v3, %v8694_v54 }
 0x897   :  { %v4065_v28 = vmul.f32 %v8704_v3, %v8696_v34  ;;  %v4066_v2 = vmul.f32 %v8704_v3, %v8698_v30  ;;  %v4067_v50 = vmul.f32 %v8704_v3, %v8700_v35  ;;  %v4068_v62 = vmul.f32 %v8704_v3, %v8702_v51 }
 0x898   :  { %v4069_v12 = vpack.c.bf16 %v4061_v31, %v4061_v31  ;;  %v4070_v63 = vpack.c.bf16 %v4062_v39, %v4062_v39  ;;  %v4071_v27 = vpack.c.bf16 %v4063_v20, %v4063_v20  ;;  %v4072_v40 = vpack.c.bf16 %v4064_v10, %v4064_v10 }
 0x899   :  { %v4073_v52 = vpack.c.bf16 %v4065_v28, %v4065_v28  ;;  %v4074_v0 = vpack.c.bf16 %v4066_v2, %v4066_v2  ;;  %v4075_v54 = vpack.c.bf16 %v4067_v50, %v4067_v50  ;;  %v4076_v21 = vpack.c.bf16 %v4068_v62, %v4068_v62 }
 0x89a   :  { %8155 = vmatmul.mubr.msk.bf16.vlgmr.msra.gmra.mrb[156].mxu0 %vm892_vm3, %v4069_v12  ;;  %8161 = vmatmul.mubr.msk.bf16.vlgmr.msra.gmra.mrb[156].mxu1 %vm892_vm3, %v4070_v63  ;;  %v4442_v34 = vmul.f32 %v9839_v32, %v9093_v15  ;;  %v4451_v30 = vpack.c.bf16 %v4443_v29, %v4443_v29  ;;  %v4452_v35 = vpack.c.bf16 %v4444_v16, %v4444_v16 }
 0x89b   :  { %8165 = vmatpush3.bf16.msra.mxu0 %v9113_v36  ;;  %8171 = vmatpush3.bf16.msra.mxu1 %v9120_v44  ;;  %v4447_v51 = vmul.f32 %v9839_v32, %v9182_v37  ;;  %v4457_v3 = vpack.c.bf16 %v4449_v22, %v4449_v22 }
 0x89c   :  { %8166 = vmatprep.mubr.msk.bf16.mxu0 %vm8929_vm0, %v10476_v11  ;;  %8172 = vmatprep.mubr.msk.bf16.mxu1 %vm8929_vm0, %v10476_v11  ;;  %v4450_v23 = vpack.c.bf16 %v4442_v34, %v4442_v34 }
 0x89d   :  { %8176 = vmatprep.subr.bf16.mxu0 %v10476_v11  ;;  %8182 = vmatprep.subr.bf16.mxu1 %v10476_v11  ;;  %v4455_v42 = vpack.c.bf16 %v4447_v51, %v4447_v51 }
 0x8a2   :  { %8167 = vmatmul.mubr.msk.bf16.vlgmr.msra.gmra.mrb[160].mxu0 %vm892_vm3, %v4071_v27  ;;  %8173 = vmatmul.mubr.msk.bf16.vlgmr.msra.gmra.mrb[160].mxu1 %vm892_vm3, %v4072_v40 }
 0x8a3   :  { %8177 = vmatpush3.bf16.msra.mxu0 %v9149_v1  ;;  %8183 = vmatpush3.bf16.msra.mxu1 %v9162_v14 }
 0x8a4   :  { %8178 = vmatprep.mubr.msk.bf16.mxu0 %vm8929_vm0, %v10476_v11  ;;  %8184 = vmatprep.mubr.msk.bf16.mxu1 %vm8929_vm0, %v10476_v11 }
 0x8a5   :  { %8188 = vmatprep.subr.bf16.mxu0 %v10476_v11  ;;  %8194 = vmatprep.subr.bf16.mxu1 %v10476_v11 }
 0x8aa   :  { %8179 = vmatmul.mubr.msk.bf16.vlgmr.msra.gmra.mrb[164].mxu0 %vm892_vm3, %v4073_v52  ;;  %8185 = vmatmul.mubr.msk.bf16.vlgmr.msra.gmra.mrb[164].mxu1 %vm892_vm3, %v4074_v0 }
 0x8ab   :  { %8189 = vmatpush3.bf16.msra.mxu0 %v9145_v61  ;;  %8195 = vmatpush3.bf16.msra.mxu1 %v9155_v7 }
 0x8ac   :  { %8190 = vmatprep.mubr.msk.bf16.mxu0 %vm8929_vm0, %v10476_v11  ;;  %8196 = vmatprep.mubr.msk.bf16.mxu1 %vm8929_vm0, %v10476_v11 }
 0x8ad   :  { %8200 = vmatprep.subr.bf16.mxu0 %v10476_v11  ;;  %8206 = vmatprep.subr.bf16.mxu1 %v10476_v11 }
 0x8b2   :  { %8191 = vmatmul.mubr.msk.bf16.vlgmr.msra.gmra.mrb[168].mxu0 %vm892_vm3, %v4075_v54  ;;  %8197 = vmatmul.mubr.msk.bf16.vlgmr.msra.gmra.mrb[168].mxu1 %vm892_vm3, %v4076_v21 }
 0x8b3   :  { %8202 = vmatprep.mubr.msk.bf16.mxu0 %vm8929_vm0, %v10476_v11  ;;  %8208 = vmatprep.mubr.msk.bf16.mxu1 %vm8929_vm0, %v10476_v11 }
 0x8b4   :  { %8201 = vmatpush3.bf16.xpose.msra.mxu0 %v9095_v19  ;;  %8207 = vmatpush3.bf16.xpose.msra.mxu1 %v9124_v48 }
 0x8b5   :  { %8212 = vmatprep.subr.bf16.mxu0 %v10476_v11  ;;  %8218 = vmatprep.subr.bf16.mxu1 %v10476_v11 }
 0x8bb   :  { %8203 = vmatmul.mubr.bf16.vlgmr.msra.gmra.mrb[172].mxu0 %v4450_v23  ;;  %8209 = vmatmul.mubr.bf16.vlgmr.msra.gmra.mrb[172].mxu1 %v4451_v30 }
 0x8bc   :  { %8213 = vmatpush3.bf16.xpose.msra.mxu0 %v9126_v49  ;;  %8219 = vmatpush3.bf16.xpose.msra.mxu1 %v9159_v13 }
 0x8bd   :  { %8214 = vmatprep.mubr.msk.bf16.mxu0 %vm8929_vm0, %v10476_v11  ;;  %8220 = vmatprep.mubr.msk.bf16.mxu1 %vm8929_vm0, %v10476_v11 }
 0x8be   :  { %8224 = vmatprep.subr.bf16.mxu0 %v10476_v11  ;;  %8230 = vmatprep.subr.bf16.mxu1 %v10476_v11 }
 0x8c3   :  { %8215 = vmatmul.mubr.bf16.vlgmr.msra.gmra.mrb[176].mxu0 %v4452_v35  ;;  %8221 = vmatmul.mubr.bf16.vlgmr.msra.gmra.mrb[176].mxu1 %v4453_v25 }
 0x8c4   :  { %8225 = vmatpush3.bf16.xpose.msra.mxu0 %v9164_v18  ;;  %8231 = vmatpush3.bf16.xpose.msra.mxu1 %v9186_v46 }
 0x8c5   :  { %8226 = vmatprep.mubr.msk.bf16.mxu0 %vm8929_vm0, %v10476_v11  ;;  %8232 = vmatprep.mubr.msk.bf16.mxu1 %vm8929_vm0, %v10476_v11 }
 0x8c6   :  { %8236 = vmatprep.subr.bf16.mxu0 %v10476_v11  ;;  %8242 = vmatprep.subr.bf16.mxu1 %v10476_v11 }
 0x8cb   :  { %8227 = vmatmul.mubr.bf16.vlgmr.msra.gmra.mrb[180].mxu0 %v4454_v33  ;;  %8233 = vmatmul.mubr.bf16.vlgmr.msra.gmra.mrb[180].mxu1 %v4455_v42 }
 0x8cc   :  { %8237 = vmatpush3.bf16.xpose.msra.mxu0 %v9188_v47  ;;  %8243 = vmatpush3.bf16.xpose.msra.mxu1 %v9208_v55 }
 0x8cd   :  { %8238 = vmatprep.mubr.msk.bf16.mxu0 %vm8929_vm0, %v10476_v11  ;;  %8244 = vmatprep.mubr.msk.bf16.mxu1 %vm8929_vm0, %v10476_v11 }
 0x8ce   :  { %8248 = vmatprep.subr.bf16.mxu0 %v10476_v11  ;;  %8254 = vmatprep.subr.bf16.mxu1 %v10476_v11 }
 0x8d3   :  { %8239 = vmatmul.mubr.bf16.vlgmr.msra.gmra.mrb[184].mxu0 %v4456_v58  ;;  %8245 = vmatmul.mubr.bf16.vlgmr.msra.gmra.mrb[184].mxu1 %v4457_v3  ;;  %v10501_v58 = vld [vmem:[#allocation15_spill] sm:$0xff] }
 0x8d4   :  { %8249 = vmatpush3.bf16.msra.mxu0 %v9211_v56  ;;  %8255 = vmatpush3.bf16.msra.mxu1 %v9226_v24 }
 0x8d5   :  { %8250 = vmatprep.mubr.msk.bf16.mxu0 %vm8929_vm0, %v10476_v11  ;;  %8256 = vmatprep.mubr.msk.bf16.mxu1 %vm8929_vm0, %v10476_v11 }
 0x8d6   :  { %8260 = vmatprep.subr.bf16.mxu0 %v10476_v11  ;;  %8266 = vmatprep.subr.bf16.mxu1 %v10476_v11 }
 0x96d   :  { %v4114_v31 = vpop.f32.mrb[156].mxu0  ;;  %v4157_v39 = vpop.f32.mrb[156].mxu1 }
 0x96e   :  { %v4421_v20 = vmul.f32 %v9698_v17, %v4114_v31  ;;  %v4422_v10 = vmul.f32 %v9698_v17, %v4157_v39  ;;  %v8156_v28 = vpop.f32.mrb[157].mxu0  ;;  %v8162_v2 = vpop.f32.mrb[157].mxu1 }
 0x96f   :  { %v4117_v50 = vpop.f32.mrb[158].mxu0  ;;  %v4160_v62 = vpop.f32.mrb[158].mxu1 }
 0x970   :  { %v9900_v12 = vadd.f32 %v4421_v20, %v9759_v53  ;;  %v9903_v63 = vadd.f32 %v4422_v10, %v9762_v26  ;;  %v8157_v27 = vpop.f32.mrb[159].mxu0  ;;  %v8163_v40 = vpop.f32.mrb[159].mxu1 }
 0x975   :  { %v4200_v52 = vpop.f32.mrb[160].mxu0  ;;  %v4243_v0 = vpop.f32.mrb[160].mxu1 }
 0x976   :  { %v4423_v54 = vmul.f32 %v9698_v17, %v4200_v52  ;;  %v4424_v21 = vmul.f32 %v9698_v17, %v4243_v0  ;;  %v8168_v34 = vpop.f32.mrb[161].mxu0  ;;  %v8174_v29 = vpop.f32.mrb[161].mxu1  ;;  %v10505_v52 = vld [vmem:[#allocation17_spill] sm:$0xff] }
 0x977   :  { %v4203_v23 = vpop.f32.mrb[162].mxu0  ;;  %v4246_v30 = vpop.f32.mrb[162].mxu1 }
 0x978   :  { %v9908_v16 = vadd.f32 %v4423_v54, %v9767_v43  ;;  %v9911_v53 = vadd.f32 %v4424_v21, %v9770_v59  ;;  %v8169_v26 = vpop.f32.mrb[163].mxu0  ;;  %v8175_v60 = vpop.f32.mrb[163].mxu1  ;;  %v10503_v43 = vld [vmem:[#allocation16_spill] sm:$0xff]  ;;  %v10507_v54 = vld [vmem:[#allocation18_spill] sm:$0xff] }
 0x97d   :  { %v4286_v35 = vpop.f32.mrb[164].mxu0  ;;  %v4329_v25 = vpop.f32.mrb[164].mxu1 }
 0x97e   :  { %v4425_v8 = vmul.f32 %v9698_v17, %v4286_v35  ;;  %v4426_v51 = vmul.f32 %v9698_v17, %v4329_v25  ;;  %v8180_v33 = vpop.f32.mrb[165].mxu0  ;;  %v8186_v42 = vpop.f32.mrb[165].mxu1 }
 0x97f   :  { %v4289_v57 = vpop.f32.mrb[166].mxu0  ;;  %v4332_v22 = vpop.f32.mrb[166].mxu1 }
 0x980   :  { %v9916_v3 = vadd.f32 %v4425_v8, %v10501_v58  ;;  %v9919_v31 = vadd.f32 %v4426_v51, %v10503_v43  ;;  %v8181_v59 = vpop.f32.mrb[167].mxu0  ;;  %v8187_v39 = vpop.f32.mrb[167].mxu1 }
 0x982   :  { %10502 = vst [vmem:[#allocation15_spill] sm:$0xff] %v9916_v3  ;;  %10504 = vst [vmem:[#allocation16_spill] sm:$0xff] %v9919_v31 }
 0x985   :  { %v4372_v20 = vpop.f32.mrb[168].mxu0  ;;  %v4415_v10 = vpop.f32.mrb[168].mxu1 }
 0x986   :  { %v4427_v28 = vmul.f32 %v9698_v17, %v4372_v20  ;;  %v4428_v2 = vmul.f32 %v9698_v17, %v4415_v10  ;;  %v8192_v50 = vpop.f32.mrb[169].mxu0  ;;  %v8198_v62 = vpop.f32.mrb[169].mxu1 }
 0x987   :  { %v4375_v27 = vpop.f32.mrb[170].mxu0  ;;  %v4418_v40 = vpop.f32.mrb[170].mxu1 }
 0x988   :  { %v9924_v0 = vadd.f32 %v4427_v28, %v10505_v52  ;;  %v9927_v21 = vadd.f32 %v4428_v2, %v10507_v54  ;;  %v8193_v34 = vpop.f32.mrb[171].mxu0  ;;  %v8199_v29 = vpop.f32.mrb[171].mxu1 }
 0x98a   :  { %10506 = vst [vmem:[#allocation17_spill] sm:$0xff] %v9924_v0  ;;  %10508 = vst [vmem:[#allocation18_spill] sm:$0xff] %v9927_v21 }
 0x98e   :  { %v4492_v23 = vpop.f32.mrb[172].mxu0  ;;  %v4532_v30 = vpop.f32.mrb[172].mxu1 }
 0x98f   :  { %v8204_v26 = vpop.f32.mrb[173].mxu0  ;;  %v8210_v60 = vpop.f32.mrb[173].mxu1  ;;  %v4778_v10 = vsel %vm892_vm3, %v4492_v23, -inf  ;;  %v4779_v28 = vsel %vm892_vm3, %v4532_v30, -inf }
 0x990   :  { %v4495_v35 = vpop.f32.mrb[174].mxu0  ;;  %v4535_v25 = vpop.f32.mrb[174].mxu1 }
 0x991   :  { %v8205_v8 = vpop.f32.mrb[175].mxu0  ;;  %v8211_v17 = vpop.f32.mrb[175].mxu1 }
 0x996   :  { %v4572_v51 = vpop.f32.mrb[176].mxu0  ;;  %v4612_v33 = vpop.f32.mrb[176].mxu1 }
 0x997   :  { %v8216_v42 = vpop.f32.mrb[177].mxu0  ;;  %v8222_v57 = vpop.f32.mrb[177].mxu1  ;;  %v4780_v8 = vsel %vm892_vm3, %v4572_v51, -inf  ;;  %v4781_v17 = vsel %vm892_vm3, %v4612_v33, -inf }
 0x998   :  { %v4575_v22 = vpop.f32.mrb[178].mxu0  ;;  %v4615_v58 = vpop.f32.mrb[178].mxu1 }
 0x999   :  { %v8217_v43 = vpop.f32.mrb[179].mxu0  ;;  %v8223_v59 = vpop.f32.mrb[179].mxu1 }
 0x99e   :  { %v4652_v39 = vpop.f32.mrb[180].mxu0  ;;  %v4692_v20 = vpop.f32.mrb[180].mxu1 }
 0x99f   :  { %v4782_v2 = vsel %vm892_vm3, %v4652_v39, -inf  ;;  %v4784_v50 = vsel %vm892_vm3, %v4692_v20, -inf  ;;  %v8228_v62 = vpop.f32.mrb[181].mxu0  ;;  %v8234_v27 = vpop.f32.mrb[181].mxu1 }
 0x9a0   :  { %v4783_v40 = vmax.f32 %v4778_v10, %v4782_v2  ;;  %v4785_v52 = vmax.f32 %v4779_v28, %v4784_v50  ;;  %v4655_v54 = vpop.f32.mrb[182].mxu0  ;;  %v4695_v34 = vpop.f32.mrb[182].mxu1 }
 0x9a1   :  { %v8229_v29 = vpop.f32.mrb[183].mxu0  ;;  %v8235_v26 = vpop.f32.mrb[183].mxu1 }
 0x9a2   :  { %v4790_v60 = vmax.f32 %v4783_v40, %v4785_v52 }
 0x9a6   :  { %v4732_v35 = vpop.f32.mrb[184].mxu0  ;;  %v4772_v25 = vpop.f32.mrb[184].mxu1 }
 0x9a7   :  { %v4786_v42 = vsel %vm892_vm3, %v4732_v35, -inf  ;;  %v4788_v57 = vsel %vm892_vm3, %v4772_v25, -inf  ;;  %v8240_v22 = vpop.f32.mrb[185].mxu0  ;;  %v8246_v58 = vpop.f32.mrb[185].mxu1 }
 0x9a8   :  { %v4787_v43 = vmax.f32 %v4780_v8, %v4786_v42  ;;  %v4789_v59 = vmax.f32 %v4781_v17, %v4788_v57  ;;  %v4735_v10 = vpop.f32.mrb[186].mxu0  ;;  %v4775_v28 = vpop.f32.mrb[186].mxu1 }
 0x9a9   :  { %v8241_v2 = vpop.f32.mrb[187].mxu0  ;;  %v8247_v50 = vpop.f32.mrb[187].mxu1 }
 0x9aa   :  { %v4791_v62 = vmax.f32 %v4787_v43, %v4789_v59 }
 0x9ac   :  { %v4792_v27 = vmax.f32 %v4790_v60, %v4791_v62 }
 0x9ae   :  { %v4793_v40 = vsub.f32 %v4492_v23, %v4792_v27  ;;  %v4794_v52 = vsub.f32 %v4532_v30, %v4792_v27  ;;  %v4795_v54 = vsub.f32 %v4572_v51, %v4792_v27  ;;  %v4796_v34 = vsub.f32 %v4612_v33, %v4792_v27 }
 0x9af   :  { %v4797_v29 = vsub.f32 %v4652_v39, %v4792_v27  ;;  %v4798_v26 = vsub.f32 %v4692_v20, %v4792_v27  ;;  %v4799_v21 = vsub.f32 %v4732_v35, %v4792_v27  ;;  %v4800_v0 = vsub.f32 %v4772_v25, %v4792_v27 }
 0x9b0   :  { %v4801_v31 = vmul.f32 1.442695, %v4793_v40  ;;  %v4803_v3 = vmul.f32 1.442695, %v4794_v52  ;;  %v4805_v22 = vmul.f32 1.442695, %v4795_v54 }
 0x9b1   :  { %v4807_v58 = vmul.f32 1.442695, %v4796_v34  ;;  %v4809_v8 = vmul.f32 1.442695, %v4797_v29  ;;  %v4811_v17 = vmul.f32 1.442695, %v4798_v26 }
 0x9b2   :  { %8705 = vpow2.f32 %v4801_v31  ;;  %v4813_v60 = vmul.f32 1.442695, %v4799_v21  ;;  %v4815_v23 = vmul.f32 1.442695, %v4800_v0 }
 0x9b3   :  { %8707 = vpow2.f32 %v4803_v3 }
 0x9b4   :  { %8709 = vpow2.f32 %v4805_v22 }
 0x9b5   :  { %8711 = vpow2.f32 %v4807_v58 }
 0x9b6   :  { %8713 = vpow2.f32 %v4809_v8 }
 0x9b7   :  { %8715 = vpow2.f32 %v4811_v17 }
 0x9b8   :  { %8717 = vpow2.f32 %v4813_v60 }
 0x9b9   :  { %8719 = vpow2.f32 %v4815_v23 }
 0x9bc   :  { %v8706_v30 = vpop.eup %8705 }
 0x9bd   :  { %v8708_v51 = vpop.eup %8707  ;;  %v4817_v33 = vsel %vm892_vm3, %v8706_v30, 0.0 }
 0x9be   :  { %v8710_v39 = vpop.eup %8709  ;;  %v4818_v20 = vsel %vm892_vm3, %v8708_v51, 0.0 }
 0x9bf   :  { %v8712_v35 = vpop.eup %8711  ;;  %v4819_v31 = vadd.f32 %v4818_v20, %v4817_v33  ;;  %v4820_v3 = vsel %vm892_vm3, %v8710_v39, 0.0 }
 0x9c0   :  { %v8714_v25 = vpop.eup %8713  ;;  %v4822_v57 = vsel %vm892_vm3, %v8712_v35, 0.0 }
 0x9c1   :  { %v4821_v42 = vadd.f32 %v4820_v3, %v4819_v31  ;;  %v8716_v21 = vpop.eup %8715  ;;  %v4824_v0 = vsel %vm892_vm3, %v8714_v25, 0.0  ;;  %v9980_v3 = vsel %vm5211_vm7, 1.0, %v10476_v11 }
 0x9c2   :  { %v8718_v59 = vpop.eup %8717  ;;  %v4826_v28 = vsel %vm892_vm3, %v8716_v21, 0.0 }
 0x9c3   :  { %v4823_v43 = vadd.f32 %v4822_v57, %v4821_v42  ;;  %v8720_v2 = vpop.eup %8719  ;;  %v4828_v62 = vsel %vm892_vm3, %v8718_v59, 0.0  ;;  %v5215_v42 = vmul.f32 %v9980_v3, %v9116_v41 }
 0x9c4   :  { %v4830_v40 = vsel %vm892_vm3, %v8720_v2, 0.0 }
 0x9c5   :  { %v4825_v10 = vadd.f32 %v4824_v0, %v4823_v43  ;;  %v5216_v43 = vmul.f32 %v9980_v3, %v9122_v45  ;;  %v5217_v0 = vmul.f32 %v9980_v3, %v9152_v4 }
 0x9c7   :  { %v4827_v50 = vadd.f32 %v4826_v28, %v4825_v10  ;;  %v5225_v10 = vpack.c.bf16 %v5217_v0, %v5217_v0  ;;  %v5218_v28 = vmul.f32 %v9980_v3, %v9157_v9 }
 0x9c9   :  { %v4829_v27 = vadd.f32 %v4828_v62, %v4827_v50  ;;  %v5226_v50 = vpack.c.bf16 %v5218_v28, %v5218_v28 }
 0x9cb   :  { %v4831_v52 = vadd.f32 %v4830_v40, %v4829_v27  ;;  %v5220_v27 = vmul.f32 %v9980_v3, %v9184_v38  ;;  %v5221_v40 = vmul.f32 %v9980_v3, %v9206_v5 }
 0x9cd   :  { %8721 = vrcp.f32 %v4831_v52  ;;  %v5228_v52 = vpack.c.bf16 %v5220_v27, %v5220_v27 }
 0x9d7   :  { %v8722_v54 = vpop.eup %8721 }
 0x9d8   :  { %v4833_v34 = vmul.f32 %v8722_v54, %v8706_v30  ;;  %v4834_v29 = vmul.f32 %v8722_v54, %v8708_v51  ;;  %v4835_v26 = vmul.f32 %v8722_v54, %v8710_v39  ;;  %v4836_v22 = vmul.f32 %v8722_v54, %v8712_v35 }
 0x9d9   :  { %v4837_v58 = vmul.f32 %v8722_v54, %v8714_v25  ;;  %v4838_v8 = vmul.f32 %v8722_v54, %v8716_v21  ;;  %v4839_v17 = vmul.f32 %v8722_v54, %v8718_v59  ;;  %v4840_v60 = vmul.f32 %v8722_v54, %v8720_v2 }
 0x9da   :  { %v4841_v23 = vpack.c.bf16 %v4833_v34, %v4833_v34  ;;  %v4842_v33 = vpack.c.bf16 %v4834_v29, %v4834_v29  ;;  %v4843_v30 = vpack.c.bf16 %v4835_v26, %v4835_v26  ;;  %v4844_v51 = vpack.c.bf16 %v4836_v22, %v4836_v22 }
 0x9db   :  { %v4845_v39 = vpack.c.bf16 %v4837_v58, %v4837_v58  ;;  %v4846_v20 = vpack.c.bf16 %v4838_v8, %v4838_v8  ;;  %v4847_v35 = vpack.c.bf16 %v4839_v17, %v4839_v17  ;;  %v4848_v31 = vpack.c.bf16 %v4840_v60, %v4840_v60 }
 0x9dc   :  { %8251 = vmatmul.mubr.msk.bf16.vlgmr.msra.gmra.mrb[188].mxu0 %vm892_vm3, %v4841_v23  ;;  %8257 = vmatmul.mubr.msk.bf16.vlgmr.msra.gmra.mrb[188].mxu1 %vm892_vm3, %v4842_v33  ;;  %v5214_v25 = vmul.f32 %v9980_v3, %v9093_v15  ;;  %v5223_v21 = vpack.c.bf16 %v5215_v42, %v5215_v42  ;;  %v5224_v59 = vpack.c.bf16 %v5216_v43, %v5216_v43 }
 0x9dd   :  { %8261 = vmatpush3.bf16.msra.mxu0 %v9113_v36  ;;  %8267 = vmatpush3.bf16.msra.mxu1 %v9120_v44  ;;  %v5219_v2 = vmul.f32 %v9980_v3, %v9182_v37  ;;  %v5229_v54 = vpack.c.bf16 %v5221_v40, %v5221_v40 }
 0x9de   :  { %8262 = vmatprep.mubr.msk.bf16.mxu0 %vm8929_vm0, %v10476_v11  ;;  %8268 = vmatprep.mubr.msk.bf16.mxu1 %vm8929_vm0, %v10476_v11  ;;  %v5222_v57 = vpack.c.bf16 %v5214_v25, %v5214_v25 }
 0x9df   :  { %8272 = vmatprep.subr.bf16.mxu0 %v10476_v11  ;;  %8278 = vmatprep.subr.bf16.mxu1 %v10476_v11  ;;  %v5227_v62 = vpack.c.bf16 %v5219_v2, %v5219_v2 }
 0x9e4   :  { %8263 = vmatmul.mubr.msk.bf16.vlgmr.msra.gmra.mrb[192].mxu0 %vm892_vm3, %v4843_v30  ;;  %8269 = vmatmul.mubr.msk.bf16.vlgmr.msra.gmra.mrb[192].mxu1 %vm892_vm3, %v4844_v51 }
 0x9e5   :  { %8273 = vmatpush3.bf16.msra.mxu0 %v9149_v1  ;;  %8279 = vmatpush3.bf16.msra.mxu1 %v9162_v14 }
 0x9e6   :  { %8274 = vmatprep.mubr.msk.bf16.mxu0 %vm8929_vm0, %v10476_v11  ;;  %8280 = vmatprep.mubr.msk.bf16.mxu1 %vm8929_vm0, %v10476_v11 }
 0x9e7   :  { %8284 = vmatprep.subr.bf16.mxu0 %v10476_v11  ;;  %8290 = vmatprep.subr.bf16.mxu1 %v10476_v11 }
 0x9ec   :  { %8275 = vmatmul.mubr.msk.bf16.vlgmr.msra.gmra.mrb[196].mxu0 %vm892_vm3, %v4845_v39  ;;  %8281 = vmatmul.mubr.msk.bf16.vlgmr.msra.gmra.mrb[196].mxu1 %vm892_vm3, %v4846_v20 }
 0x9ed   :  { %8285 = vmatpush3.bf16.msra.mxu0 %v9145_v61  ;;  %8291 = vmatpush3.bf16.msra.mxu1 %v9155_v7 }
 0x9ee   :  { %8286 = vmatprep.mubr.msk.bf16.mxu0 %vm8929_vm0, %v10476_v11  ;;  %8292 = vmatprep.mubr.msk.bf16.mxu1 %vm8929_vm0, %v10476_v11 }
 0x9ef   :  { %8296 = vmatprep.subr.bf16.mxu0 %v10476_v11  ;;  %8302 = vmatprep.subr.bf16.mxu1 %v10476_v11 }
 0x9f4   :  { %8287 = vmatmul.mubr.msk.bf16.vlgmr.msra.gmra.mrb[200].mxu0 %vm892_vm3, %v4847_v35  ;;  %8293 = vmatmul.mubr.msk.bf16.vlgmr.msra.gmra.mrb[200].mxu1 %vm892_vm3, %v4848_v31 }
 0x9f5   :  { %8298 = vmatprep.mubr.msk.bf16.mxu0 %vm8929_vm0, %v10476_v11  ;;  %8304 = vmatprep.mubr.msk.bf16.mxu1 %vm8929_vm0, %v10476_v11 }
 0x9f6   :  { %8297 = vmatpush3.bf16.xpose.msra.mxu0 %v9095_v19  ;;  %8303 = vmatpush3.bf16.xpose.msra.mxu1 %v9124_v48 }
 0x9f7   :  { %8308 = vmatprep.subr.bf16.mxu0 %v10476_v11  ;;  %8314 = vmatprep.subr.bf16.mxu1 %v10476_v11 }
 0x9fd   :  { %8299 = vmatmul.mubr.bf16.vlgmr.msra.gmra.mrb[204].mxu0 %v5222_v57  ;;  %8305 = vmatmul.mubr.bf16.vlgmr.msra.gmra.mrb[204].mxu1 %v5223_v21 }
 0x9fe   :  { %8309 = vmatpush3.bf16.xpose.msra.mxu0 %v9126_v49  ;;  %8315 = vmatpush3.bf16.xpose.msra.mxu1 %v9159_v13 }
 0x9ff   :  { %8310 = vmatprep.mubr.msk.bf16.mxu0 %vm8929_vm0, %v10476_v11  ;;  %8316 = vmatprep.mubr.msk.bf16.mxu1 %vm8929_vm0, %v10476_v11 }
 0xa00   :  { %8320 = vmatprep.subr.bf16.mxu0 %v10476_v11  ;;  %8326 = vmatprep.subr.bf16.mxu1 %v10476_v11 }
 0xa05   :  { %8311 = vmatmul.mubr.bf16.vlgmr.msra.gmra.mrb[208].mxu0 %v5224_v59  ;;  %8317 = vmatmul.mubr.bf16.vlgmr.msra.gmra.mrb[208].mxu1 %v5225_v10 }
 0xa06   :  { %8321 = vmatpush3.bf16.xpose.msra.mxu0 %v9164_v18  ;;  %8327 = vmatpush3.bf16.xpose.msra.mxu1 %v9186_v46 }
 0xa07   :  { %8322 = vmatprep.mubr.msk.bf16.mxu0 %vm8929_vm0, %v10476_v11  ;;  %8328 = vmatprep.mubr.msk.bf16.mxu1 %vm8929_vm0, %v10476_v11 }
 0xa08   :  { %8332 = vmatprep.subr.bf16.mxu0 %v10476_v11  ;;  %8338 = vmatprep.subr.bf16.mxu1 %v10476_v11 }
 0xa0d   :  { %8323 = vmatmul.mubr.bf16.vlgmr.msra.gmra.mrb[212].mxu0 %v5226_v50  ;;  %8329 = vmatmul.mubr.bf16.vlgmr.msra.gmra.mrb[212].mxu1 %v5227_v62 }
 0xa0e   :  { %8333 = vmatpush3.bf16.xpose.msra.mxu0 %v9188_v47  ;;  %8339 = vmatpush3.bf16.xpose.msra.mxu1 %v9208_v55 }
 0xa0f   :  { %8334 = vmatprep.mubr.msk.bf16.mxu0 %vm8929_vm0, %v10476_v11  ;;  %8340 = vmatprep.mubr.msk.bf16.mxu1 %vm8929_vm0, %v10476_v11 }
 0xa10   :  { %8344 = vmatprep.subr.bf16.mxu0 %v10476_v11  ;;  %8350 = vmatprep.subr.bf16.mxu1 %v10476_v11 }
 0xa15   :  { %8335 = vmatmul.mubr.bf16.vlgmr.msra.gmra.mrb[216].mxu0 %v5228_v52  ;;  %8341 = vmatmul.mubr.bf16.vlgmr.msra.gmra.mrb[216].mxu1 %v5229_v54  ;;  %v10509_v52 = vld [vmem:[#allocation15_spill] sm:$0xff] }
 0xa16   :  { %8345 = vmatpush3.bf16.msra.mxu0 %v9211_v56  ;;  %8351 = vmatpush3.bf16.msra.mxu1 %v9226_v24 }
 0xa17   :  { %8346 = vmatprep.mubr.msk.bf16.mxu0 %vm8929_vm0, %v10476_v11  ;;  %8352 = vmatprep.mubr.msk.bf16.mxu1 %vm8929_vm0, %v10476_v11 }
 0xa18   :  { %8356 = vmatprep.subr.bf16.mxu0 %v10476_v11  ;;  %8362 = vmatprep.subr.bf16.mxu1 %v10476_v11 }
 0xaaf   :  { %v4886_v34 = vpop.f32.mrb[188].mxu0  ;;  %v4929_v29 = vpop.f32.mrb[188].mxu1 }
 0xab0   :  { %v5193_v26 = vmul.f32 %v9839_v32, %v4886_v34  ;;  %v5194_v22 = vmul.f32 %v9839_v32, %v4929_v29  ;;  %v8252_v58 = vpop.f32.mrb[189].mxu0  ;;  %v8258_v8 = vpop.f32.mrb[189].mxu1 }
 0xab1   :  { %v4889_v17 = vpop.f32.mrb[190].mxu0  ;;  %v4932_v60 = vpop.f32.mrb[190].mxu1 }
 0xab2   :  { %v10041_v23 = vadd.f32 %v5193_v26, %v9900_v12  ;;  %v10044_v33 = vadd.f32 %v5194_v22, %v9903_v63  ;;  %v8253_v30 = vpop.f32.mrb[191].mxu0  ;;  %v8259_v51 = vpop.f32.mrb[191].mxu1 }
 0xab7   :  { %v4972_v39 = vpop.f32.mrb[192].mxu0  ;;  %v5015_v20 = vpop.f32.mrb[192].mxu1 }
 0xab8   :  { %v5195_v35 = vmul.f32 %v9839_v32, %v4972_v39  ;;  %v5196_v31 = vmul.f32 %v9839_v32, %v5015_v20  ;;  %v8264_v25 = vpop.f32.mrb[193].mxu0  ;;  %v8270_v42 = vpop.f32.mrb[193].mxu1  ;;  %v10513_v39 = vld [vmem:[#allocation17_spill] sm:$0xff] }
 0xab9   :  { %v4975_v57 = vpop.f32.mrb[194].mxu0  ;;  %v5018_v21 = vpop.f32.mrb[194].mxu1 }
 0xaba   :  { %v10049_v43 = vadd.f32 %v5195_v35, %v9908_v16  ;;  %v10052_v12 = vadd.f32 %v5196_v31, %v9911_v53  ;;  %v8265_v63 = vpop.f32.mrb[195].mxu0  ;;  %v8271_v0 = vpop.f32.mrb[195].mxu1  ;;  %v10511_v16 = vld [vmem:[#allocation16_spill] sm:$0xff]  ;;  %v10515_v35 = vld [vmem:[#allocation18_spill] sm:$0xff] }
 0xabf   :  { %v5058_v59 = vpop.f32.mrb[196].mxu0  ;;  %v5101_v10 = vpop.f32.mrb[196].mxu1 }
 0xac0   :  { %v5197_v28 = vmul.f32 %v9839_v32, %v5058_v59  ;;  %v5198_v2 = vmul.f32 %v9839_v32, %v5101_v10  ;;  %v8276_v50 = vpop.f32.mrb[197].mxu0  ;;  %v8282_v62 = vpop.f32.mrb[197].mxu1 }
 0xac1   :  { %v5061_v27 = vpop.f32.mrb[198].mxu0  ;;  %v5104_v40 = vpop.f32.mrb[198].mxu1 }
 0xac2   :  { %v10057_v54 = vadd.f32 %v5197_v28, %v10509_v52  ;;  %v10060_v34 = vadd.f32 %v5198_v2, %v10511_v16  ;;  %v8277_v53 = vpop.f32.mrb[199].mxu0  ;;  %v8283_v29 = vpop.f32.mrb[199].mxu1 }
 0xac4   :  { %10510 = vst [vmem:[#allocation15_spill] sm:$0xff] %v10057_v54  ;;  %10512 = vst [vmem:[#allocation16_spill] sm:$0xff] %v10060_v34 }
 0xac7   :  { %v5144_v26 = vpop.f32.mrb[200].mxu0  ;;  %v5187_v22 = vpop.f32.mrb[200].mxu1 }
 0xac8   :  { %v5199_v58 = vmul.f32 %v9839_v32, %v5144_v26  ;;  %v5200_v8 = vmul.f32 %v9839_v32, %v5187_v22  ;;  %v8288_v17 = vpop.f32.mrb[201].mxu0  ;;  %v8294_v60 = vpop.f32.mrb[201].mxu1 }
 0xac9   :  { %v5147_v30 = vpop.f32.mrb[202].mxu0  ;;  %v5190_v51 = vpop.f32.mrb[202].mxu1 }
 0xaca   :  { %v10065_v20 = vadd.f32 %v5199_v58, %v10513_v39  ;;  %v10068_v31 = vadd.f32 %v5200_v8, %v10515_v35  ;;  %v8289_v25 = vpop.f32.mrb[203].mxu0  ;;  %v8295_v42 = vpop.f32.mrb[203].mxu1 }
 0xacc   :  { %10514 = vst [vmem:[#allocation17_spill] sm:$0xff] %v10065_v20  ;;  %10516 = vst [vmem:[#allocation18_spill] sm:$0xff] %v10068_v31 }
 0xad0   :  { %v5264_v57 = vpop.f32.mrb[204].mxu0  ;;  %v5304_v21 = vpop.f32.mrb[204].mxu1 }
 0xad1   :  { %v8300_v63 = vpop.f32.mrb[205].mxu0  ;;  %v8306_v0 = vpop.f32.mrb[205].mxu1  ;;  %v5550_v22 = vsel %vm892_vm3, %v5264_v57, -inf  ;;  %v5551_v58 = vsel %vm892_vm3, %v5304_v21, -inf }
 0xad2   :  { %v5267_v59 = vpop.f32.mrb[206].mxu0  ;;  %v5307_v10 = vpop.f32.mrb[206].mxu1 }
 0xad3   :  { %v8301_v28 = vpop.f32.mrb[207].mxu0  ;;  %v8307_v32 = vpop.f32.mrb[207].mxu1 }
 0xad8   :  { %v5344_v2 = vpop.f32.mrb[208].mxu0  ;;  %v5384_v50 = vpop.f32.mrb[208].mxu1 }
 0xad9   :  { %v8312_v62 = vpop.f32.mrb[209].mxu0  ;;  %v8318_v27 = vpop.f32.mrb[209].mxu1  ;;  %v5552_v28 = vsel %vm892_vm3, %v5344_v2, -inf  ;;  %v5553_v32 = vsel %vm892_vm3, %v5384_v50, -inf }
 0xada   :  { %v5347_v40 = vpop.f32.mrb[210].mxu0  ;;  %v5387_v52 = vpop.f32.mrb[210].mxu1 }
 0xadb   :  { %v8313_v16 = vpop.f32.mrb[211].mxu0  ;;  %v8319_v53 = vpop.f32.mrb[211].mxu1 }
 0xae0   :  { %v5424_v29 = vpop.f32.mrb[212].mxu0  ;;  %v5464_v26 = vpop.f32.mrb[212].mxu1 }
 0xae1   :  { %v5554_v8 = vsel %vm892_vm3, %v5424_v29, -inf  ;;  %v5556_v17 = vsel %vm892_vm3, %v5464_v26, -inf  ;;  %v8324_v60 = vpop.f32.mrb[213].mxu0  ;;  %v8330_v30 = vpop.f32.mrb[213].mxu1 }
 0xae2   :  { %v5555_v51 = vmax.f32 %v5550_v22, %v5554_v8  ;;  %v5557_v39 = vmax.f32 %v5551_v58, %v5556_v17  ;;  %v5427_v35 = vpop.f32.mrb[214].mxu0  ;;  %v5467_v25 = vpop.f32.mrb[214].mxu1 }
 0xae3   :  { %v8325_v42 = vpop.f32.mrb[215].mxu0  ;;  %v8331_v63 = vpop.f32.mrb[215].mxu1 }
 0xae4   :  { %v5562_v0 = vmax.f32 %v5555_v51, %v5557_v39 }
 0xae8   :  { %v5504_v59 = vpop.f32.mrb[216].mxu0  ;;  %v5544_v10 = vpop.f32.mrb[216].mxu1 }
 0xae9   :  { %v5558_v62 = vsel %vm892_vm3, %v5504_v59, -inf  ;;  %v5560_v27 = vsel %vm892_vm3, %v5544_v10, -inf  ;;  %v8336_v40 = vpop.f32.mrb[217].mxu0  ;;  %v8342_v52 = vpop.f32.mrb[217].mxu1 }
 0xaea   :  { %v5559_v16 = vmax.f32 %v5552_v28, %v5558_v62  ;;  %v5561_v53 = vmax.f32 %v5553_v32, %v5560_v27  ;;  %v5507_v22 = vpop.f32.mrb[218].mxu0  ;;  %v5547_v58 = vpop.f32.mrb[218].mxu1 }
 0xaeb   :  { %v8337_v8 = vpop.f32.mrb[219].mxu0  ;;  %v8343_v17 = vpop.f32.mrb[219].mxu1 }
 0xaec   :  { %v5563_v60 = vmax.f32 %v5559_v16, %v5561_v53 }
 0xaee   :  { %v5564_v30 = vmax.f32 %v5562_v0, %v5563_v60 }
 0xaf0   :  { %v5565_v51 = vsub.f32 %v5264_v57, %v5564_v30  ;;  %v5566_v39 = vsub.f32 %v5304_v21, %v5564_v30  ;;  %v5567_v35 = vsub.f32 %v5344_v2, %v5564_v30  ;;  %v5568_v25 = vsub.f32 %v5384_v50, %v5564_v30 }
 0xaf1   :  { %v5569_v42 = vsub.f32 %v5424_v29, %v5564_v30  ;;  %v5570_v63 = vsub.f32 %v5464_v26, %v5564_v30  ;;  %v5571_v31 = vsub.f32 %v5504_v59, %v5564_v30  ;;  %v5572_v20 = vsub.f32 %v5544_v10, %v5564_v30 }
 0xaf2   :  { %v5573_v34 = vmul.f32 1.442695, %v5565_v51  ;;  %v5575_v54 = vmul.f32 1.442695, %v5566_v39  ;;  %v5577_v40 = vmul.f32 1.442695, %v5567_v35 }
 0xaf3   :  { %v5579_v52 = vmul.f32 1.442695, %v5568_v25  ;;  %v5581_v28 = vmul.f32 1.442695, %v5569_v42  ;;  %v5583_v32 = vmul.f32 1.442695, %v5570_v63 }
 0xaf4   :  { %8723 = vpow2.f32 %v5573_v34  ;;  %v5585_v0 = vmul.f32 1.442695, %v5571_v31  ;;  %v5587_v57 = vmul.f32 1.442695, %v5572_v20 }
 0xaf5   :  { %8725 = vpow2.f32 %v5575_v54 }
 0xaf6   :  { %8727 = vpow2.f32 %v5577_v40 }
 0xaf7   :  { %8729 = vpow2.f32 %v5579_v52 }
 0xaf8   :  { %8731 = vpow2.f32 %v5581_v28 }
 0xaf9   :  { %8733 = vpow2.f32 %v5583_v32 }
 0xafa   :  { %8735 = vpow2.f32 %v5585_v0 }
 0xafb   :  { %8737 = vpow2.f32 %v5587_v57 }
 0xafe   :  { %v8724_v21 = vpop.eup %8723 }
 0xaff   :  { %v8726_v2 = vpop.eup %8725  ;;  %v5589_v50 = vsel %vm892_vm3, %v8724_v21, 0.0 }
 0xb00   :  { %v8728_v29 = vpop.eup %8727  ;;  %v5590_v26 = vsel %vm892_vm3, %v8726_v2, 0.0 }
 0xb01   :  { %v8730_v59 = vpop.eup %8729  ;;  %v5591_v34 = vadd.f32 %v5590_v26, %v5589_v50  ;;  %v5592_v54 = vsel %vm892_vm3, %v8728_v29, 0.0 }
 0xb02   :  { %v8732_v10 = vpop.eup %8731  ;;  %v5594_v27 = vsel %vm892_vm3, %v8730_v59, 0.0 }
 0xb03   :  { %v5593_v62 = vadd.f32 %v5592_v54, %v5591_v34  ;;  %v8734_v31 = vpop.eup %8733  ;;  %v5596_v20 = vsel %vm892_vm3, %v8732_v10, 0.0  ;;  %v10120_v54 = vsel %vm5981_vm8, 1.0, %v10476_v11 }
 0xb04   :  { %v8736_v53 = vpop.eup %8735  ;;  %v5598_v58 = vsel %vm892_vm3, %v8734_v31, 0.0  ;;  %v5986_v6 = vmul.f32 %v10120_v54, %v9093_v15  ;;  %v5988_v15 = vmul.f32 %v10120_v54, %v9122_v45  ;;  %v5990_v45 = vmul.f32 %v10120_v54, %v9157_v9 }
 0xb05   :  { %v5595_v16 = vadd.f32 %v5594_v27, %v5593_v62  ;;  %v8738_v8 = vpop.eup %8737  ;;  %v5600_v60 = vsel %vm892_vm3, %v8736_v53, 0.0  ;;  %v5992_v9 = vmul.f32 %v10120_v54, %v9184_v38 }
 0xb06   :  { %v5602_v51 = vsel %vm892_vm3, %v8738_v8, 0.0  ;;  %v5994_v62 = vpack.c.bf16 %v5986_v6, %v5986_v6 }
 0xb07   :  { %v5597_v22 = vadd.f32 %v5596_v20, %v5595_v16 }
 0xb09   :  { %v5599_v17 = vadd.f32 %v5598_v58, %v5597_v22 }
 0xb0b   :  { %v5601_v30 = vadd.f32 %v5600_v60, %v5599_v17 }
 0xb0d   :  { %v5603_v39 = vadd.f32 %v5602_v51, %v5601_v30 }
 0xb0f   :  { %8739 = vrcp.f32 %v5603_v39 }
 0xb19   :  { %v8740_v35 = vpop.eup %8739 }
 0xb1a   :  { %v5605_v25 = vmul.f32 %v8740_v35, %v8724_v21  ;;  %v5606_v42 = vmul.f32 %v8740_v35, %v8726_v2  ;;  %v5607_v63 = vmul.f32 %v8740_v35, %v8728_v29  ;;  %v5608_v40 = vmul.f32 %v8740_v35, %v8730_v59 }
 0xb1b   :  { %v5609_v52 = vmul.f32 %v8740_v35, %v8732_v10  ;;  %v5610_v28 = vmul.f32 %v8740_v35, %v8734_v31  ;;  %v5611_v32 = vmul.f32 %v8740_v35, %v8736_v53  ;;  %v5612_v0 = vmul.f32 %v8740_v35, %v8738_v8 }
 0xb1c   :  { %v5613_v57 = vpack.c.bf16 %v5605_v25, %v5605_v25  ;;  %v5614_v50 = vpack.c.bf16 %v5606_v42, %v5606_v42  ;;  %v5615_v21 = vpack.c.bf16 %v5607_v63, %v5607_v63  ;;  %v5616_v2 = vpack.c.bf16 %v5608_v40, %v5608_v40 }
 0xb1d   :  { %v5617_v29 = vpack.c.bf16 %v5609_v52, %v5609_v52  ;;  %v5618_v26 = vpack.c.bf16 %v5610_v28, %v5610_v28  ;;  %v5619_v59 = vpack.c.bf16 %v5611_v32, %v5611_v32  ;;  %v5620_v34 = vpack.c.bf16 %v5612_v0, %v5612_v0 }
 0xb1e   :  { %8347 = vmatmul.mubr.msk.bf16.vlgmr.msra.gmra.mrb[220].mxu0 %vm892_vm3, %v5613_v57  ;;  %8353 = vmatmul.mubr.msk.bf16.vlgmr.msra.gmra.mrb[220].mxu1 %vm892_vm3, %v5614_v50  ;;  %v5987_v10 = vmul.f32 %v10120_v54, %v9116_v41  ;;  %v5996_v41 = vpack.c.bf16 %v5988_v15, %v5988_v15 }
 0xb1f   :  { %8357 = vmatpush3.bf16.msra.mxu0 %v9113_v36  ;;  %8363 = vmatpush3.bf16.msra.mxu1 %v9120_v44 }
 0xb20   :  { %8358 = vmatprep.mubr.msk.bf16.mxu0 %vm8929_vm0, %v10476_v11  ;;  %8364 = vmatprep.mubr.msk.bf16.mxu1 %vm8929_vm0, %v10476_v11  ;;  %v5995_v27 = vpack.c.bf16 %v5987_v10, %v5987_v10 }
 0xb21   :  { %8368 = vmatprep.subr.bf16.mxu0 %v10476_v11  ;;  %8374 = vmatprep.subr.bf16.mxu1 %v10476_v11 }
 0xb26   :  { %8359 = vmatmul.mubr.msk.bf16.vlgmr.msra.gmra.mrb[224].mxu0 %vm892_vm3, %v5615_v21  ;;  %8365 = vmatmul.mubr.msk.bf16.vlgmr.msra.gmra.mrb[224].mxu1 %vm892_vm3, %v5616_v2  ;;  %v10517_v2 = vld [vmem:[#allocation15_spill] sm:$0xff] }
 0xb27   :  { %8369 = vmatpush3.bf16.msra.mxu0 %v9149_v1  ;;  %8375 = vmatpush3.bf16.msra.mxu1 %v9162_v14 }
 0xb28   :  { %8370 = vmatprep.mubr.msk.bf16.mxu0 %vm8929_vm0, %v10476_v11  ;;  %8376 = vmatprep.mubr.msk.bf16.mxu1 %vm8929_vm0, %v10476_v11 }
 0xb29   :  { %8380 = vmatprep.subr.bf16.mxu0 %v10476_v11  ;;  %8386 = vmatprep.subr.bf16.mxu1 %v10476_v11 }
 0xb2e   :  { %8371 = vmatmul.mubr.msk.bf16.vlgmr.msra.gmra.mrb[228].mxu0 %vm892_vm3, %v5617_v29  ;;  %8377 = vmatmul.mubr.msk.bf16.vlgmr.msra.gmra.mrb[228].mxu1 %vm892_vm3, %v5618_v26 }
 0xb2f   :  { %8381 = vmatpush3.bf16.msra.mxu0 %v9145_v61  ;;  %8387 = vmatpush3.bf16.msra.mxu1 %v9155_v7 }
 0xb30   :  { %8382 = vmatprep.mubr.msk.bf16.mxu0 %vm8929_vm0, %v10476_v11  ;;  %8388 = vmatprep.mubr.msk.bf16.mxu1 %vm8929_vm0, %v10476_v11 }
 0xb31   :  { %8392 = vmatprep.subr.bf16.mxu0 %v10476_v11  ;;  %8398 = vmatprep.subr.bf16.mxu1 %v10476_v11 }
 0xb36   :  { %8383 = vmatmul.mubr.msk.bf16.vlgmr.msra.gmra.mrb[232].mxu0 %vm892_vm3, %v5619_v59  ;;  %8389 = vmatmul.mubr.msk.bf16.vlgmr.msra.gmra.mrb[232].mxu1 %vm892_vm3, %v5620_v34 }
 0xb37   :  { %8394 = vmatprep.mubr.msk.bf16.mxu0 %vm8929_vm0, %v10476_v11  ;;  %8400 = vmatprep.mubr.msk.bf16.mxu1 %vm8929_vm0, %v10476_v11 }
 0xb38   :  { %8393 = vmatpush3.bf16.xpose.msra.mxu0 %v9095_v19  ;;  %8399 = vmatpush3.bf16.xpose.msra.mxu1 %v9124_v48  ;;  %v5989_v19 = vmul.f32 %v10120_v54, %v9152_v4  ;;  %v5998_v4 = vpack.c.bf16 %v5990_v45, %v5990_v45 }
 0xb39   :  { %8404 = vmatprep.subr.bf16.mxu0 %v10476_v11  ;;  %8410 = vmatprep.subr.bf16.mxu1 %v10476_v11 }
 0xb3a   :  { %v5997_v48 = vpack.c.bf16 %v5989_v19, %v5989_v19 }
 0xb3f   :  { %8395 = vmatmul.mubr.bf16.vlgmr.msra.gmra.mrb[236].mxu0 %v5994_v62  ;;  %8401 = vmatmul.mubr.bf16.vlgmr.msra.gmra.mrb[236].mxu1 %v5995_v27 }
 0xb40   :  { %8405 = vmatpush3.bf16.xpose.msra.mxu0 %v9126_v49  ;;  %8411 = vmatpush3.bf16.xpose.msra.mxu1 %v9159_v13  ;;  %v5991_v49 = vmul.f32 %v10120_v54, %v9182_v37  ;;  %v6000_v37 = vpack.c.bf16 %v5992_v9, %v5992_v9 }
 0xb41   :  { %8406 = vmatprep.mubr.msk.bf16.mxu0 %vm8929_vm0, %v10476_v11  ;;  %8412 = vmatprep.mubr.msk.bf16.mxu1 %vm8929_vm0, %v10476_v11 }
 0xb42   :  { %8416 = vmatprep.subr.bf16.mxu0 %v10476_v11  ;;  %8422 = vmatprep.subr.bf16.mxu1 %v10476_v11  ;;  %v5999_v13 = vpack.c.bf16 %v5991_v49, %v5991_v49  ;;  %v10520_v49 = vld [vmem:[#allocation18_spill] sm:$0xff] }
 0xb47   :  { %8407 = vmatmul.mubr.bf16.vlgmr.msra.gmra.mrb[240].mxu0 %v5996_v41  ;;  %8413 = vmatmul.mubr.bf16.vlgmr.msra.gmra.mrb[240].mxu1 %v5997_v48  ;;  %v10519_v48 = vld [vmem:[#allocation17_spill] sm:$0xff] }
 0xb48   :  { %8417 = vmatpush3.bf16.xpose.msra.mxu0 %v9164_v18  ;;  %8423 = vmatpush3.bf16.xpose.msra.mxu1 %v9186_v46  ;;  %v5993_v18 = vmul.f32 %v10120_v54, %v9206_v5 }
 0xb49   :  { %8418 = vmatprep.mubr.msk.bf16.mxu0 %vm8929_vm0, %v10476_v11  ;;  %8424 = vmatprep.mubr.msk.bf16.mxu1 %vm8929_vm0, %v10476_v11 }
 0xb4a   :  { %8428 = vmatprep.subr.bf16.mxu0 %v10476_v11  ;;  %8434 = vmatprep.subr.bf16.mxu1 %v10476_v11  ;;  %v6001_v46 = vpack.c.bf16 %v5993_v18, %v5993_v18 }
 0xb4f   :  { %8419 = vmatmul.mubr.bf16.vlgmr.msra.gmra.mrb[244].mxu0 %v5998_v4  ;;  %8425 = vmatmul.mubr.bf16.vlgmr.msra.gmra.mrb[244].mxu1 %v5999_v13 }
 0xb50   :  { %8429 = vmatpush3.bf16.xpose.msra.mxu0 %v9188_v47  ;;  %8435 = vmatpush3.bf16.xpose.msra.mxu1 %v9208_v55 }
 0xb51   :  { %8430 = vmatprep.mubr.msk.bf16.mxu0 %vm8929_vm0, %v10476_v11  ;;  %8436 = vmatprep.mubr.msk.bf16.mxu1 %vm8929_vm0, %v10476_v11 }
 0xb52   :  { %8440 = vmatprep.subr.bf16.mxu0 %v10476_v11  ;;  %8446 = vmatprep.subr.bf16.mxu1 %v10476_v11 }
 0xb57   :  { %8431 = vmatmul.mubr.bf16.vlgmr.msra.gmra.mrb[248].mxu0 %v6000_v37  ;;  %8437 = vmatmul.mubr.bf16.vlgmr.msra.gmra.mrb[248].mxu1 %v6001_v46 }
 0xb58   :  { %8441 = vmatpush3.bf16.msra.mxu0 %v9211_v56  ;;  %8447 = vmatpush3.bf16.msra.mxu1 %v9226_v24 }
 0xb59   :  { %8442 = vmatprep.mubr.msk.bf16.mxu0 %vm8929_vm0, %v10476_v11  ;;  %8448 = vmatprep.mubr.msk.bf16.mxu1 %vm8929_vm0, %v10476_v11 }
 0xb5a   :  { %8452 = vmatprep.subr.bf16.mxu0 %v10476_v11  ;;  %8458 = vmatprep.subr.bf16.mxu1 %v10476_v11 }
 0xbf1   :  { %v5658_v38 = vpop.f32.mrb[220].mxu0  ;;  %v5701_v47 = vpop.f32.mrb[220].mxu1 }
 0xbf2   :  { %v5965_v5 = vmul.f32 %v9980_v3, %v5658_v38  ;;  %v5966_v55 = vmul.f32 %v9980_v3, %v5701_v47  ;;  %v8348_v31 = vpop.f32.mrb[221].mxu0  ;;  %v8354_v56 = vpop.f32.mrb[221].mxu1 }
 0xbf3   :  { %v5661_v16 = vpop.f32.mrb[222].mxu0  ;;  %v5704_v24 = vpop.f32.mrb[222].mxu1 }
 0xbf4   :  { %v10181_v20 = vadd.f32 %v5965_v5, %v10041_v23  ;;  %v10184_v53 = vadd.f32 %v5966_v55, %v10044_v33  ;;  %v8349_v22 = vpop.f32.mrb[223].mxu0  ;;  %v8355_v58 = vpop.f32.mrb[223].mxu1 }
 0xbf9   :  { %v5744_v8 = vpop.f32.mrb[224].mxu0  ;;  %v5787_v17 = vpop.f32.mrb[224].mxu1 }
 0xbfa   :  { %v5967_v60 = vmul.f32 %v9980_v3, %v5744_v8  ;;  %v5968_v30 = vmul.f32 %v9980_v3, %v5787_v17  ;;  %v8360_v51 = vpop.f32.mrb[225].mxu0  ;;  %v8366_v39 = vpop.f32.mrb[225].mxu1 }
 0xbfb   :  { %v5747_v35 = vpop.f32.mrb[226].mxu0  ;;  %v5790_v25 = vpop.f32.mrb[226].mxu1 }
 0xbfc   :  { %v10189_v42 = vadd.f32 %v5967_v60, %v10049_v43  ;;  %v10192_v23 = vadd.f32 %v5968_v30, %v10052_v12  ;;  %v8361_v33 = vpop.f32.mrb[227].mxu0  ;;  %v8367_v63 = vpop.f32.mrb[227].mxu1  ;;  %v10518_v43 = vld [vmem:[#allocation16_spill] sm:$0xff] }
 0xc01   :  { %v5830_v40 = vpop.f32.mrb[228].mxu0  ;;  %v5873_v52 = vpop.f32.mrb[228].mxu1 }
 0xc02   :  { %v5969_v28 = vmul.f32 %v9980_v3, %v5830_v40  ;;  %v5970_v32 = vmul.f32 %v9980_v3, %v5873_v52  ;;  %v8372_v0 = vpop.f32.mrb[229].mxu0  ;;  %v8378_v57 = vpop.f32.mrb[229].mxu1 }
 0xc03   :  { %v5833_v50 = vpop.f32.mrb[230].mxu0  ;;  %v5876_v21 = vpop.f32.mrb[230].mxu1 }
 0xc04   :  { %v10197_v29 = vadd.f32 %v5969_v28, %v10517_v2  ;;  %v10200_v26 = vadd.f32 %v5970_v32, %v10518_v43  ;;  %v8373_v12 = vpop.f32.mrb[231].mxu0  ;;  %v8379_v59 = vpop.f32.mrb[231].mxu1 }
 0xc09   :  { %v5916_v34 = vpop.f32.mrb[232].mxu0  ;;  %v5959_v6 = vpop.f32.mrb[232].mxu1 }
 0xc0a   :  { %v5971_v10 = vmul.f32 %v9980_v3, %v5916_v34  ;;  %v5972_v62 = vmul.f32 %v9980_v3, %v5959_v6  ;;  %v8384_v27 = vpop.f32.mrb[233].mxu0  ;;  %v8390_v15 = vpop.f32.mrb[233].mxu1 }
 0xc0b   :  { %v5919_v19 = vpop.f32.mrb[234].mxu0  ;;  %v5962_v41 = vpop.f32.mrb[234].mxu1 }
 0xc0c   :  { %v10205_v45 = vadd.f32 %v5971_v10, %v10519_v48  ;;  %v10208_v4 = vadd.f32 %v5972_v62, %v10520_v49  ;;  %v8385_v13 = vpop.f32.mrb[235].mxu0  ;;  %v8391_v9 = vpop.f32.mrb[235].mxu1 }
 0xc12   :  { %v6036_v18 = vpop.f32.mrb[236].mxu0  ;;  %v6076_v37 = vpop.f32.mrb[236].mxu1 }
 0xc13   :  { %v8396_v46 = vpop.f32.mrb[237].mxu0  ;;  %v8402_v38 = vpop.f32.mrb[237].mxu1  ;;  %v6322_v51 = vsel %vm892_vm3, %v6036_v18, -inf  ;;  %v6323_v39 = vsel %vm892_vm3, %v6076_v37, -inf }
 0xc14   :  { %v6039_v47 = vpop.f32.mrb[238].mxu0  ;;  %v6079_v5 = vpop.f32.mrb[238].mxu1 }
 0xc15   :  { %v8397_v55 = vpop.f32.mrb[239].mxu0  ;;  %v8403_v3 = vpop.f32.mrb[239].mxu1 }
 0xc1a   :  { %v6116_v31 = vpop.f32.mrb[240].mxu0  ;;  %v6156_v56 = vpop.f32.mrb[240].mxu1 }
 0xc1b   :  { %v8408_v16 = vpop.f32.mrb[241].mxu0  ;;  %v8414_v24 = vpop.f32.mrb[241].mxu1  ;;  %v6324_v43 = vsel %vm892_vm3, %v6116_v31, -inf  ;;  %v6325_v12 = vsel %vm892_vm3, %v6156_v56, -inf }
 0xc1c   :  { %v6119_v22 = vpop.f32.mrb[242].mxu0  ;;  %v6159_v58 = vpop.f32.mrb[242].mxu1 }
 0xc1d   :  { %v8409_v8 = vpop.f32.mrb[243].mxu0  ;;  %v8415_v17 = vpop.f32.mrb[243].mxu1 }
 0xc22   :  { %v6196_v60 = vpop.f32.mrb[244].mxu0  ;;  %v6236_v30 = vpop.f32.mrb[244].mxu1 }
 0xc23   :  { %v6326_v35 = vsel %vm892_vm3, %v6196_v60, -inf  ;;  %v6328_v25 = vsel %vm892_vm3, %v6236_v30, -inf  ;;  %v8420_v33 = vpop.f32.mrb[245].mxu0  ;;  %v8426_v63 = vpop.f32.mrb[245].mxu1 }
 0xc24   :  { %v6327_v40 = vmax.f32 %v6322_v51, %v6326_v35  ;;  %v6329_v52 = vmax.f32 %v6323_v39, %v6328_v25  ;;  %v6199_v28 = vpop.f32.mrb[246].mxu0  ;;  %v6239_v32 = vpop.f32.mrb[246].mxu1 }
 0xc25   :  { %v8421_v0 = vpop.f32.mrb[247].mxu0  ;;  %v8427_v57 = vpop.f32.mrb[247].mxu1 }
 0xc26   :  { %v6334_v50 = vmax.f32 %v6327_v40, %v6329_v52 }
 0xc2a   :  { %v6276_v21 = vpop.f32.mrb[248].mxu0  ;;  %v6316_v2 = vpop.f32.mrb[248].mxu1 }
 0xc2b   :  { %v6330_v59 = vsel %vm892_vm3, %v6276_v21, -inf  ;;  %v6332_v34 = vsel %vm892_vm3, %v6316_v2, -inf  ;;  %v8432_v6 = vpop.f32.mrb[249].mxu0  ;;  %v8438_v10 = vpop.f32.mrb[249].mxu1 }
 0xc2c   :  { %v6331_v62 = vmax.f32 %v6324_v43, %v6330_v59  ;;  %v6333_v27 = vmax.f32 %v6325_v12, %v6332_v34  ;;  %v6279_v15 = vpop.f32.mrb[250].mxu0  ;;  %v6319_v19 = vpop.f32.mrb[250].mxu1 }
 0xc2d   :  { %v8433_v41 = vpop.f32.mrb[251].mxu0  ;;  %v8439_v48 = vpop.f32.mrb[251].mxu1 }
 0xc2e   :  { %v6335_v49 = vmax.f32 %v6331_v62, %v6333_v27 }
 0xc30   :  { %v6336_v13 = vmax.f32 %v6334_v50, %v6335_v49 }
 0xc32   :  { %v6337_v9 = vsub.f32 %v6036_v18, %v6336_v13  ;;  %v6338_v46 = vsub.f32 %v6076_v37, %v6336_v13  ;;  %v6339_v38 = vsub.f32 %v6116_v31, %v6336_v13  ;;  %v6340_v47 = vsub.f32 %v6156_v56, %v6336_v13 }
 0xc33   :  { %v6341_v5 = vsub.f32 %v6196_v60, %v6336_v13  ;;  %v6342_v55 = vsub.f32 %v6236_v30, %v6336_v13  ;;  %v6343_v3 = vsub.f32 %v6276_v21, %v6336_v13  ;;  %v6344_v16 = vsub.f32 %v6316_v2, %v6336_v13 }
 0xc34   :  { %v6345_v24 = vmul.f32 1.442695, %v6337_v9  ;;  %v6347_v22 = vmul.f32 1.442695, %v6338_v46  ;;  %v6349_v58 = vmul.f32 1.442695, %v6339_v38 }
 0xc35   :  { %v6351_v8 = vmul.f32 1.442695, %v6340_v47  ;;  %v6353_v17 = vmul.f32 1.442695, %v6341_v5  ;;  %v6355_v51 = vmul.f32 1.442695, %v6342_v55 }
 0xc36   :  { %8741 = vpow2.f32 %v6345_v24  ;;  %v6357_v39 = vmul.f32 1.442695, %v6343_v3  ;;  %v6359_v18 = vmul.f32 1.442695, %v6344_v16  ;;  %v8583_v5 = vld [vmem:[#allocation7] sm:$0xff]   ;;  %v8584_v55 = vld [vmem:[#allocation7 + $0x8] sm:$0xff]  }
 0xc37   :  { %8743 = vpow2.f32 %v6347_v22  ;;  %v8585_v3 = vld [vmem:[#allocation7 + $0x10] sm:$0xff]   ;;  %v8588_v16 = vld [vmem:[#allocation7 + $0x28] sm:$0xff]   ;;  %v8590_v24 = vld [vmem:[#allocation7 + $0x38] sm:$0xff]  }
 0xc38   :  { %8745 = vpow2.f32 %v6349_v58 }
 0xc39   :  { %8747 = vpow2.f32 %v6351_v8 }
 0xc3a   :  { %8749 = vpow2.f32 %v6353_v17 }
 0xc3b   :  { %8751 = vpow2.f32 %v6355_v51 }
 0xc3c   :  { %8753 = vpow2.f32 %v6357_v39 }
 0xc3d   :  { %8755 = vpow2.f32 %v6359_v18 }
 0xc40   :  { %v8742_v37 = vpop.eup %8741 }
 0xc41   :  { %v8744_v31 = vpop.eup %8743  ;;  %v6361_v56 = vsel %vm892_vm3, %v8742_v37, 0.0 }
 0xc42   :  { %v8746_v60 = vpop.eup %8745  ;;  %v6362_v30 = vsel %vm892_vm3, %v8744_v31, 0.0 }
 0xc43   :  { %v8748_v35 = vpop.eup %8747  ;;  %v6363_v25 = vadd.f32 %v6362_v30, %v6361_v56  ;;  %v6364_v33 = vsel %vm892_vm3, %v8746_v60, 0.0 }
 0xc44   :  { %v8750_v63 = vpop.eup %8749  ;;  %v6366_v52 = vsel %vm892_vm3, %v8748_v35, 0.0 }
 0xc45   :  { %v6365_v40 = vadd.f32 %v6364_v33, %v6363_v25  ;;  %v8752_v28 = vpop.eup %8751  ;;  %v6368_v0 = vsel %vm892_vm3, %v8750_v63, 0.0  ;;  %v8792_v33 = vld [vmem:[#allocation2 + $0x8] sm:$0xff] }
 0xc46   :  { %v8754_v57 = vpop.eup %8753  ;;  %v6370_v21 = vsel %vm892_vm3, %v8752_v28, 0.0 }
 0xc47   :  { %v6367_v32 = vadd.f32 %v6366_v52, %v6365_v40  ;;  %v8756_v2 = vpop.eup %8755  ;;  %v6372_v12 = vsel %vm892_vm3, %v8754_v57, 0.0 }
 0xc48   :  { %v6374_v34 = vsel %vm892_vm3, %v8756_v2, 0.0 }
 0xc49   :  { %v6369_v50 = vadd.f32 %v6368_v0, %v6367_v32 }
 0xc4b   :  { %v6371_v43 = vadd.f32 %v6370_v21, %v6369_v50 }
 0xc4d   :  { %v6373_v59 = vadd.f32 %v6372_v12, %v6371_v43 }
 0xc4f   :  { %v6375_v6 = vadd.f32 %v6374_v34, %v6373_v59  ;;  %v8793_v59 = vld [vmem:[#allocation2 + $0x10] sm:$0xff] }
 0xc51   :  { %8757 = vrcp.f32 %v6375_v6  ;;  %v8794_v6 = vld [vmem:[#allocation2 + $0x18] sm:$0xff] }
 0xc5b   :  { %v8758_v10 = vpop.eup %8757 }
 0xc5c   :  { %v6383_v62 = vmul.f32 %v8758_v10, %v8754_v57  ;;  %v6384_v27 = vmul.f32 %v8758_v10, %v8756_v2  ;;  %v6377_v15 = vmul.f32 %v8758_v10, %v8742_v37  ;;  %v6378_v19 = vmul.f32 %v8758_v10, %v8744_v31 }
 0xc5d   :  { %v6379_v41 = vmul.f32 %v8758_v10, %v8746_v60  ;;  %v6380_v48 = vmul.f32 %v8758_v10, %v8748_v35  ;;  %v6381_v49 = vmul.f32 %v8758_v10, %v8750_v63  ;;  %v6382_v13 = vmul.f32 %v8758_v10, %v8752_v28  ;;  %v8791_v35 = vld [vmem:[#allocation2] sm:$0xff] }
 0xc5e   :  { %v6385_v9 = vpack.c.bf16 %v6377_v15, %v6377_v15  ;;  %v6386_v46 = vpack.c.bf16 %v6378_v19, %v6378_v19 }
 0xc5f   :  { %v6387_v38 = vpack.c.bf16 %v6379_v41, %v6379_v41  ;;  %v6388_v47 = vpack.c.bf16 %v6380_v48, %v6380_v48 }
 0xc60   :  { %8443 = vmatmul.mubr.msk.bf16.vlgmr.msra.gmra.mrb[252].mxu0 %vm892_vm3, %v6385_v9  ;;  %8449 = vmatmul.mubr.msk.bf16.vlgmr.msra.gmra.mrb[252].mxu1 %vm892_vm3, %v6386_v46 }
 0xc61   :  { %8453 = vmatpush3.bf16.msra.mxu0 %v9113_v36  ;;  %8459 = vmatpush3.bf16.msra.mxu1 %v9120_v44  ;;  %v6389_v36 = vpack.c.bf16 %v6381_v49, %v6381_v49  ;;  %v6390_v44 = vpack.c.bf16 %v6382_v13, %v6382_v13 }
 0xc62   :  { %8454 = vmatprep.mubr.msk.bf16.mxu0 %vm8929_vm0, %v10476_v11  ;;  %8460 = vmatprep.mubr.msk.bf16.mxu1 %vm8929_vm0, %v10476_v11 }
 0xc63   :  { %8464 = vmatprep.subr.bf16.mxu0 %v10476_v11  ;;  %8470 = vmatprep.subr.bf16.mxu1 %v10476_v11 }
 0xc68   :  { %8455 = vmatmul.mubr.msk.bf16.vlgmr.msra.gmra.mrb[0].mxu0 %vm892_vm3, %v6387_v38  ;;  %8461 = vmatmul.mubr.msk.bf16.vlgmr.msra.gmra.mrb[0].mxu1 %vm892_vm3, %v6388_v47  ;;  %v8795_v47 = vld [vmem:[#allocation2 + $0x20] sm:$0xff] }
 0xc69   :  { %8465 = vmatpush3.bf16.msra.mxu0 %v9149_v1  ;;  %8471 = vmatpush3.bf16.msra.mxu1 %v9162_v14  ;;  %v6392_v1 = vpack.c.bf16 %v6384_v27, %v6384_v27  ;;  %v6391_v14 = vpack.c.bf16 %v6383_v62, %v6383_v62 }
 0xc6a   :  { %8466 = vmatprep.mubr.msk.bf16.mxu0 %vm8929_vm0, %v10476_v11  ;;  %8472 = vmatprep.mubr.msk.bf16.mxu1 %vm8929_vm0, %v10476_v11 }
 0xc6b   :  { %8476 = vmatprep.subr.bf16.mxu0 %v10476_v11  ;;  %8482 = vmatprep.subr.bf16.mxu1 %v10476_v11 }
 0xc70   :  { %8467 = vmatmul.mubr.msk.bf16.vlgmr.msra.gmra.mrb[4].mxu0 %vm892_vm3, %v6389_v36  ;;  %8473 = vmatmul.mubr.msk.bf16.vlgmr.msra.gmra.mrb[4].mxu1 %vm892_vm3, %v6390_v44  ;;  %v8796_v44 = vld [vmem:[#allocation2 + $0x28] sm:$0xff] }
 0xc71   :  { %8477 = vmatpush3.bf16.msra.mxu0 %v9145_v61  ;;  %8483 = vmatpush3.bf16.msra.mxu1 %v9155_v7  ;;  %v8586_v61 = vld [vmem:[#allocation7 + $0x18] sm:$0xff]   ;;  %v8587_v7 = vld [vmem:[#allocation7 + $0x20] sm:$0xff]  }
 0xc72   :  { %8478 = vmatprep.mubr.msk.bf16.mxu0 %vm8929_vm0, %v10476_v11  ;;  %8484 = vmatprep.mubr.msk.bf16.mxu1 %vm8929_vm0, %v10476_v11  ;;  %v8589_v11 = vld [vmem:[#allocation7 + $0x30] sm:$0xff]  }
 0xc73   :  { %8488 = vmatprep.subr.bf16.mxu0 %v8583_v5 }
 0xc78   :  { %8479 = vmatmul.mubr.msk.bf16.vlgmr.msra.gmra.mrb[8].mxu0 %vm892_vm3, %v6391_v14  ;;  %8485 = vmatmul.mubr.msk.bf16.vlgmr.msra.gmra.mrb[8].mxu1 %vm892_vm3, %v6392_v1 }
 0xc79   :  { %8489 = vmatpush3.bf16.msra.mxu0 %v8583_v5 }
 0xc7a   :  { %8490 = vmatprep.subr.bf16.mxu0 %v8584_v55 }
 0xc7d   :  { %8491 = vmatpush3.bf16.msra.mxu0 %v8584_v55 }
 0xc7e   :  { %8492 = vmatprep.subr.bf16.mxu0 %v8585_v3 }
 0xc81   :  { %8493 = vmatpush3.bf16.msra.mxu0 %v8585_v3 }
 0xc82   :  { %8494 = vmatprep.subr.bf16.mxu0 %v8586_v61 }
 0xc85   :  { %8495 = vmatpush3.bf16.msra.mxu0 %v8586_v61 }
 0xc86   :  { %8496 = vmatprep.subr.bf16.mxu0 %v8587_v7 }
 0xc89   :  { %8497 = vmatpush3.bf16.msra.mxu0 %v8587_v7 }
 0xc8a   :  { %8498 = vmatprep.subr.bf16.mxu0 %v8588_v16 }
 0xc8d   :  { %8499 = vmatpush3.bf16.msra.mxu0 %v8588_v16 }
 0xc8e   :  { %8500 = vmatprep.subr.bf16.mxu0 %v8589_v11 }
 0xc91   :  { %8501 = vmatpush3.bf16.msra.mxu0 %v8589_v11 }
 0xc92   :  { %8502 = vmatprep.subr.bf16.mxu0 %v8590_v24 }
 0xc95   :  { %8503 = vmatpush3.bf16.msra.mxu0 %v8590_v24 }
 0xd33   :  { %v6430_v22 = vpop.f32.mrb[252].mxu0  ;;  %v6473_v58 = vpop.f32.mrb[252].mxu1 }
 0xd34   :  { %v6737_v8 = vmul.f32 %v10120_v54, %v6430_v22  ;;  %v6738_v17 = vmul.f32 %v10120_v54, %v6473_v58  ;;  %v8444_v51 = vpop.f32.mrb[253].mxu0  ;;  %v8450_v39 = vpop.f32.mrb[253].mxu1 }
 0xd35   :  { %v6433_v18 = vpop.f32.mrb[254].mxu0  ;;  %v6476_v37 = vpop.f32.mrb[254].mxu1  ;;  %v8798_v51 = vld [vmem:[#allocation2 + $0x38] sm:$0xff] }
 0xd36   :  { %v6745_v31 = vadd.f32 %v6737_v8, %v10181_v20  ;;  %v6746_v56 = vadd.f32 %v6738_v17, %v10184_v53  ;;  %v8445_v60 = vpop.f32.mrb[255].mxu0  ;;  %v8451_v30 = vpop.f32.mrb[255].mxu1  ;;  %v8797_v8 = vld [vmem:[#allocation2 + $0x30] sm:$0xff]  ;;  %v8591_v18 = vld [vmem:[#allocation8] sm:$0xff]   ;;  %v8592_v37 = vld [vmem:[#allocation8 + $0x8] sm:$0xff]  }
 0xd37   :  { %8512 = vmatprep.subr.bf16.mxu1 %v8591_v18  ;;  %v8597_v60 = vld [vmem:[#allocation8 + $0x30] sm:$0xff]   ;;  %v8598_v30 = vld [vmem:[#allocation8 + $0x38] sm:$0xff]  }
 0xd38   :  { %v10260_v25 = vadd.f32 %v8791_v35, %v6745_v31  ;;  %v10262_v63 = vadd.f32 %v8792_v33, %v6746_v56  ;;  %8513 = vmatpush3.bf16.msra.mxu1 %v8591_v18  ;;  %v8595_v31 = vld [vmem:[#allocation8 + $0x20] sm:$0xff]   ;;  %v8596_v56 = vld [vmem:[#allocation8 + $0x28] sm:$0xff]  }
 0xd39   :  { %8514 = vmatprep.subr.bf16.mxu1 %v8592_v37  ;;  %v10299_v35 = vld [vmem:[%s10468_s6] ss:$0 sm:$0xff] }
 0xd3a   :  { %v6761_v40 = vpack.c.bf16 %v10262_v63, %v10260_v25 }
 0xd3b   :  { %v6516_v52 = vpop.f32.mrb[0].mxu0  ;;  %v6559_v28 = vpop.f32.mrb[0].mxu1 }
 0xd3c   :  { %v6739_v32 = vmul.f32 %v10120_v54, %v6516_v52  ;;  %v6740_v0 = vmul.f32 %v10120_v54, %v6559_v28  ;;  %v8456_v20 = vpop.f32.mrb[1].mxu0  ;;  %v8462_v57 = vpop.f32.mrb[1].mxu1  ;;  %8504 = vmatprep.mubr.bf16.mxu0 %v6761_v40  ;;  %8515 = vmatpush3.bf16.msra.mxu1 %v8592_v37 }
 0xd3d   :  { %v6519_v53 = vpop.f32.mrb[2].mxu0  ;;  %v6562_v50 = vpop.f32.mrb[2].mxu1 }
 0xd3e   :  { %v6747_v21 = vadd.f32 %v6739_v32, %v10189_v42  ;;  %v6748_v2 = vadd.f32 %v6740_v0, %v10192_v23  ;;  %v8457_v43 = vpop.f32.mrb[3].mxu0  ;;  %v8463_v12 = vpop.f32.mrb[3].mxu1 }
 0xd40   :  { %v10270_v34 = vadd.f32 %v8793_v59, %v6747_v21  ;;  %v10272_v10 = vadd.f32 %v8794_v6, %v6748_v2 }
 0xd42   :  { %v6762_v62 = vpack.c.bf16 %v10272_v10, %v10270_v34 }
 0xd43   :  { %v6602_v27 = vpop.f32.mrb[4].mxu0  ;;  %v6645_v15 = vpop.f32.mrb[4].mxu1 }
 0xd44   :  { %v6741_v19 = vmul.f32 %v10120_v54, %v6602_v27  ;;  %v6742_v41 = vmul.f32 %v10120_v54, %v6645_v15  ;;  %v8468_v42 = vpop.f32.mrb[5].mxu0  ;;  %v8474_v48 = vpop.f32.mrb[5].mxu1  ;;  %8505 = vmatmul.mubr.bf16.vlgmr.msra.gmra.mrb[12].mxu0 %v6762_v62 }
 0xd45   :  { %v6605_v23 = vpop.f32.mrb[6].mxu0  ;;  %v6648_v49 = vpop.f32.mrb[6].mxu1 }
 0xd46   :  { %v6749_v13 = vadd.f32 %v6741_v19, %v10197_v29  ;;  %v6750_v9 = vadd.f32 %v6742_v41, %v10200_v26  ;;  %v8469_v46 = vpop.f32.mrb[7].mxu0  ;;  %v8475_v38 = vpop.f32.mrb[7].mxu1 }
 0xd48   :  { %v10280_v36 = vadd.f32 %v8795_v47, %v6749_v13  ;;  %v10282_v5 = vadd.f32 %v8796_v44, %v6750_v9 }
 0xd4a   :  { %v6763_v1 = vpack.c.bf16 %v10282_v5, %v10280_v36 }
 0xd4b   :  { %v6688_v14 = vpop.f32.mrb[8].mxu0  ;;  %v6731_v55 = vpop.f32.mrb[8].mxu1 }
 0xd4c   :  { %v6743_v3 = vmul.f32 %v10120_v54, %v6688_v14  ;;  %v6744_v61 = vmul.f32 %v10120_v54, %v6731_v55  ;;  %v8480_v29 = vpop.f32.mrb[9].mxu0  ;;  %v8486_v7 = vpop.f32.mrb[9].mxu1  ;;  %8508 = vmatprep.mubr.bf16.mxu0 %v6763_v1 }
 0xd4d   :  { %v6691_v26 = vpop.f32.mrb[10].mxu0  ;;  %v6734_v16 = vpop.f32.mrb[10].mxu1 }
 0xd4e   :  { %v6751_v11 = vadd.f32 %v6743_v3, %v10205_v45  ;;  %v6752_v24 = vadd.f32 %v6744_v61, %v10208_v4  ;;  %v8481_v22 = vpop.f32.mrb[11].mxu0  ;;  %v8487_v58 = vpop.f32.mrb[11].mxu1  ;;  %v8593_v45 = vld [vmem:[#allocation8 + $0x10] sm:$0xff]   ;;  %v8594_v4 = vld [vmem:[#allocation8 + $0x18] sm:$0xff]  }
 0xd4f   :  { %8516 = vmatprep.subr.bf16.mxu1 %v8593_v45 }
 0xd50   :  { %v10290_v17 = vadd.f32 %v8797_v8, %v6751_v11  ;;  %v10292_v39 = vadd.f32 %v8798_v51, %v6752_v24  ;;  %8517 = vmatpush3.bf16.msra.mxu1 %v8593_v45  ;;  %v8930_v24 = vmov -1.0  }
 0xd51   :  { %8518 = vmatprep.subr.bf16.mxu1 %v8594_v4 }
 0xd52   :  { %v6764_v54 = vpack.c.bf16 %v10292_v39, %v10290_v17 }
 0xd54   :  { %8509 = vmatmul.mubr.bf16.gmra.mrb[16].mxu0 %v6764_v54  ;;  %8519 = vmatpush3.bf16.msra.mxu1 %v8594_v4 }
 0xd55   :  { %8520 = vmatprep.subr.bf16.mxu1 %v8595_v31 }
 0xd58   :  { %8521 = vmatpush3.bf16.msra.mxu1 %v8595_v31 }
 0xd59   :  { %8522 = vmatprep.subr.bf16.mxu1 %v8596_v56 }
 0xd5c   :  { %8523 = vmatpush3.bf16.msra.mxu1 %v8596_v56 }
 0xd5d   :  { %8524 = vmatprep.subr.bf16.mxu1 %v8597_v60 }
 0xd60   :  { %8525 = vmatpush3.bf16.msra.mxu1 %v8597_v60 }
 0xd61   :  { %8526 = vmatprep.subr.bf16.mxu1 %v8598_v30 }
 0xd64   :  { %8527 = vmatpush3.bf16.msra.mxu1 %v8598_v30 }
 0xe17   :  { %v8506_v33 = vpop.f32.mrb[12].mxu0 }
 0xe18   :  { %v6877_v40 = vadd.f32 %v8506_v33, %v10299_v35  ;;  %v6868_v52 = vpop.f32.mrb[13].mxu0 }
 0xe19   :  { %v6869_v28 = vadd.f32 %v10299_v35, %v6868_v52  ;;  %v8507_v32 = vpop.f32.mrb[14].mxu0 }
 0xe1a   :  { %v6909_v0 = vmul.f32 0.70710677, %v6877_v40  ;;  %v6880_v20 = vadd.f32 %v8507_v32, %v10299_v35  ;;  %v6871_v57 = vpop.f32.mrb[15].mxu0  ;;  %v10320_v14 = vmul.f32 0.5, %v6877_v40 }
 0xe1b   :  { %v10304_v53 = vmul.f32 0.70710677, %v6869_v28  ;;  %v6872_v2 = vadd.f32 %v10299_v35, %v6871_v57  ;;  %v10328_v7 = vmul.f32 0.5, %v6869_v28 }
 0xe1c   :  { %v6933_v50 = vand.u32 2147483647, %v6909_v0  ;;  %v10306_v21 = vmul.f32 0.70710677, %v6880_v20  ;;  %vm6917_vm0 = vcmp.ge.f32.partialorder %v6909_v0, 0.0  ;;  %v10330_v26 = vmul.f32 0.5, %v6880_v20 }
 0xe1d   :  { %v6931_v43 = vand.u32 2147483647, %v10304_v53  ;;  %v10311_v27 = vmul.f32 0.70710677, %v6872_v2  ;;  %v10338_v22 = vsel %vm6917_vm0, 1.0, %v8930_v24  ;;  %v10340_v8 = vmul.f32 0.5, %v6872_v2 }
 0xe1e   :  { %v6941_v12 = vmul.f32 0.3275911, %v6933_v50  ;;  %v6934_v6 = vand.u32 2147483647, %v10306_v21  ;;  %v7045_v49 = vsub.f32 0.0, %v6933_v50  ;;  %vm6915_vm3 = vcmp.ge.f32.partialorder %v10304_v53, 0.0 }
 0xe1f   :  { %v6939_v59 = vmul.f32 0.3275911, %v6931_v43  ;;  %v6932_v41 = vand.u32 2147483647, %v10311_v27  ;;  %v7043_v9 = vsub.f32 0.0, %v6931_v43  ;;  %vm6918_vm9 = vcmp.ge.f32.partialorder %v10306_v21, 0.0 }
 0xe20   :  { %v6949_v62 = vadd.f32 1.0, %v6941_v12  ;;  %v6942_v19 = vmul.f32 0.3275911, %v6934_v6  ;;  %v7046_v47 = vsub.f32 0.0, %v6934_v6  ;;  %v7053_v29 = vmul.f32 %v7045_v49, %v6933_v50 }
 0xe21   :  { %v6947_v15 = vadd.f32 1.0, %v6939_v59  ;;  %v6940_v48 = vmul.f32 0.3275911, %v6932_v41  ;;  %v7051_v58 = vmul.f32 %v7043_v9, %v6931_v43  ;;  %v7044_v45 = vsub.f32 0.0, %v6932_v41 }
 0xe22   :  { %8759 = vrcp.f32 %v6949_v62  ;;  %v6950_v42 = vadd.f32 1.0, %v6942_v19  ;;  %v7054_v37 = vmul.f32 %v7046_v47, %v6934_v6  ;;  %v7063_v33 = vmul.f32 1.442695, %v7053_v29 }
 0xe23   :  { %8761 = vrcp.f32 %v6947_v15  ;;  %v6948_v23 = vadd.f32 1.0, %v6940_v48  ;;  %v7059_v32 = vmul.f32 1.442695, %v7051_v58  ;;  %v7052_v59 = vmul.f32 %v7044_v45, %v6932_v41 }
 0xe24   :  { %8763 = vrcp.f32 %v6950_v42  ;;  %v7065_v50 = vmul.f32 1.442695, %v7054_v37  ;;  %vm6916_vm10 = vcmp.ge.f32.partialorder %v10311_v27, 0.0 }
 0xe25   :  { %8765 = vrcp.f32 %v6948_v23 }
 0xe27   :  { %v8510_v13 = vpop.f32.mrb[16].mxu0 }
 0xe28   :  { %v10315_v46 = vadd.f32 %v8510_v13, %v10299_v35  ;;  %v6884_v38 = vpop.f32.mrb[17].mxu0 }
 0xe29   :  { %v10318_v44 = vadd.f32 %v10299_v35, %v6884_v38  ;;  %v8511_v1 = vpop.f32.mrb[18].mxu0  ;;  %v7061_v38 = vmul.f32 1.442695, %v7052_v59 }
 0xe2a   :  { %v10323_v55 = vmul.f32 0.70710677, %v10315_v46  ;;  %v10326_v3 = vadd.f32 %v8511_v1, %v10299_v35  ;;  %v6887_v61 = vpop.f32.mrb[19].mxu0 }
 0xe2b   :  { %v10333_v16 = vmul.f32 0.70710677, %v10318_v44  ;;  %v10363_v23 = vadd.f32 %v10299_v35, %v6887_v61 }
 0xe2c   :  { %v10335_v11 = vpop.eup %8759  ;;  %v6937_v51 = vand.u32 2147483647, %v10323_v55  ;;  %v10350_v60 = vmul.f32 0.70710677, %v10326_v3  ;;  %vm6921_vm11 = vcmp.ge.f32.partialorder %v10323_v55, 0.0 }
 0xe2d   :  { %v10343_v54 = vpop.eup %8761  ;;  %v6973_v18 = vmul.f32 1.0614054, %v10335_v11  ;;  %v6935_v4 = vand.u32 2147483647, %v10333_v16  ;;  %v10370_v35 = vmul.f32 0.70710677, %v10363_v23 }
 0xe2e   :  { %v6971_v31 = vmul.f32 1.0614054, %v10343_v54  ;;  %v6945_v56 = vmul.f32 0.3275911, %v6937_v51  ;;  %v10352_v52 = vpop.eup %8763  ;;  %v6938_v6 = vand.u32 2147483647, %v10350_v60 }
 0xe2f   :  { %v6981_v30 = vadd.f32 -1.4531521, %v6973_v18  ;;  %v6943_v40 = vmul.f32 0.3275911, %v6935_v4  ;;  %v6974_v57 = vmul.f32 1.0614054, %v10352_v52  ;;  %v10357_v43 = vpop.eup %8765 }
 0xe30   :  { %v6979_v28 = vadd.f32 -1.4531521, %v6971_v31  ;;  %v6953_v0 = vadd.f32 1.0, %v6945_v56  ;;  %v6972_v19 = vmul.f32 1.0614054, %v10357_v43  ;;  %v7049_v47 = vsub.f32 0.0, %v6937_v51 }
 0xe31   :  { %v6989_v20 = vmul.f32 %v10335_v11, %v6981_v30  ;;  %v6951_v2 = vadd.f32 1.0, %v6943_v40  ;;  %v6982_v15 = vadd.f32 -1.4531521, %v6974_v57  ;;  %v6946_v48 = vmul.f32 0.3275911, %v6938_v6 }
 0xe32   :  { %v6987_v12 = vmul.f32 %v10343_v54, %v6979_v28  ;;  %8767 = vrcp.f32 %v6953_v0  ;;  %v6980_v41 = vadd.f32 -1.4531521, %v6972_v19  ;;  %v7047_v45 = vsub.f32 0.0, %v6935_v4 }
 0xe33   :  { %v6997_v62 = vadd.f32 1.4214138, %v6989_v20  ;;  %8769 = vrcp.f32 %v6951_v2  ;;  %v6990_v13 = vmul.f32 %v10352_v52, %v6982_v15  ;;  %v6954_v1 = vadd.f32 1.0, %v6946_v48 }
 0xe34   :  { %8771 = vpow2.f32 %v7063_v33  ;;  %v6995_v42 = vadd.f32 1.4214138, %v6987_v12  ;;  %v6988_v18 = vmul.f32 %v10357_v43, %v6980_v41  ;;  %v6923_v31 = vsel %vm6915_vm3, 1.0, %v8930_v24 }
 0xe35   :  { %v7005_v49 = vmul.f32 %v10335_v11, %v6997_v62  ;;  %8773 = vpow2.f32 %v7059_v32  ;;  %v6998_v58 = vadd.f32 1.4214138, %v6990_v13  ;;  %v7057_v40 = vmul.f32 %v7049_v47, %v6937_v51 }
 0xe36   :  { %v7003_v9 = vmul.f32 %v10343_v54, %v6995_v42  ;;  %8775 = vpow2.f32 %v7065_v50  ;;  %v6996_v30 = vadd.f32 1.4214138, %v6988_v18  ;;  %v10379_v28 = vand.u32 2147483647, %v10370_v35 }
 0xe37   :  { %v7013_v29 = vadd.f32 -0.28449672, %v7005_v49  ;;  %8777 = vrcp.f32 %v6954_v1  ;;  %v7006_v56 = vmul.f32 %v10352_v52, %v6998_v58  ;;  %v6926_v0 = vsel %vm6918_vm9, 1.0, %v8930_v24 }
 0xe38   :  { %v7011_v37 = vadd.f32 -0.28449672, %v7003_v9  ;;  %8779 = vpow2.f32 %v7061_v38  ;;  %v7004_v57 = vmul.f32 %v10357_v43, %v6996_v30  ;;  %v7055_v2 = vmul.f32 %v7047_v45, %v6935_v4 }
 0xe39   :  { %v7021_v61 = vmul.f32 %v10335_v11, %v7013_v29  ;;  %v7014_v20 = vadd.f32 -0.28449672, %v7006_v56  ;;  %v7050_v12 = vsub.f32 0.0, %v6938_v6  ;;  %v6944_v59 = vmul.f32 0.3275911, %v10379_v28 }
 0xe3a   :  { %v7019_v33 = vmul.f32 %v10343_v54, %v7011_v37  ;;  %v7012_v19 = vadd.f32 -0.28449672, %v7004_v57  ;;  %v7071_v49 = vmul.f32 1.442695, %v7057_v40  ;;  %vm6922_vm12 = vcmp.ge.f32.partialorder %v10350_v60, 0.0 }
 0xe3b   :  { %v7029_v32 = vadd.f32 0.2548296, %v7021_v61  ;;  %v7022_v15 = vmul.f32 %v10352_v52, %v7014_v20  ;;  %v6952_v41 = vadd.f32 1.0, %v6944_v59  ;;  %v7058_v58 = vmul.f32 %v7050_v12, %v6938_v6 }
 0xe3c   :  { %v10385_v53 = vpop.eup %8767  ;;  %v7027_v50 = vadd.f32 0.2548296, %v7019_v33  ;;  %v7020_v47 = vmul.f32 %v10357_v43, %v7012_v19  ;;  %v7067_v12 = vmul.f32 1.442695, %v7055_v2  ;;  %vm6919_vm13 = vcmp.ge.f32.partialorder %v10333_v16, 0.0 }
 0xe3d   :  { %v10388_v62 = vpop.eup %8769  ;;  %v7037_v51 = vmul.f32 %v10335_v11, %v7029_v32  ;;  %v6977_v21 = vmul.f32 1.0614054, %v10385_v53  ;;  %v7030_v38 = vadd.f32 0.2548296, %v7022_v15  ;;  %8781 = vrcp.f32 %v6952_v41 }
 0xe3e   :  { %v8772_v42 = vpop.eup %8771  ;;  %v7035_v48 = vmul.f32 %v10343_v54, %v7027_v50  ;;  %v6975_v13 = vmul.f32 1.0614054, %v10388_v62  ;;  %v7028_v61 = vadd.f32 0.2548296, %v7020_v47  ;;  %8783 = vpow2.f32 %v7071_v49 }
 0xe3f   :  { %v8774_v4 = vpop.eup %8773  ;;  %v7077_v9 = vmul.f32 %v8772_v42, %v7037_v51  ;;  %v6985_v1 = vadd.f32 -1.4531521, %v6977_v21  ;;  %v7038_v45 = vmul.f32 %v10352_v52, %v7030_v38  ;;  %v7073_v21 = vmul.f32 1.442695, %v7058_v58 }
 0xe40   :  { %v7075_v29 = vmul.f32 %v8774_v4, %v7035_v48  ;;  %v6983_v11 = vadd.f32 -1.4531521, %v6975_v13  ;;  %v8776_v18 = vpop.eup %8775  ;;  %v7036_v6 = vmul.f32 %v10357_v43, %v7028_v61  ;;  %v6924_v43 = vsel %vm6916_vm10, 1.0, %v8930_v24 }
 0xe41   :  { %v7085_v37 = vsub.f32 1.0, %v7077_v9  ;;  %v6993_v54 = vmul.f32 %v10385_v53, %v6985_v1  ;;  %v10398_v56 = vpop.eup %8777  ;;  %v7078_v32 = vmul.f32 %v8776_v18, %v7038_v45  ;;  %8785 = vpow2.f32 %v7067_v12 }
 0xe42   :  { %v7083_v30 = vsub.f32 1.0, %v7075_v29  ;;  %v6991_v33 = vmul.f32 %v10388_v62, %v6983_v11  ;;  %v8780_v57 = vpop.eup %8779  ;;  %v6978_v59 = vmul.f32 1.0614054, %v10398_v56  ;;  %8787 = vpow2.f32 %v7073_v21 }
 0xe43   :  { %v7093_v40 = vmul.f32 %v7085_v37, %v10338_v22  ;;  %v7001_v20 = vadd.f32 1.4214138, %v6993_v54  ;;  %v7086_v51 = vsub.f32 1.0, %v7078_v32  ;;  %v7076_v15 = vmul.f32 %v8780_v57, %v7036_v6 }
 0xe44   :  { %v7091_v50 = vmul.f32 %v7083_v30, %v6923_v31  ;;  %v6999_v52 = vadd.f32 1.4214138, %v6991_v33  ;;  %v6986_v49 = vadd.f32 -1.4531521, %v6978_v59  ;;  %v7048_v22 = vsub.f32 0.0, %v10379_v28 }
 0xe45   :  { %v7009_v19 = vmul.f32 %v10385_v53, %v7001_v20  ;;  %v7101_v42 = vadd.f32 1.0, %v7093_v40  ;;  %v7094_v13 = vmul.f32 %v7086_v51, %v6926_v0  ;;  %v7084_v31 = vsub.f32 1.0, %v7076_v15 }
 0xe46   :  { %v7007_v48 = vmul.f32 %v10388_v62, %v6999_v52  ;;  %v7099_v41 = vadd.f32 1.0, %v7091_v50  ;;  %v6994_v9 = vmul.f32 %v10398_v56, %v6986_v49  ;;  %v7056_v27 = vmul.f32 %v7048_v22, %v10379_v28 }
 0xe47   :  { %v7017_v2 = vadd.f32 -0.28449672, %v7009_v19  ;;  %v7102_v38 = vadd.f32 1.0, %v7094_v13  ;;  %v7092_v47 = vmul.f32 %v7084_v31, %v6924_v43  ;;  %v8782_v29 = vpop.eup %8781  ;;  %v7109_v11 = vmul.f32 %v7101_v42, %v10320_v14 }
 0xe48   :  { %v7015_v4 = vadd.f32 -0.28449672, %v7007_v48  ;;  %v7002_v58 = vadd.f32 1.4214138, %v6994_v9  ;;  %v6976_v61 = vmul.f32 1.0614054, %v8782_v29  ;;  %v8784_v54 = vpop.eup %8783  ;;  %v7107_v30 = vmul.f32 %v7099_v41, %v10328_v7 }
 0xe49   :  { %v7025_v1 = vmul.f32 %v10385_v53, %v7017_v2  ;;  %v7110_v18 = vmul.f32 %v7102_v38, %v10330_v26  ;;  %v7100_v37 = vadd.f32 1.0, %v7092_v47  ;;  %v7069_v50 = vmul.f32 1.442695, %v7056_v27 }
 0xe4a   :  { %v7023_v0 = vmul.f32 %v10388_v62, %v7015_v4  ;;  %v7010_v40 = vmul.f32 %v10398_v56, %v7002_v58  ;;  %v6984_v20 = vadd.f32 -1.4531521, %v6976_v61  ;;  %v6929_v42 = vsel %vm6921_vm11, 1.0, %v8930_v24 }
 0xe4b   :  { %v7033_v45 = vadd.f32 0.2548296, %v7025_v1  ;;  %v7116_v32 = vpack.c.bf16 %v7110_v18, %v7109_v11  ;;  %v7108_v6 = vmul.f32 %v7100_v37, %v10340_v8  ;;  %v8786_v7 = vpop.eup %8785  ;;  %8789 = vpow2.f32 %v7069_v50 }
 0xe4c   :  { %v7031_v33 = vadd.f32 0.2548296, %v7023_v0  ;;  %v7018_v57 = vadd.f32 -0.28449672, %v7010_v40  ;;  %v6992_v52 = vmul.f32 %v8782_v29, %v6984_v20  ;;  %v8788_v8 = vpop.eup %8787  ;;  %v6930_v31 = vsel %vm6922_vm12, 1.0, %v8930_v24 }
 0xe4d   :  { %v7041_v14 = vmul.f32 %v10385_v53, %v7033_v45  ;;  %v7115_v26 = vpack.c.bf16 %v7108_v6, %v7107_v30  ;;  %v6905_v38 = vmul.f32 0.5, %v10315_v46  ;;  %v6927_v47 = vsel %vm6919_vm13, 1.0, %v8930_v24 }
 0xe4e   :  { %v7026_v12 = vmul.f32 %v10398_v56, %v7018_v57  ;;  %v7039_v59 = vmul.f32 %v10388_v62, %v7031_v33  ;;  %v7000_v51 = vadd.f32 1.4214138, %v6992_v52  ;;  %v6906_v1 = vmul.f32 0.5, %v10326_v3 }
 0xe4f   :  { %v7081_v28 = vmul.f32 %v8784_v54, %v7041_v14  ;;  %8528 = vmatprep.mubr.bf16.mxu1 %v7115_v26  ;;  %vm6920_vm14 = vcmp.ge.f32.partialorder %v10370_v35, 0.0  ;;  %v6903_v61 = vmul.f32 0.5, %v10318_v44  ;;  %v6904_v46 = vmul.f32 0.5, %v10363_v23  ;;  %v7395_v35 = vld [vmem:[%s10468_s6 + $0x1] ss:$0 sm:$0xff]  ;;  %s8931_s6 = smov [#allocation10]  }
 0xe50   :  { %v7034_v19 = vadd.f32 0.2548296, %v7026_v12  ;;  %8529 = vmatmul.mubr.bf16.vlgmr.msra.gmra.mrb[12].mxu1 %v7116_v32  ;;  %v7008_v53 = vmul.f32 %v8782_v29, %v7000_v51  ;;  %v7079_v48 = vmul.f32 %v8786_v7, %v7039_v59  ;;  %v6928_v37 = vsel %vm6920_vm14, 1.0, %v8930_v24  ;;  %s7274_s14 = sshll.u32 %s8931_s6, 4  ;;  %s7275_s14 = int_to_ptr.vmem [resolvable:$true] %s7274_s14 }
 0xe51   :  { %v7089_v15 = vsub.f32 1.0, %v7081_v28  ;;  %s8887_s0 = scalar_lea.vmem %s7275_s14, 1024  ;;  %p8892_p5 = scmp.lt.s32.totalorder %s7275_s14, %s7275_s14 }
 0xe52   :  { %v7042_v21 = vmul.f32 %v10398_v56, %v7034_v19  ;;  %v7016_v49 = vadd.f32 -0.28449672, %v7008_v53  ;;  %v7087_v55 = vsub.f32 1.0, %v7079_v48  ;;  %p8888_p4 = scmp.ne.s32.totalorder %s7275_s14, %s8887_s0  ;;  %p8893_p6 = scmp.lt.s32.totalorder %s8887_s0, %s8887_s0 }
 0xe53   :  { %v7097_v22 = vmul.f32 %v7089_v15, %v6929_v42 }
 0xe54   :  { %v7082_v62 = vmul.f32 %v8788_v8, %v7042_v21  ;;  %v7024_v13 = vmul.f32 %v8782_v29, %v7016_v49  ;;  %v7095_v11 = vmul.f32 %v7087_v55, %v6927_v47  ;;  %p8894_p7 = por %p8893_p6, %p8892_p5 }
 0xe55   :  { %v7105_v41 = vadd.f32 1.0, %v7097_v22  ;;  %v8790_v56 = vpop.eup %8789 }
 0xe56   :  { %v7090_v43 = vsub.f32 1.0, %v7082_v62  ;;  %v7032_v2 = vadd.f32 0.2548296, %v7024_v13  ;;  %v7103_v45 = vadd.f32 1.0, %v7095_v11  ;;  %p8895_p8 = pnand %p8894_p7, %p8888_p4 }
 0xe57   :  { %v7113_v16 = vmul.f32 %v7105_v41, %v6905_v38 }
 0xe58   :  { %v7098_v4 = vmul.f32 %v7090_v43, %v6930_v31  ;;  %v7040_v9 = vmul.f32 %v8782_v29, %v7032_v2  ;;  %v7111_v30 = vmul.f32 %v7103_v45, %v6903_v61 }
 0xe5a   :  { %v7106_v60 = vadd.f32 1.0, %v7098_v4  ;;  %v7080_v0 = vmul.f32 %v8790_v56, %v7040_v9 }
 0xe5c   :  { %v7114_v58 = vmul.f32 %v7106_v60, %v6906_v1  ;;  %v7088_v27 = vsub.f32 1.0, %v7080_v0 }
 0xe5e   :  { %v7118_v18 = vpack.c.bf16 %v7114_v58, %v7113_v16  ;;  %v7096_v29 = vmul.f32 %v7088_v27, %v6928_v37 }
 0xe60   :  { %v7104_v54 = vadd.f32 1.0, %v7096_v29 }
 0xe62   :  { %v7112_v3 = vmul.f32 %v7104_v54, %v6904_v46 }
 0xe64   :  { %v7117_v33 = vpack.c.bf16 %v7112_v3, %v7111_v30 }
 0xe66   :  { %8532 = vmatprep.mubr.bf16.mxu1 %v7117_v33 }
 0xe67   :  { %8533 = vmatmul.mubr.bf16.gmra.mrb[16].mxu1 %v7118_v18 }
 0xf23   :  { %v8530_v40 = vpop.f32.mrb[12].mxu1 }
 0xf24   :  { %v7231_v32 = vadd.f32 %v8530_v40, %v7395_v35  ;;  %v7222_v6 = vpop.f32.mrb[13].mxu1 }
 0xf25   :  { %v7223_v24 = vadd.f32 %v7395_v35, %v7222_v6  ;;  %v8531_v14 = vpop.f32.mrb[14].mxu1 }
 0xf26   :  { %v7255_v20 = vadd.f32 %v7231_v32, %v10270_v34  ;;  %v7234_v44 = vadd.f32 %v8531_v14, %v7395_v35  ;;  %v7225_v57 = vpop.f32.mrb[15].mxu1 }
 0xf27   :  { %v7253_v23 = vadd.f32 %v7223_v24, %v10260_v25  ;;  %v7226_v50 = vadd.f32 %v7395_v35, %v7225_v57 }
 0xf28   :  { %7263 = vst [vmem:[#allocation10 + $0x10] sm:$0xff] %v7255_v20  ;;  %v7256_v28 = vadd.f32 %v7234_v44, %v10272_v10 }
 0xf29   :  { %7261 = vst [vmem:[#allocation10] sm:$0xff] %v7253_v23  ;;  %v7254_v52 = vadd.f32 %v7226_v50, %v10262_v63 }
 0xf2a   :  { %7264 = vst [vmem:[#allocation10 + $0x18] sm:$0xff] %v7256_v28 }
 0xf2b   :  { %7262 = vst [vmem:[#allocation10 + $0x8] sm:$0xff] %v7254_v52 }
 0xf3a   :  { %v8534_v26 = vpop.f32.mrb[16].mxu1 }
 0xf3b   :  { %v7247_v12 = vadd.f32 %v8534_v26, %v7395_v35  ;;  %v7238_v59 = vpop.f32.mrb[17].mxu1 }
 0xf3c   :  { %v7239_v51 = vadd.f32 %v7395_v35, %v7238_v59  ;;  %v8535_v7 = vpop.f32.mrb[18].mxu1 }
 0xf3d   :  { %v7259_v34 = vadd.f32 %v7247_v12, %v10290_v17  ;;  %v7250_v15 = vadd.f32 %v8535_v7, %v7395_v35  ;;  %v7241_v19 = vpop.f32.mrb[19].mxu1 }
 0xf3e   :  { %v7257_v25 = vadd.f32 %v7239_v51, %v10280_v36  ;;  %v7242_v8 = vadd.f32 %v7395_v35, %v7241_v19 }
 0xf3f   :  { %7267 = vst [vmem:[#allocation10 + $0x30] sm:$0xff] %v7259_v34  ;;  %v7260_v10 = vadd.f32 %v7250_v15, %v10292_v39 }
 0xf40   :  { %7265 = vst [vmem:[#allocation10 + $0x20] sm:$0xff] %v7257_v25  ;;  %v7258_v63 = vadd.f32 %v7242_v8, %v10282_v5 }
 0xf41   :  { %7268 = vst [vmem:[#allocation10 + $0x38] sm:$0xff] %v7260_v10 }
 0xf42   :  { %7266 = vst [vmem:[#allocation10 + $0x28] sm:$0xff] %v7258_v63 }
 0xf43   :  { %8898 = shalt.err (!%p8895_p8)
}
 0xf44   :  { %s8899_s17 = scalar_lea.hbm %s10469_s7, 1024 }
 0xf45   :  { %p8900_p9 = scmp.ne.s32.totalorder %s10469_s7, %s8899_s17  ;;  %p8903_p10 = scmp.lt.u32.totalorder %s8899_s17, %s10469_s7 }
 0xf47   :  { %p8905_p11 = pnand %p8903_p10, %p8900_p9 }
 0xf49   :  { %8908 = shalt.err (!%p8905_p11)
}
 0xf4a   :  { %7280 = dma.vmem_to_hbm [thread:$0]  %s7275_s14, 1024, %s10469_s7, [#allocation4], %s8921_s2, %s8921_s2, %s8922_s25  }
 0xf4b   :  { %8915 = dma.done.wait [#allocation4], 1024  }
 0xf4c   :  { %8916 = vsyncadd [#allocation4], 4294966272 }
 0xf4d   :  { %7284 = vsyncpa [#allocation3], 1 }
 0xf4e   :  { %7285 = vsyncpa [#allocation6], 1 }
 0xf4f   :  { %7286 = vsyncpa [#allocation9], 1 }
 0xf50   :  { %7287 = vsyncpa [#allocation4], 1 }

</bundles_post_ra>
